<compile_context>
chip_gen: v7x
topology: tpu7x:2x2x1
jax: 0.10.0
libtpu: 0.0.40
codegen_flags: <defaults>
</compile_context>

<pallas_src>
import math

import jax
import jax.numpy as jnp
from jax.experimental import pallas as pl
from jax.experimental.pallas import tpu as pltpu

_INV_SQRT2 = 1.0 / math.sqrt(2.0)


def _gelu(y):
    # exact (erf-based) GELU == torch.nn.GELU() default
    return 0.5 * y * (1.0 + jax.lax.erf(y * _INV_SQRT2))


# ----------------------------- trace-time weight preparation -----------------------------

def _bn_fold(bn, eps=1e-5):
    scale = bn["gamma"] / jnp.sqrt(bn["var"] + eps)
    shift = bn["beta"] - bn["mean"] * scale
    return scale, shift


def _affine(bias, bn):
    """Fold conv/linear bias + eval-mode BatchNorm into one (scale, shift) column pair."""
    scale, shift = _bn_fold(bn)
    shift = bias * scale + shift
    return (scale.reshape(-1, 1).astype(jnp.float32),
            shift.reshape(-1, 1).astype(jnp.float32))


def _col(v):
    return v.reshape(-1, 1).astype(jnp.float32)


def _taps(w):
    """(Cout, Cin, k) -> (k, Cout, Cin) tap-major layout used by the in-kernel conv."""
    return jnp.transpose(w, (2, 0, 1)).astype(jnp.float32)


def _embed_taps(wt, kmax):
    """Zero-embed a (k, Cout, Cin) tap stack into kmax taps (centered).  With replicate
    padding pad=(kmax-1)//2 this is exactly equivalent to the original pad=(k-1)//2 conv."""
    k = wt.shape[0]
    off = (kmax - k) // 2
    return jnp.pad(wt, ((off, kmax - k - off), (0, 0), (0, 0)))


def _sel_mat(lin, stride, lout):
    """Constant 0/1 (lin, lout) matrix picking columns 0, stride, 2*stride, ..."""
    r = jnp.arange(lin)[:, None]
    c = jnp.arange(lout)[None, :]
    return (r == c * stride).astype(jnp.float32)


# ----------------------------- fused whole-network kernel builder -----------------------------

def _build_fused(params, cfg, L_in):
    stride = cfg["stride"]
    branch_ks = tuple(cfg["branch_ks"])
    main_k = cfg["main_k"]
    n_b = len(branch_ks)
    kmax = max(branch_ks)
    P = (kmax - 1) // 2

    consts = []

    def add(a):
        consts.append(jnp.asarray(a, jnp.float32))
        return len(consts) - 1

    blocks_plan = []
    cin = cfg["dim"]
    L = L_in
    max_rows, max_cols = 8, 8

    for bp in params["blocks"]:
        blk = {}
        bc = bp["main_w"].shape[0]

        # ---- TNet (optional) ----
        if bp["tnet"] is not None:
            tp = bp["tnet"]
            l1f = L - 3 + 1                       # stride-1 length after tnet conv1
            l1 = (L - 3) // 2 + 1                 # stride-2 output length
            l2f = l1 - 3 + 1
            l2 = (l1 - 3) // 2 + 1
            s1, sh1 = _affine(tp["conv1_b"], tp["bn1"])
            ls1, lsh1 = _affine(tp["lin1_b"], tp["bn2"])
            hid = tp["lin1_w"].shape[0]
            amat = jnp.transpose(tp["lin2_w"].reshape(cin, cin, hid), (2, 0, 1))
            blk["tnet"] = dict(
                w1=add(_taps(tp["conv1_w"])), s1=add(s1), sh1=add(sh1),
                sel1=add(_sel_mat(l1f, 2, l1)),
                w2=add(_taps(tp["conv2_w"])), b2=add(_col(tp["conv2_b"])),
                sel2=add(_sel_mat(l2f, 2, l2)),
                l1w=add(tp["lin1_w"]), l1s=add(ls1), l1sh=add(lsh1),
                a=add(amat), bm=add(tp["lin2_b"].reshape(cin, cin)), hid=hid)
        else:
            blk["tnet"] = None

        # ---- main conv ----
        lmf = L - main_k + 1
        lm = (L - main_k) // stride + 1
        blk["wm"] = add(_taps(bp["main_w"]))
        blk["bmn"] = add(_col(bp["main_b"]))
        blk["msel"] = add(_sel_mat(lmf, stride, lm)) if stride > 1 else None

        # ---- branch convs, stacked along Cout (branch order == torch.cat order) ----
        C2 = n_b * bc
        w1s = jnp.concatenate(
            [_embed_taps(_taps(br["conv1_w"]), kmax) for br in bp["branches"]], axis=1)
        w2s = jnp.zeros((kmax, C2, C2), jnp.float32)
        sc1, sh1b, sc2, sh2b = [], [], [], []
        for j, br in enumerate(bp["branches"]):
            w2s = w2s.at[:, j * bc:(j + 1) * bc, j * bc:(j + 1) * bc].set(
                _embed_taps(_taps(br["conv2_w"]), kmax))
            a1, b1 = _affine(br["conv1_b"], br["bn1"])
            a2, b2 = _affine(br["conv2_b"], br["bn2"])
            sc1.append(a1); sh1b.append(b1); sc2.append(a2); sh2b.append(b2)
        blk["w1s"] = add(w1s)
        blk["sc1"] = add(jnp.concatenate(sc1, axis=0))
        blk["sh1"] = add(jnp.concatenate(sh1b, axis=0))
        blk["w2s"] = add(w2s)
        blk["sc2"] = add(jnp.concatenate(sc2, axis=0))
        blk["sh2"] = add(jnp.concatenate(sh2b, axis=0))

        lb_full = lm + 2 * P - kmax + 1
        lb = (lm + 2 * P - kmax) // stride + 1
        blk["bsel1"] = add(_sel_mat(lb_full, stride, lb)) if stride > 1 else None
        lb2_full = lb + 2 * P - kmax + 1
        lb2 = (lb + 2 * P - kmax) // stride + 1
        blk["bsel2"] = add(_sel_mat(lb2_full, stride, lb2)) if stride > 1 else None

        # ---- fused MaxPool1d(3, 2) ----
        lpool = (lb2 - 3) // 2 + 1
        blk["psel"] = add(_sel_mat(lb2 - 2, 2, lpool))
        blk["bc"] = bc
        blk["nb"] = n_b
        blocks_plan.append(blk)

        max_rows = max(max_rows, C2)
        max_cols = max(max_cols, lm + 2 * P, lb + 2 * P)
        cin = C2
        L = lpool

    # ---- head ----
    hs1, hsh1 = _affine(params["head_lin1_b"], params["head_bn"])
    head = dict(wf=add(_taps(params["final_w"])), bf=add(_col(params["final_b"])),
                w1=add(params["head_lin1_w"]), s1=add(hs1), sh1=add(hsh1),
                w2=add(params["head_lin2_w"]), b2=add(_col(params["head_lin2_b"])))
    classes = params["head_lin2_w"].shape[0]
    n_consts = len(consts)

    # ------------------------------- the kernel -------------------------------
    def kernel(*refs):
        x_ref = refs[0]
        w = refs[1:1 + n_consts]          # grid-invariant weight / constant refs
        o_ref = refs[1 + n_consts]
        pbuf = refs[2 + n_consts]         # VMEM scratch for replicate-pad slabs

        def dotf(a, b):
            return jnp.dot(a, b, preferred_element_type=jnp.float32)

        def affine_act(acc, scale, shift, gelu):
            if scale is not None:
                acc = acc * w[scale][...]
            if shift is not None:
                acc = acc + w[shift][...]
            return _gelu(acc) if gelu else acc

        def conv_val(x, wi, sel=None, scale=None, shift=None, gelu=False):
            """Unpadded conv on a (Cin, L) value: k accumulated tap dots + optional
            stride select (constant 0/1 matrix) + folded BN affine + GELU."""
            wr = w[wi]
            k = wr.shape[0]
            ls = x.shape[1] - k + 1
            acc = dotf(wr[0], x[:, 0:ls])
            for i in range(1, k):
                acc = acc + dotf(wr[i], x[:, i:i + ls])
            if sel is not None:
                acc = dotf(acc, w[sel][...])
            return affine_act(acc, scale, shift, gelu)

        def conv_pad(x, wi, sel, scale, shift, gelu):
            """Replicate-('edge')padded conv: pad via VMEM scratch writes (interior +
            two broadcast edge stores), then kmax tap dots over the padded slab."""
            R, Lc = x.shape
            pbuf[0:R, P:P + Lc] = x
            pbuf[0:R, 0:P] = jnp.broadcast_to(x[:, 0:1], (R, P))
            pbuf[0:R, P + Lc:P + Lc + P] = jnp.broadcast_to(x[:, Lc - 1:Lc], (R, P))
            wr = w[wi]
            ls = Lc + 2 * P - kmax + 1
            acc = dotf(wr[0], pbuf[0:R, 0:ls])
            for i in range(1, kmax):
                acc = acc + dotf(wr[i], pbuf[0:R, i:i + ls])
            if sel is not None:
                acc = dotf(acc, w[sel][...])
            return affine_act(acc, scale, shift, gelu)

        def tile_rows(xv, n):
            """Stack n copies of xv along rows via scratch writes (residual broadcast)."""
            R, Lc = xv.shape
            for j in range(n):
                pbuf[j * R:(j + 1) * R, 0:Lc] = xv
            return pbuf[0:n * R, 0:Lc]

        def tnet(xb, tn):
            h = conv_val(xb, tn["w1"], sel=tn["sel1"], scale=tn["s1"],
                         shift=tn["sh1"], gelu=True)
            h = conv_val(h, tn["w2"], sel=tn["sel2"], shift=tn["b2"])
            feat = jnp.max(h, axis=-1, keepdims=True)
            g = _gelu(dotf(w[tn["l1w"]][...], feat) * w[tn["l1s"]][...]
                      + w[tn["l1sh"]][...])
            # out = (bias_mat + sum_j g[j] * A_j) @ x   — one MXU dot total
            m = w[tn["bm"]][...]
            for j in range(tn["hid"]):
                m = m + g[j:j + 1, 0:1] * w[tn["a"]][j]
            return dotf(m, xb)

        def block(xb, blk):
            """One MultiBranchBlock: (TNet) -> main conv -> stacked branch ResBlocks
            (the torch.cat(dim=1) is the row order of the stacked weights) -> MaxPool."""
            if blk["tnet"] is not None:
                xb = tnet(xb, blk["tnet"])
            ym = conv_val(xb, blk["wm"], sel=blk["msel"], shift=blk["bmn"])
            h = conv_pad(ym, blk["w1s"], blk["bsel1"], blk["sc1"], blk["sh1"], True)
            h = conv_pad(h, blk["w2s"], blk["bsel2"], blk["sc2"], blk["sh2"], True)
            res = h + tile_rows(ym, blk["nb"])                 # ResBlock residual
            Lr = res.shape[1]
            mwin = jnp.maximum(jnp.maximum(res[:, 0:Lr - 2], res[:, 1:Lr - 1]),
                               res[:, 2:Lr])
            return dotf(mwin, w[blk["psel"]][...])             # MaxPool1d(3, 2)
            # Dropout(0.1): identity in eval mode.

        xb = x_ref[0]
        for blk in blocks_plan:
            xb = block(xb, blk)
        # head: final conv -> global max -> Linear+BN+GELU -> Linear
        y = conv_val(xb, head["wf"], shift=head["bf"])
        feat = jnp.max(y, axis=-1, keepdims=True)
        hh = _gelu(dotf(w[head["w1"]][...], feat) * w[head["s1"]][...]
                   + w[head["sh1"]][...])
        o_ref[0] = dotf(w[head["w2"]][...], hh) + w[head["b2"]][...]

    return consts, kernel, classes, (max_rows, max_cols)


def trajectorynet_forward(params, x, cfg):
    B = x.shape[0]
    x = x.reshape(B, cfg["dim"], -1).astype(jnp.float32)
    L_in = x.shape[-1]
    consts, kernel, classes, (pr, pc) = _build_fused(params, cfg, L_in)

    def full_spec(shape):
        nd = len(shape)
        return pl.BlockSpec(tuple(shape), lambda b: (0,) * nd)

    out = pl.pallas_call(
        kernel,
        out_shape=jax.ShapeDtypeStruct((B, classes, 1), jnp.float32),
        grid=(B,),
        in_specs=([pl.BlockSpec((1, cfg["dim"], L_in), lambda b: (b, 0, 0))]
                  + [full_spec(c.shape) for c in consts]),
        out_specs=pl.BlockSpec((1, classes, 1), lambda b: (b, 0, 0)),
        scratch_shapes=[pltpu.VMEM((pr, pc), jnp.float32)],
        compiler_params=pltpu.CompilerParams(dimension_semantics=("parallel",)),
    )(x, *consts)
    return out[:, :, 0]


# ----------------------------- parameter init (unchanged) -----------------------------

def init_params(key, cfg):
    dim = cfg["dim"]
    channels = (dim,) + cfg["channels"]
    branch_ks = cfg["branch_ks"]
    main_k = cfg["main_k"]
    keys = iter(jax.random.split(key, 512))

    def nrm(shape, s=0.1):
        return jax.random.normal(next(keys), shape, jnp.float32) * s

    def bn_p(c):
        return {"gamma": 1.0 + nrm((c,), 0.05), "beta": nrm((c,), 0.05),
                "mean": nrm((c,), 0.05),
                "var": 0.5 + jax.random.uniform(next(keys), (c,), jnp.float32)}

    def conv_p(cin, cout, k):
        return nrm((cout, cin, k)), nrm((cout,))

    def lin_p(fin, fout):
        return nrm((fout, fin)), nrm((fout,))

    blocks = []
    for i in range(len(channels) - 2):
        cin, cout = channels[i], channels[i + 1]
        bc = cout // len(branch_ks)
        bp = {}
        if cfg["tnets"][i]:
            c1w, c1b = conv_p(cin, bc, 3)
            c2w, c2b = conv_p(bc, bc, 3)
            l1w, l1b = lin_p(bc, bc // 2)
            l2w, l2b = lin_p(bc // 2, cin * cin)
            bp["tnet"] = {"conv1_w": c1w, "conv1_b": c1b, "bn1": bn_p(bc),
                          "conv2_w": c2w, "conv2_b": c2b,
                          "lin1_w": l1w, "lin1_b": l1b, "bn2": bn_p(bc // 2),
                          "lin2_w": l2w, "lin2_b": l2b}
        else:
            bp["tnet"] = None
        bp["main_w"], bp["main_b"] = conv_p(cin, bc, main_k)
        branches = []
        for k in branch_ks:
            c1w, c1b = conv_p(bc, bc, k)
            c2w, c2b = conv_p(bc, bc, k)
            branches.append({"conv1_w": c1w, "conv1_b": c1b, "bn1": bn_p(bc),
                             "conv2_w": c2w, "conv2_b": c2b, "bn2": bn_p(bc)})
        bp["branches"] = branches
        blocks.append(bp)

    fw, fb = conv_p(channels[-2], channels[-1], main_k)
    h1w, h1b = lin_p(channels[-1], 256)
    h2w, h2b = lin_p(256, cfg["classes"])
    return {"blocks": blocks, "final_w": fw, "final_b": fb,
            "head_lin1_w": h1w, "head_lin1_b": h1b, "head_bn": bn_p(256),
            "head_lin2_w": h2w, "head_lin2_b": h2b}


# ----------------------------- pure-JAX reference (correctness check) -----------------------------

def _ref_conv1d(x, w, b, stride=1, padding=0, pad_mode="zeros", bn=None, gelu=False):
    B, Cin, L = x.shape
    Cout, _, k = w.shape
    if padding:
        mode = "edge" if pad_mode == "replicate" else "constant"
        x = jnp.pad(x, ((0, 0), (0, 0), (padding, padding)), mode=mode)
        L = L + 2 * padding
    Lout = (L - k) // stride + 1
    span = stride * (Lout - 1) + 1
    cols = jnp.stack([x[:, :, i:i + span:stride] for i in range(k)], axis=-1)
    y = jnp.einsum("bclk,ock->bol", cols, w) + b[None, :, None]
    if bn is not None:
        s, sh = _bn_fold(bn)
        y = y * s[None, :, None] + sh[None, :, None]
    return _gelu(y) if gelu else y


def _ref_linear(x, w, b, bn=None, gelu=False):
    y = x @ w.T + b
    if bn is not None:
        s, sh = _bn_fold(bn)
        y = y * s + sh
    return _gelu(y) if gelu else y


def _ref_maxpool3_s2(x):
    L = x.shape[-1]
    Lout = (L - 3) // 2 + 1
    span = 2 * (Lout - 1) + 1
    return jnp.maximum(jnp.maximum(x[..., 0:span:2], x[..., 1:1 + span:2]),
                       x[..., 2:2 + span:2])


def _ref_tnet(p, x):
    B, cin, _ = x.shape
    h = _ref_conv1d(x, p["conv1_w"], p["conv1_b"], stride=2, bn=p["bn1"], gelu=True)
    h = _ref_conv1d(h, p["conv2_w"], p["conv2_b"], stride=2)
    h = jnp.max(h, axis=2)
    h = _ref_linear(h, p["lin1_w"], p["lin1_b"], bn=p["bn2"], gelu=True)
    h = _ref_linear(h, p["lin2_w"], p["lin2_b"])
    mat = h.reshape(B, cin, cin)
    return jnp.einsum("bij,bjl->bil", mat, x)


def _ref_block(p, x, stride, branch_ks):
    if p["tnet"] is not None:
        x = _ref_tnet(p["tnet"], x)
    x = _ref_conv1d(x, p["main_w"], p["main_b"], stride=stride)
    outs = []
    for bp, k in zip(p["branches"], branch_ks):
        pad = (k - 1) // 2
        h = _ref_conv1d(x, bp["conv1_w"], bp["conv1_b"], stride=stride, padding=pad,
                        pad_mode="replicate", bn=bp["bn1"], gelu=True)
        h = _ref_conv1d(h, bp["conv2_w"], bp["conv2_b"], stride=stride, padding=pad,
                        pad_mode="replicate", bn=bp["bn2"], gelu=True)
        outs.append(h + x)
    return _ref_maxpool3_s2(jnp.concatenate(outs, axis=1))


def _ref_forward(params, x, cfg):
    B = x.shape[0]
    x = x.reshape(B, cfg["dim"], -1)
    for bp in params["blocks"]:
        x = _ref_block(bp, x, cfg["stride"], cfg["branch_ks"])
    x = _ref_conv1d(x, params["final_w"], params["final_b"])
    x = jnp.max(x, axis=2)
    x = _ref_linear(x, params["head_lin1_w"], params["head_lin1_b"],
                    bn=params["head_bn"], gelu=True)
    return _ref_linear(x, params["head_lin2_w"], params["head_lin2_b"])


# ----------------------------- main -----------------------------

if __name__ == "__main__":
    # TrajectoryNet(dim=4, channels=(8, 16, 64), tnets=(True, False), classes=5,
    #               stride=1, main_kernel_size=3, branch_kernel_sizes=(3, 5))
    cfg = dict(dim=4, channels=(8, 16, 64), tnets=(True, False), classes=5,
               stride=1, main_k=3, branch_ks=(3, 5))

    key = jax.random.PRNGKey(0)
    pkey, xkey = jax.random.split(key)
    params = init_params(pkey, cfg)

    # input trajectory: batch=2, dim=4, seq=64  (forward reshapes to (B, dim, -1))
    x = jax.random.normal(xkey, (2, cfg["dim"], 64), jnp.float32)

    fwd = jax.jit(lambda p, v: trajectorynet_forward(p, v, cfg))
    out = jax.block_until_ready(fwd(params, x))
    assert out.shape == (2, cfg["classes"]), out.shape

    # numerical check against a plain-JAX reference of the same eval-mode network
    with jax.default_matmul_precision("float32"):
        ref = jax.block_until_ready(_ref_forward(params, x, cfg))
    assert jnp.allclose(out, ref, atol=2e-2, rtol=2e-2), float(jnp.max(jnp.abs(out - ref)))

    print("KERNEL_OK")
</pallas_src>

<mosaic_0001>
module attributes {stable_mosaic.version = 11 : i64} {
  func.func @kernel(%arg0: i32, %arg1: memref<1x4x64xf32, #tpu.memory_space<vmem>>, %arg2: memref<3x4x4xf32, #tpu.memory_space<vmem>>, %arg3: memref<4x1xf32, #tpu.memory_space<vmem>>, %arg4: memref<4x1xf32, #tpu.memory_space<vmem>>, %arg5: memref<62x31xf32, #tpu.memory_space<vmem>>, %arg6: memref<3x4x4xf32, #tpu.memory_space<vmem>>, %arg7: memref<4x1xf32, #tpu.memory_space<vmem>>, %arg8: memref<29x15xf32, #tpu.memory_space<vmem>>, %arg9: memref<2x4xf32, #tpu.memory_space<vmem>>, %arg10: memref<2x1xf32, #tpu.memory_space<vmem>>, %arg11: memref<2x1xf32, #tpu.memory_space<vmem>>, %arg12: memref<2x4x4xf32, #tpu.memory_space<vmem>>, %arg13: memref<4x4xf32, #tpu.memory_space<vmem>>, %arg14: memref<3x4x4xf32, #tpu.memory_space<vmem>>, %arg15: memref<4x1xf32, #tpu.memory_space<vmem>>, %arg16: memref<5x8x4xf32, #tpu.memory_space<vmem>>, %arg17: memref<8x1xf32, #tpu.memory_space<vmem>>, %arg18: memref<8x1xf32, #tpu.memory_space<vmem>>, %arg19: memref<5x8x8xf32, #tpu.memory_space<vmem>>, %arg20: memref<8x1xf32, #tpu.memory_space<vmem>>, %arg21: memref<8x1xf32, #tpu.memory_space<vmem>>, %arg22: memref<60x30xf32, #tpu.memory_space<vmem>>, %arg23: memref<3x8x8xf32, #tpu.memory_space<vmem>>, %arg24: memref<8x1xf32, #tpu.memory_space<vmem>>, %arg25: memref<5x16x8xf32, #tpu.memory_space<vmem>>, %arg26: memref<16x1xf32, #tpu.memory_space<vmem>>, %arg27: memref<16x1xf32, #tpu.memory_space<vmem>>, %arg28: memref<5x16x16xf32, #tpu.memory_space<vmem>>, %arg29: memref<16x1xf32, #tpu.memory_space<vmem>>, %arg30: memref<16x1xf32, #tpu.memory_space<vmem>>, %arg31: memref<26x13xf32, #tpu.memory_space<vmem>>, %arg32: memref<3x64x16xf32, #tpu.memory_space<vmem>>, %arg33: memref<64x1xf32, #tpu.memory_space<vmem>>, %arg34: memref<256x64xf32, #tpu.memory_space<vmem>>, %arg35: memref<256x1xf32, #tpu.memory_space<vmem>>, %arg36: memref<256x1xf32, #tpu.memory_space<vmem>>, %arg37: memref<5x256xf32, #tpu.memory_space<vmem>>, %arg38: memref<5x1xf32, #tpu.memory_space<vmem>>, %arg39: memref<1x5x1xf32, #tpu.memory_space<vmem>>, %arg40: memref<16x66xf32, #tpu.memory_space<vmem>>) attributes {dimension_semantics = [#tpu.dimension_semantics<parallel>], iteration_bounds = array<i64: 2>, scalar_prefetch = 0 : i64, scratch_operands = 1 : i64, tpu.core_type = #tpu.core_type<tc>, window_params = [{transform_indices = @transform_0, window_bounds = array<i64: 1, 4, 64>}, {pipeline_mode = #tpu.pipeline_mode<synchronous>, transform_indices = @transform_1, window_bounds = array<i64: 3, 4, 4>}, {pipeline_mode = #tpu.pipeline_mode<synchronous>, transform_indices = @transform_2, window_bounds = array<i64: 4, 1>}, {pipeline_mode = #tpu.pipeline_mode<synchronous>, transform_indices = @transform_3, window_bounds = array<i64: 4, 1>}, {pipeline_mode = #tpu.pipeline_mode<synchronous>, transform_indices = @transform_4, window_bounds = array<i64: 62, 31>}, {pipeline_mode = #tpu.pipeline_mode<synchronous>, transform_indices = @transform_5, window_bounds = array<i64: 3, 4, 4>}, {pipeline_mode = #tpu.pipeline_mode<synchronous>, transform_indices = @transform_6, window_bounds = array<i64: 4, 1>}, {pipeline_mode = #tpu.pipeline_mode<synchronous>, transform_indices = @transform_7, window_bounds = array<i64: 29, 15>}, {pipeline_mode = #tpu.pipeline_mode<synchronous>, transform_indices = @transform_8, window_bounds = array<i64: 2, 4>}, {pipeline_mode = #tpu.pipeline_mode<synchronous>, transform_indices = @transform_9, window_bounds = array<i64: 2, 1>}, {pipeline_mode = #tpu.pipeline_mode<synchronous>, transform_indices = @transform_10, window_bounds = array<i64: 2, 1>}, {pipeline_mode = #tpu.pipeline_mode<synchronous>, transform_indices = @transform_11, window_bounds = array<i64: 2, 4, 4>}, {pipeline_mode = #tpu.pipeline_mode<synchronous>, transform_indices = @transform_12, window_bounds = array<i64: 4, 4>}, {pipeline_mode = #tpu.pipeline_mode<synchronous>, transform_indices = @transform_13, window_bounds = array<i64: 3, 4, 4>}, {pipeline_mode = #tpu.pipeline_mode<synchronous>, transform_indices = @transform_14, window_bounds = array<i64: 4, 1>}, {pipeline_mode = #tpu.pipeline_mode<synchronous>, transform_indices = @transform_15, window_bounds = array<i64: 5, 8, 4>}, {pipeline_mode = #tpu.pipeline_mode<synchronous>, transform_indices = @transform_16, window_bounds = array<i64: 8, 1>}, {pipeline_mode = #tpu.pipeline_mode<synchronous>, transform_indices = @transform_17, window_bounds = array<i64: 8, 1>}, {pipeline_mode = #tpu.pipeline_mode<synchronous>, transform_indices = @transform_18, window_bounds = array<i64: 5, 8, 8>}, {pipeline_mode = #tpu.pipeline_mode<synchronous>, transform_indices = @transform_19, window_bounds = array<i64: 8, 1>}, {pipeline_mode = #tpu.pipeline_mode<synchronous>, transform_indices = @transform_20, window_bounds = array<i64: 8, 1>}, {pipeline_mode = #tpu.pipeline_mode<synchronous>, transform_indices = @transform_21, window_bounds = array<i64: 60, 30>}, {pipeline_mode = #tpu.pipeline_mode<synchronous>, transform_indices = @transform_22, window_bounds = array<i64: 3, 8, 8>}, {pipeline_mode = #tpu.pipeline_mode<synchronous>, transform_indices = @transform_23, window_bounds = array<i64: 8, 1>}, {pipeline_mode = #tpu.pipeline_mode<synchronous>, transform_indices = @transform_24, window_bounds = array<i64: 5, 16, 8>}, {pipeline_mode = #tpu.pipeline_mode<synchronous>, transform_indices = @transform_25, window_bounds = array<i64: 16, 1>}, {pipeline_mode = #tpu.pipeline_mode<synchronous>, transform_indices = @transform_26, window_bounds = array<i64: 16, 1>}, {pipeline_mode = #tpu.pipeline_mode<synchronous>, transform_indices = @transform_27, window_bounds = array<i64: 5, 16, 16>}, {pipeline_mode = #tpu.pipeline_mode<synchronous>, transform_indices = @transform_28, window_bounds = array<i64: 16, 1>}, {pipeline_mode = #tpu.pipeline_mode<synchronous>, transform_indices = @transform_29, window_bounds = array<i64: 16, 1>}, {pipeline_mode = #tpu.pipeline_mode<synchronous>, transform_indices = @transform_30, window_bounds = array<i64: 26, 13>}, {pipeline_mode = #tpu.pipeline_mode<synchronous>, transform_indices = @transform_31, window_bounds = array<i64: 3, 64, 16>}, {pipeline_mode = #tpu.pipeline_mode<synchronous>, transform_indices = @transform_32, window_bounds = array<i64: 64, 1>}, {pipeline_mode = #tpu.pipeline_mode<synchronous>, transform_indices = @transform_33, window_bounds = array<i64: 256, 64>}, {pipeline_mode = #tpu.pipeline_mode<synchronous>, transform_indices = @transform_34, window_bounds = array<i64: 256, 1>}, {pipeline_mode = #tpu.pipeline_mode<synchronous>, transform_indices = @transform_35, window_bounds = array<i64: 256, 1>}, {pipeline_mode = #tpu.pipeline_mode<synchronous>, transform_indices = @transform_36, window_bounds = array<i64: 5, 256>}, {pipeline_mode = #tpu.pipeline_mode<synchronous>, transform_indices = @transform_37, window_bounds = array<i64: 5, 1>}, {transform_indices = @transform_38, window_bounds = array<i64: 1, 5, 1>}]} {
    %c0 = arith.constant 0 : index
    %c0_0 = arith.constant 0 : index
    %c0_1 = arith.constant 0 : index
    %0 = vector.load %arg1[%c0, %c0_0, %c0_1] : memref<1x4x64xf32, #tpu.memory_space<vmem>>, vector<1x4x64xf32>
    %1 = vector.shape_cast %0 : vector<1x4x64xf32> to vector<4x64xf32>
    %c0_2 = arith.constant 0 : index
    %c0_3 = arith.constant 0 : index
    %c0_4 = arith.constant 0 : index
    %2 = vector.load %arg2[%c0_2, %c0_3, %c0_4] : memref<3x4x4xf32, #tpu.memory_space<vmem>>, vector<1x4x4xf32>
    %3 = vector.shape_cast %2 : vector<1x4x4xf32> to vector<4x4xf32>
    %4 = vector.extract_strided_slice %1 {offsets = [0, 0], sizes = [4, 62], strides = [1, 1]} : vector<4x64xf32> to vector<4x62xf32>
    %cst = arith.constant dense<0.000000e+00> : vector<4x62xf32>
    %5 = tpu.matmul %3, %4, %cst {dimension_numbers = #tpu.dot_dimension_numbers<[1], [0], [0], [1], [0, 0, 1, 1], [], []>} : vector<4x4xf32>, vector<4x62xf32>, vector<4x62xf32> -> vector<4x62xf32>
    %c1 = arith.constant 1 : index
    %c0_5 = arith.constant 0 : index
    %c0_6 = arith.constant 0 : index
    %6 = vector.load %arg2[%c1, %c0_5, %c0_6] : memref<3x4x4xf32, #tpu.memory_space<vmem>>, vector<1x4x4xf32>
    %7 = vector.shape_cast %6 : vector<1x4x4xf32> to vector<4x4xf32>
    %8 = vector.extract_strided_slice %1 {offsets = [0, 1], sizes = [4, 62], strides = [1, 1]} : vector<4x64xf32> to vector<4x62xf32>
    %cst_7 = arith.constant dense<0.000000e+00> : vector<4x62xf32>
    %9 = tpu.matmul %7, %8, %cst_7 {dimension_numbers = #tpu.dot_dimension_numbers<[1], [0], [0], [1], [0, 0, 1, 1], [], []>} : vector<4x4xf32>, vector<4x62xf32>, vector<4x62xf32> -> vector<4x62xf32>
    %10 = arith.addf %5, %9 : vector<4x62xf32>
    %c2 = arith.constant 2 : index
    %c0_8 = arith.constant 0 : index
    %c0_9 = arith.constant 0 : index
    %11 = vector.load %arg2[%c2, %c0_8, %c0_9] : memref<3x4x4xf32, #tpu.memory_space<vmem>>, vector<1x4x4xf32>
    %12 = vector.shape_cast %11 : vector<1x4x4xf32> to vector<4x4xf32>
    %13 = vector.extract_strided_slice %1 {offsets = [0, 2], sizes = [4, 62], strides = [1, 1]} : vector<4x64xf32> to vector<4x62xf32>
    %cst_10 = arith.constant dense<0.000000e+00> : vector<4x62xf32>
    %14 = tpu.matmul %12, %13, %cst_10 {dimension_numbers = #tpu.dot_dimension_numbers<[1], [0], [0], [1], [0, 0, 1, 1], [], []>} : vector<4x4xf32>, vector<4x62xf32>, vector<4x62xf32> -> vector<4x62xf32>
    %15 = arith.addf %10, %14 : vector<4x62xf32>
    %c0_11 = arith.constant 0 : index
    %c0_12 = arith.constant 0 : index
    %16 = vector.load %arg5[%c0_11, %c0_12] : memref<62x31xf32, #tpu.memory_space<vmem>>, vector<62x31xf32>
    %cst_13 = arith.constant dense<0.000000e+00> : vector<4x31xf32>
    %17 = tpu.matmul %15, %16, %cst_13 {dimension_numbers = #tpu.dot_dimension_numbers<[1], [0], [0], [1], [0, 0, 1, 1], [], []>} : vector<4x62xf32>, vector<62x31xf32>, vector<4x31xf32> -> vector<4x31xf32>
    %c0_14 = arith.constant 0 : index
    %c0_15 = arith.constant 0 : index
    %18 = vector.load %arg3[%c0_14, %c0_15] : memref<4x1xf32, #tpu.memory_space<vmem>>, vector<4x1xf32>
    %19 = vector.broadcast %18 : vector<4x1xf32> to vector<4x31xf32>
    %20 = arith.mulf %17, %19 : vector<4x31xf32>
    %c0_16 = arith.constant 0 : index
    %c0_17 = arith.constant 0 : index
    %21 = vector.load %arg4[%c0_16, %c0_17] : memref<4x1xf32, #tpu.memory_space<vmem>>, vector<4x1xf32>
    %22 = vector.broadcast %21 : vector<4x1xf32> to vector<4x31xf32>
    %23 = arith.addf %20, %22 : vector<4x31xf32>
    %cst_18 = arith.constant 5.000000e-01 : f32
    %24 = vector.broadcast %cst_18 : f32 to vector<4x31xf32>
    %25 = arith.mulf %24, %23 : vector<4x31xf32>
    %cst_19 = arith.constant 0.707106769 : f32
    %26 = vector.broadcast %cst_19 : f32 to vector<4x31xf32>
    %27 = arith.mulf %23, %26 : vector<4x31xf32>
    %28 = math.erf %27 : vector<4x31xf32>
    %cst_20 = arith.constant 1.000000e+00 : f32
    %29 = vector.broadcast %cst_20 : f32 to vector<4x31xf32>
    %30 = arith.addf %29, %28 : vector<4x31xf32>
    %31 = arith.mulf %25, %30 : vector<4x31xf32>
    %c0_21 = arith.constant 0 : index
    %c0_22 = arith.constant 0 : index
    %c0_23 = arith.constant 0 : index
    %32 = vector.load %arg6[%c0_21, %c0_22, %c0_23] : memref<3x4x4xf32, #tpu.memory_space<vmem>>, vector<1x4x4xf32>
    %33 = vector.shape_cast %32 : vector<1x4x4xf32> to vector<4x4xf32>
    %34 = vector.extract_strided_slice %31 {offsets = [0, 0], sizes = [4, 29], strides = [1, 1]} : vector<4x31xf32> to vector<4x29xf32>
    %cst_24 = arith.constant dense<0.000000e+00> : vector<4x29xf32>
    %35 = tpu.matmul %33, %34, %cst_24 {dimension_numbers = #tpu.dot_dimension_numbers<[1], [0], [0], [1], [0, 0, 1, 1], [], []>} : vector<4x4xf32>, vector<4x29xf32>, vector<4x29xf32> -> vector<4x29xf32>
    %c1_25 = arith.constant 1 : index
    %c0_26 = arith.constant 0 : index
    %c0_27 = arith.constant 0 : index
    %36 = vector.load %arg6[%c1_25, %c0_26, %c0_27] : memref<3x4x4xf32, #tpu.memory_space<vmem>>, vector<1x4x4xf32>
    %37 = vector.shape_cast %36 : vector<1x4x4xf32> to vector<4x4xf32>
    %38 = vector.extract_strided_slice %31 {offsets = [0, 1], sizes = [4, 29], strides = [1, 1]} : vector<4x31xf32> to vector<4x29xf32>
    %cst_28 = arith.constant dense<0.000000e+00> : vector<4x29xf32>
    %39 = tpu.matmul %37, %38, %cst_28 {dimension_numbers = #tpu.dot_dimension_numbers<[1], [0], [0], [1], [0, 0, 1, 1], [], []>} : vector<4x4xf32>, vector<4x29xf32>, vector<4x29xf32> -> vector<4x29xf32>
    %40 = arith.addf %35, %39 : vector<4x29xf32>
    %c2_29 = arith.constant 2 : index
    %c0_30 = arith.constant 0 : index
    %c0_31 = arith.constant 0 : index
    %41 = vector.load %arg6[%c2_29, %c0_30, %c0_31] : memref<3x4x4xf32, #tpu.memory_space<vmem>>, vector<1x4x4xf32>
    %42 = vector.shape_cast %41 : vector<1x4x4xf32> to vector<4x4xf32>
    %43 = vector.extract_strided_slice %31 {offsets = [0, 2], sizes = [4, 29], strides = [1, 1]} : vector<4x31xf32> to vector<4x29xf32>
    %cst_32 = arith.constant dense<0.000000e+00> : vector<4x29xf32>
    %44 = tpu.matmul %42, %43, %cst_32 {dimension_numbers = #tpu.dot_dimension_numbers<[1], [0], [0], [1], [0, 0, 1, 1], [], []>} : vector<4x4xf32>, vector<4x29xf32>, vector<4x29xf32> -> vector<4x29xf32>
    %45 = arith.addf %40, %44 : vector<4x29xf32>
    %c0_33 = arith.constant 0 : index
    %c0_34 = arith.constant 0 : index
    %46 = vector.load %arg8[%c0_33, %c0_34] : memref<29x15xf32, #tpu.memory_space<vmem>>, vector<29x15xf32>
    %cst_35 = arith.constant dense<0.000000e+00> : vector<4x15xf32>
    %47 = tpu.matmul %45, %46, %cst_35 {dimension_numbers = #tpu.dot_dimension_numbers<[1], [0], [0], [1], [0, 0, 1, 1], [], []>} : vector<4x29xf32>, vector<29x15xf32>, vector<4x15xf32> -> vector<4x15xf32>
    %c0_36 = arith.constant 0 : index
    %c0_37 = arith.constant 0 : index
    %48 = vector.load %arg7[%c0_36, %c0_37] : memref<4x1xf32, #tpu.memory_space<vmem>>, vector<4x1xf32>
    %49 = vector.broadcast %48 : vector<4x1xf32> to vector<4x15xf32>
    %50 = arith.addf %47, %49 : vector<4x15xf32>
    %cst_38 = arith.constant dense<0xFF800000> : vector<4xf32>
    %51 = vector.multi_reduction <maximumf>, %50, %cst_38 [1] : vector<4x15xf32> to vector<4xf32>
    %52 = vector.shape_cast %51 : vector<4xf32> to vector<4x1xf32>
    %c0_39 = arith.constant 0 : index
    %c0_40 = arith.constant 0 : index
    %53 = vector.load %arg9[%c0_39, %c0_40] : memref<2x4xf32, #tpu.memory_space<vmem>>, vector<2x4xf32>
    %cst_41 = arith.constant dense<0.000000e+00> : vector<2x1xf32>
    %54 = tpu.matmul %53, %52, %cst_41 {dimension_numbers = #tpu.dot_dimension_numbers<[1], [0], [0], [1], [0, 0, 1, 1], [], []>} : vector<2x4xf32>, vector<4x1xf32>, vector<2x1xf32> -> vector<2x1xf32>
    %c0_42 = arith.constant 0 : index
    %c0_43 = arith.constant 0 : index
    %55 = vector.load %arg10[%c0_42, %c0_43] : memref<2x1xf32, #tpu.memory_space<vmem>>, vector<2x1xf32>
    %56 = arith.mulf %54, %55 : vector<2x1xf32>
    %c0_44 = arith.constant 0 : index
    %c0_45 = arith.constant 0 : index
    %57 = vector.load %arg11[%c0_44, %c0_45] : memref<2x1xf32, #tpu.memory_space<vmem>>, vector<2x1xf32>
    %58 = arith.addf %56, %57 : vector<2x1xf32>
    %cst_46 = arith.constant 5.000000e-01 : f32
    %59 = vector.broadcast %cst_46 : f32 to vector<2x1xf32>
    %60 = arith.mulf %59, %58 : vector<2x1xf32>
    %cst_47 = arith.constant 0.707106769 : f32
    %61 = vector.broadcast %cst_47 : f32 to vector<2x1xf32>
    %62 = arith.mulf %58, %61 : vector<2x1xf32>
    %63 = math.erf %62 : vector<2x1xf32>
    %cst_48 = arith.constant 1.000000e+00 : f32
    %64 = vector.broadcast %cst_48 : f32 to vector<2x1xf32>
    %65 = arith.addf %64, %63 : vector<2x1xf32>
    %66 = arith.mulf %60, %65 : vector<2x1xf32>
    %c0_49 = arith.constant 0 : index
    %c0_50 = arith.constant 0 : index
    %67 = vector.load %arg13[%c0_49, %c0_50] : memref<4x4xf32, #tpu.memory_space<vmem>>, vector<4x4xf32>
    %68 = vector.extract_strided_slice %66 {offsets = [0, 0], sizes = [1, 1], strides = [1, 1]} : vector<2x1xf32> to vector<1x1xf32>
    %c0_51 = arith.constant 0 : index
    %c0_52 = arith.constant 0 : index
    %c0_53 = arith.constant 0 : index
    %69 = vector.load %arg12[%c0_51, %c0_52, %c0_53] : memref<2x4x4xf32, #tpu.memory_space<vmem>>, vector<1x4x4xf32>
    %70 = vector.shape_cast %69 : vector<1x4x4xf32> to vector<4x4xf32>
    %71 = vector.broadcast %68 : vector<1x1xf32> to vector<4x4xf32>
    %72 = arith.mulf %71, %70 : vector<4x4xf32>
    %73 = arith.addf %67, %72 : vector<4x4xf32>
    %74 = vector.extract_strided_slice %66 {offsets = [1, 0], sizes = [1, 1], strides = [1, 1]} : vector<2x1xf32> to vector<1x1xf32>
    %c1_54 = arith.constant 1 : index
    %c0_55 = arith.constant 0 : index
    %c0_56 = arith.constant 0 : index
    %75 = vector.load %arg12[%c1_54, %c0_55, %c0_56] : memref<2x4x4xf32, #tpu.memory_space<vmem>>, vector<1x4x4xf32>
    %76 = vector.shape_cast %75 : vector<1x4x4xf32> to vector<4x4xf32>
    %77 = vector.broadcast %74 : vector<1x1xf32> to vector<4x4xf32>
    %78 = arith.mulf %77, %76 : vector<4x4xf32>
    %79 = arith.addf %73, %78 : vector<4x4xf32>
    %cst_57 = arith.constant dense<0.000000e+00> : vector<4x64xf32>
    %80 = tpu.matmul %79, %1, %cst_57 {dimension_numbers = #tpu.dot_dimension_numbers<[1], [0], [0], [1], [0, 0, 1, 1], [], []>} : vector<4x4xf32>, vector<4x64xf32>, vector<4x64xf32> -> vector<4x64xf32>
    %c0_58 = arith.constant 0 : index
    %c0_59 = arith.constant 0 : index
    %c0_60 = arith.constant 0 : index
    %81 = vector.load %arg14[%c0_58, %c0_59, %c0_60] : memref<3x4x4xf32, #tpu.memory_space<vmem>>, vector<1x4x4xf32>
    %82 = vector.shape_cast %81 : vector<1x4x4xf32> to vector<4x4xf32>
    %83 = vector.extract_strided_slice %80 {offsets = [0, 0], sizes = [4, 62], strides = [1, 1]} : vector<4x64xf32> to vector<4x62xf32>
    %cst_61 = arith.constant dense<0.000000e+00> : vector<4x62xf32>
    %84 = tpu.matmul %82, %83, %cst_61 {dimension_numbers = #tpu.dot_dimension_numbers<[1], [0], [0], [1], [0, 0, 1, 1], [], []>} : vector<4x4xf32>, vector<4x62xf32>, vector<4x62xf32> -> vector<4x62xf32>
    %c1_62 = arith.constant 1 : index
    %c0_63 = arith.constant 0 : index
    %c0_64 = arith.constant 0 : index
    %85 = vector.load %arg14[%c1_62, %c0_63, %c0_64] : memref<3x4x4xf32, #tpu.memory_space<vmem>>, vector<1x4x4xf32>
    %86 = vector.shape_cast %85 : vector<1x4x4xf32> to vector<4x4xf32>
    %87 = vector.extract_strided_slice %80 {offsets = [0, 1], sizes = [4, 62], strides = [1, 1]} : vector<4x64xf32> to vector<4x62xf32>
    %cst_65 = arith.constant dense<0.000000e+00> : vector<4x62xf32>
    %88 = tpu.matmul %86, %87, %cst_65 {dimension_numbers = #tpu.dot_dimension_numbers<[1], [0], [0], [1], [0, 0, 1, 1], [], []>} : vector<4x4xf32>, vector<4x62xf32>, vector<4x62xf32> -> vector<4x62xf32>
    %89 = arith.addf %84, %88 : vector<4x62xf32>
    %c2_66 = arith.constant 2 : index
    %c0_67 = arith.constant 0 : index
    %c0_68 = arith.constant 0 : index
    %90 = vector.load %arg14[%c2_66, %c0_67, %c0_68] : memref<3x4x4xf32, #tpu.memory_space<vmem>>, vector<1x4x4xf32>
    %91 = vector.shape_cast %90 : vector<1x4x4xf32> to vector<4x4xf32>
    %92 = vector.extract_strided_slice %80 {offsets = [0, 2], sizes = [4, 62], strides = [1, 1]} : vector<4x64xf32> to vector<4x62xf32>
    %cst_69 = arith.constant dense<0.000000e+00> : vector<4x62xf32>
    %93 = tpu.matmul %91, %92, %cst_69 {dimension_numbers = #tpu.dot_dimension_numbers<[1], [0], [0], [1], [0, 0, 1, 1], [], []>} : vector<4x4xf32>, vector<4x62xf32>, vector<4x62xf32> -> vector<4x62xf32>
    %94 = arith.addf %89, %93 : vector<4x62xf32>
    %c0_70 = arith.constant 0 : index
    %c0_71 = arith.constant 0 : index
    %95 = vector.load %arg15[%c0_70, %c0_71] : memref<4x1xf32, #tpu.memory_space<vmem>>, vector<4x1xf32>
    %96 = vector.broadcast %95 : vector<4x1xf32> to vector<4x62xf32>
    %97 = arith.addf %94, %96 : vector<4x62xf32>
    %c0_72 = arith.constant 0 : index
    %c2_73 = arith.constant 2 : index
    %98 = vector.load %arg40[%c0_72, %c2_73] : memref<16x66xf32, #tpu.memory_space<vmem>>, vector<4x62xf32>
    tpu.vector_store %arg40[%c0_72, %c2_73], %97 {strides = array<i32>} : memref<16x66xf32, #tpu.memory_space<vmem>>, vector<4x62xf32>,
    %99 = vector.extract_strided_slice %97 {offsets = [0, 0], sizes = [4, 1], strides = [1, 1]} : vector<4x62xf32> to vector<4x1xf32>
    %100 = vector.shape_cast %99 : vector<4x1xf32> to vector<4x1xf32>
    %101 = vector.broadcast %100 : vector<4x1xf32> to vector<4x2xf32>
    %c0_74 = arith.constant 0 : index
    %c0_75 = arith.constant 0 : index
    %102 = vector.load %arg40[%c0_74, %c0_75] : memref<16x66xf32, #tpu.memory_space<vmem>>, vector<4x2xf32>
    tpu.vector_store %arg40[%c0_74, %c0_75], %101 {strides = array<i32>} : memref<16x66xf32, #tpu.memory_space<vmem>>, vector<4x2xf32>,
    %103 = vector.extract_strided_slice %97 {offsets = [0, 61], sizes = [4, 1], strides = [1, 1]} : vector<4x62xf32> to vector<4x1xf32>
    %104 = vector.shape_cast %103 : vector<4x1xf32> to vector<4x1xf32>
    %105 = vector.broadcast %104 : vector<4x1xf32> to vector<4x2xf32>
    %c0_76 = arith.constant 0 : index
    %c64 = arith.constant 64 : index
    %106 = vector.load %arg40[%c0_76, %c64] : memref<16x66xf32, #tpu.memory_space<vmem>>, vector<4x2xf32>
    tpu.vector_store %arg40[%c0_76, %c64], %105 {strides = array<i32>} : memref<16x66xf32, #tpu.memory_space<vmem>>, vector<4x2xf32>,
    %c0_77 = arith.constant 0 : index
    %c0_78 = arith.constant 0 : index
    %c0_79 = arith.constant 0 : index
    %107 = vector.load %arg16[%c0_77, %c0_78, %c0_79] : memref<5x8x4xf32, #tpu.memory_space<vmem>>, vector<1x8x4xf32>
    %108 = vector.shape_cast %107 : vector<1x8x4xf32> to vector<8x4xf32>
    %c0_80 = arith.constant 0 : index
    %c0_81 = arith.constant 0 : index
    %109 = vector.load %arg40[%c0_80, %c0_81] : memref<16x66xf32, #tpu.memory_space<vmem>>, vector<4x62xf32>
    %cst_82 = arith.constant dense<0.000000e+00> : vector<8x62xf32>
    %110 = tpu.matmul %108, %109, %cst_82 {dimension_numbers = #tpu.dot_dimension_numbers<[1], [0], [0], [1], [0, 0, 1, 1], [], []>} : vector<8x4xf32>, vector<4x62xf32>, vector<8x62xf32> -> vector<8x62xf32>
    %c1_83 = arith.constant 1 : index
    %c0_84 = arith.constant 0 : index
    %c0_85 = arith.constant 0 : index
    %111 = vector.load %arg16[%c1_83, %c0_84, %c0_85] : memref<5x8x4xf32, #tpu.memory_space<vmem>>, vector<1x8x4xf32>
    %112 = vector.shape_cast %111 : vector<1x8x4xf32> to vector<8x4xf32>
    %c0_86 = arith.constant 0 : index
    %c1_87 = arith.constant 1 : index
    %113 = vector.load %arg40[%c0_86, %c1_87] : memref<16x66xf32, #tpu.memory_space<vmem>>, vector<4x62xf32>
    %cst_88 = arith.constant dense<0.000000e+00> : vector<8x62xf32>
    %114 = tpu.matmul %112, %113, %cst_88 {dimension_numbers = #tpu.dot_dimension_numbers<[1], [0], [0], [1], [0, 0, 1, 1], [], []>} : vector<8x4xf32>, vector<4x62xf32>, vector<8x62xf32> -> vector<8x62xf32>
    %115 = arith.addf %110, %114 : vector<8x62xf32>
    %c2_89 = arith.constant 2 : index
    %c0_90 = arith.constant 0 : index
    %c0_91 = arith.constant 0 : index
    %116 = vector.load %arg16[%c2_89, %c0_90, %c0_91] : memref<5x8x4xf32, #tpu.memory_space<vmem>>, vector<1x8x4xf32>
    %117 = vector.shape_cast %116 : vector<1x8x4xf32> to vector<8x4xf32>
    %c0_92 = arith.constant 0 : index
    %c2_93 = arith.constant 2 : index
    %118 = vector.load %arg40[%c0_92, %c2_93] : memref<16x66xf32, #tpu.memory_space<vmem>>, vector<4x62xf32>
    %cst_94 = arith.constant dense<0.000000e+00> : vector<8x62xf32>
    %119 = tpu.matmul %117, %118, %cst_94 {dimension_numbers = #tpu.dot_dimension_numbers<[1], [0], [0], [1], [0, 0, 1, 1], [], []>} : vector<8x4xf32>, vector<4x62xf32>, vector<8x62xf32> -> vector<8x62xf32>
    %120 = arith.addf %115, %119 : vector<8x62xf32>
    %c3 = arith.constant 3 : index
    %c0_95 = arith.constant 0 : index
    %c0_96 = arith.constant 0 : index
    %121 = vector.load %arg16[%c3, %c0_95, %c0_96] : memref<5x8x4xf32, #tpu.memory_space<vmem>>, vector<1x8x4xf32>
    %122 = vector.shape_cast %121 : vector<1x8x4xf32> to vector<8x4xf32>
    %c0_97 = arith.constant 0 : index
    %c3_98 = arith.constant 3 : index
    %123 = vector.load %arg40[%c0_97, %c3_98] : memref<16x66xf32, #tpu.memory_space<vmem>>, vector<4x62xf32>
    %cst_99 = arith.constant dense<0.000000e+00> : vector<8x62xf32>
    %124 = tpu.matmul %122, %123, %cst_99 {dimension_numbers = #tpu.dot_dimension_numbers<[1], [0], [0], [1], [0, 0, 1, 1], [], []>} : vector<8x4xf32>, vector<4x62xf32>, vector<8x62xf32> -> vector<8x62xf32>
    %125 = arith.addf %120, %124 : vector<8x62xf32>
    %c4 = arith.constant 4 : index
    %c0_100 = arith.constant 0 : index
    %c0_101 = arith.constant 0 : index
    %126 = vector.load %arg16[%c4, %c0_100, %c0_101] : memref<5x8x4xf32, #tpu.memory_space<vmem>>, vector<1x8x4xf32>
    %127 = vector.shape_cast %126 : vector<1x8x4xf32> to vector<8x4xf32>
    %c0_102 = arith.constant 0 : index
    %c4_103 = arith.constant 4 : index
    %128 = vector.load %arg40[%c0_102, %c4_103] : memref<16x66xf32, #tpu.memory_space<vmem>>, vector<4x62xf32>
    %cst_104 = arith.constant dense<0.000000e+00> : vector<8x62xf32>
    %129 = tpu.matmul %127, %128, %cst_104 {dimension_numbers = #tpu.dot_dimension_numbers<[1], [0], [0], [1], [0, 0, 1, 1], [], []>} : vector<8x4xf32>, vector<4x62xf32>, vector<8x62xf32> -> vector<8x62xf32>
    %130 = arith.addf %125, %129 : vector<8x62xf32>
    %c0_105 = arith.constant 0 : index
    %c0_106 = arith.constant 0 : index
    %131 = vector.load %arg17[%c0_105, %c0_106] : memref<8x1xf32, #tpu.memory_space<vmem>>, vector<8x1xf32>
    %132 = vector.broadcast %131 : vector<8x1xf32> to vector<8x62xf32>
    %133 = arith.mulf %130, %132 : vector<8x62xf32>
    %c0_107 = arith.constant 0 : index
    %c0_108 = arith.constant 0 : index
    %134 = vector.load %arg18[%c0_107, %c0_108] : memref<8x1xf32, #tpu.memory_space<vmem>>, vector<8x1xf32>
    %135 = vector.broadcast %134 : vector<8x1xf32> to vector<8x62xf32>
    %136 = arith.addf %133, %135 : vector<8x62xf32>
    %cst_109 = arith.constant 5.000000e-01 : f32
    %137 = vector.broadcast %cst_109 : f32 to vector<8x62xf32>
    %138 = arith.mulf %137, %136 : vector<8x62xf32>
    %cst_110 = arith.constant 0.707106769 : f32
    %139 = vector.broadcast %cst_110 : f32 to vector<8x62xf32>
    %140 = arith.mulf %136, %139 : vector<8x62xf32>
    %141 = math.erf %140 : vector<8x62xf32>
    %cst_111 = arith.constant 1.000000e+00 : f32
    %142 = vector.broadcast %cst_111 : f32 to vector<8x62xf32>
    %143 = arith.addf %142, %141 : vector<8x62xf32>
    %144 = arith.mulf %138, %143 : vector<8x62xf32>
    %c0_112 = arith.constant 0 : index
    %c2_113 = arith.constant 2 : index
    %145 = vector.load %arg40[%c0_112, %c2_113] : memref<16x66xf32, #tpu.memory_space<vmem>>, vector<8x62xf32>
    tpu.vector_store %arg40[%c0_112, %c2_113], %144 {strides = array<i32>} : memref<16x66xf32, #tpu.memory_space<vmem>>, vector<8x62xf32>,
    %146 = vector.extract_strided_slice %144 {offsets = [0, 0], sizes = [8, 1], strides = [1, 1]} : vector<8x62xf32> to vector<8x1xf32>
    %147 = vector.shape_cast %146 : vector<8x1xf32> to vector<8x1xf32>
    %148 = vector.broadcast %147 : vector<8x1xf32> to vector<8x2xf32>
    %c0_114 = arith.constant 0 : index
    %c0_115 = arith.constant 0 : index
    %149 = vector.load %arg40[%c0_114, %c0_115] : memref<16x66xf32, #tpu.memory_space<vmem>>, vector<8x2xf32>
    tpu.vector_store %arg40[%c0_114, %c0_115], %148 {strides = array<i32>} : memref<16x66xf32, #tpu.memory_space<vmem>>, vector<8x2xf32>,
    %150 = vector.extract_strided_slice %144 {offsets = [0, 61], sizes = [8, 1], strides = [1, 1]} : vector<8x62xf32> to vector<8x1xf32>
    %151 = vector.shape_cast %150 : vector<8x1xf32> to vector<8x1xf32>
    %152 = vector.broadcast %151 : vector<8x1xf32> to vector<8x2xf32>
    %c0_116 = arith.constant 0 : index
    %c64_117 = arith.constant 64 : index
    %153 = vector.load %arg40[%c0_116, %c64_117] : memref<16x66xf32, #tpu.memory_space<vmem>>, vector<8x2xf32>
    tpu.vector_store %arg40[%c0_116, %c64_117], %152 {strides = array<i32>} : memref<16x66xf32, #tpu.memory_space<vmem>>, vector<8x2xf32>,
    %c0_118 = arith.constant 0 : index
    %c0_119 = arith.constant 0 : index
    %c0_120 = arith.constant 0 : index
    %154 = vector.load %arg19[%c0_118, %c0_119, %c0_120] : memref<5x8x8xf32, #tpu.memory_space<vmem>>, vector<1x8x8xf32>
    %155 = vector.shape_cast %154 : vector<1x8x8xf32> to vector<8x8xf32>
    %c0_121 = arith.constant 0 : index
    %c0_122 = arith.constant 0 : index
    %156 = vector.load %arg40[%c0_121, %c0_122] : memref<16x66xf32, #tpu.memory_space<vmem>>, vector<8x62xf32>
    %cst_123 = arith.constant dense<0.000000e+00> : vector<8x62xf32>
    %157 = tpu.matmul %155, %156, %cst_123 {dimension_numbers = #tpu.dot_dimension_numbers<[1], [0], [0], [1], [0, 0, 1, 1], [], []>} : vector<8x8xf32>, vector<8x62xf32>, vector<8x62xf32> -> vector<8x62xf32>
    %c1_124 = arith.constant 1 : index
    %c0_125 = arith.constant 0 : index
    %c0_126 = arith.constant 0 : index
    %158 = vector.load %arg19[%c1_124, %c0_125, %c0_126] : memref<5x8x8xf32, #tpu.memory_space<vmem>>, vector<1x8x8xf32>
    %159 = vector.shape_cast %158 : vector<1x8x8xf32> to vector<8x8xf32>
    %c0_127 = arith.constant 0 : index
    %c1_128 = arith.constant 1 : index
    %160 = vector.load %arg40[%c0_127, %c1_128] : memref<16x66xf32, #tpu.memory_space<vmem>>, vector<8x62xf32>
    %cst_129 = arith.constant dense<0.000000e+00> : vector<8x62xf32>
    %161 = tpu.matmul %159, %160, %cst_129 {dimension_numbers = #tpu.dot_dimension_numbers<[1], [0], [0], [1], [0, 0, 1, 1], [], []>} : vector<8x8xf32>, vector<8x62xf32>, vector<8x62xf32> -> vector<8x62xf32>
    %162 = arith.addf %157, %161 : vector<8x62xf32>
    %c2_130 = arith.constant 2 : index
    %c0_131 = arith.constant 0 : index
    %c0_132 = arith.constant 0 : index
    %163 = vector.load %arg19[%c2_130, %c0_131, %c0_132] : memref<5x8x8xf32, #tpu.memory_space<vmem>>, vector<1x8x8xf32>
    %164 = vector.shape_cast %163 : vector<1x8x8xf32> to vector<8x8xf32>
    %c0_133 = arith.constant 0 : index
    %c2_134 = arith.constant 2 : index
    %165 = vector.load %arg40[%c0_133, %c2_134] : memref<16x66xf32, #tpu.memory_space<vmem>>, vector<8x62xf32>
    %cst_135 = arith.constant dense<0.000000e+00> : vector<8x62xf32>
    %166 = tpu.matmul %164, %165, %cst_135 {dimension_numbers = #tpu.dot_dimension_numbers<[1], [0], [0], [1], [0, 0, 1, 1], [], []>} : vector<8x8xf32>, vector<8x62xf32>, vector<8x62xf32> -> vector<8x62xf32>
    %167 = arith.addf %162, %166 : vector<8x62xf32>
    %c3_136 = arith.constant 3 : index
    %c0_137 = arith.constant 0 : index
    %c0_138 = arith.constant 0 : index
    %168 = vector.load %arg19[%c3_136, %c0_137, %c0_138] : memref<5x8x8xf32, #tpu.memory_space<vmem>>, vector<1x8x8xf32>
    %169 = vector.shape_cast %168 : vector<1x8x8xf32> to vector<8x8xf32>
    %c0_139 = arith.constant 0 : index
    %c3_140 = arith.constant 3 : index
    %170 = vector.load %arg40[%c0_139, %c3_140] : memref<16x66xf32, #tpu.memory_space<vmem>>, vector<8x62xf32>
    %cst_141 = arith.constant dense<0.000000e+00> : vector<8x62xf32>
    %171 = tpu.matmul %169, %170, %cst_141 {dimension_numbers = #tpu.dot_dimension_numbers<[1], [0], [0], [1], [0, 0, 1, 1], [], []>} : vector<8x8xf32>, vector<8x62xf32>, vector<8x62xf32> -> vector<8x62xf32>
    %172 = arith.addf %167, %171 : vector<8x62xf32>
    %c4_142 = arith.constant 4 : index
    %c0_143 = arith.constant 0 : index
    %c0_144 = arith.constant 0 : index
    %173 = vector.load %arg19[%c4_142, %c0_143, %c0_144] : memref<5x8x8xf32, #tpu.memory_space<vmem>>, vector<1x8x8xf32>
    %174 = vector.shape_cast %173 : vector<1x8x8xf32> to vector<8x8xf32>
    %c0_145 = arith.constant 0 : index
    %c4_146 = arith.constant 4 : index
    %175 = vector.load %arg40[%c0_145, %c4_146] : memref<16x66xf32, #tpu.memory_space<vmem>>, vector<8x62xf32>
    %cst_147 = arith.constant dense<0.000000e+00> : vector<8x62xf32>
    %176 = tpu.matmul %174, %175, %cst_147 {dimension_numbers = #tpu.dot_dimension_numbers<[1], [0], [0], [1], [0, 0, 1, 1], [], []>} : vector<8x8xf32>, vector<8x62xf32>, vector<8x62xf32> -> vector<8x62xf32>
    %177 = arith.addf %172, %176 : vector<8x62xf32>
    %c0_148 = arith.constant 0 : index
    %c0_149 = arith.constant 0 : index
    %178 = vector.load %arg20[%c0_148, %c0_149] : memref<8x1xf32, #tpu.memory_space<vmem>>, vector<8x1xf32>
    %179 = vector.broadcast %178 : vector<8x1xf32> to vector<8x62xf32>
    %180 = arith.mulf %177, %179 : vector<8x62xf32>
    %c0_150 = arith.constant 0 : index
    %c0_151 = arith.constant 0 : index
    %181 = vector.load %arg21[%c0_150, %c0_151] : memref<8x1xf32, #tpu.memory_space<vmem>>, vector<8x1xf32>
    %182 = vector.broadcast %181 : vector<8x1xf32> to vector<8x62xf32>
    %183 = arith.addf %180, %182 : vector<8x62xf32>
    %cst_152 = arith.constant 5.000000e-01 : f32
    %184 = vector.broadcast %cst_152 : f32 to vector<8x62xf32>
    %185 = arith.mulf %184, %183 : vector<8x62xf32>
    %cst_153 = arith.constant 0.707106769 : f32
    %186 = vector.broadcast %cst_153 : f32 to vector<8x62xf32>
    %187 = arith.mulf %183, %186 : vector<8x62xf32>
    %188 = math.erf %187 : vector<8x62xf32>
    %cst_154 = arith.constant 1.000000e+00 : f32
    %189 = vector.broadcast %cst_154 : f32 to vector<8x62xf32>
    %190 = arith.addf %189, %188 : vector<8x62xf32>
    %191 = arith.mulf %185, %190 : vector<8x62xf32>
    %c0_155 = arith.constant 0 : index
    %c0_156 = arith.constant 0 : index
    %192 = vector.load %arg40[%c0_155, %c0_156] : memref<16x66xf32, #tpu.memory_space<vmem>>, vector<4x62xf32>
    tpu.vector_store %arg40[%c0_155, %c0_156], %97 {strides = array<i32>} : memref<16x66xf32, #tpu.memory_space<vmem>>, vector<4x62xf32>,
    %c4_157 = arith.constant 4 : index
    %c0_158 = arith.constant 0 : index
    %193 = vector.load %arg40[%c4_157, %c0_158] : memref<16x66xf32, #tpu.memory_space<vmem>>, vector<4x62xf32>
    tpu.vector_store %arg40[%c4_157, %c0_158], %97 {strides = array<i32>} : memref<16x66xf32, #tpu.memory_space<vmem>>, vector<4x62xf32>,
    %c0_159 = arith.constant 0 : index
    %c0_160 = arith.constant 0 : index
    %194 = vector.load %arg40[%c0_159, %c0_160] : memref<16x66xf32, #tpu.memory_space<vmem>>, vector<8x62xf32>
    %195 = arith.addf %191, %194 : vector<8x62xf32>
    %196 = vector.extract_strided_slice %195 {offsets = [0, 0], sizes = [8, 60], strides = [1, 1]} : vector<8x62xf32> to vector<8x60xf32>
    %197 = vector.extract_strided_slice %195 {offsets = [0, 1], sizes = [8, 60], strides = [1, 1]} : vector<8x62xf32> to vector<8x60xf32>
    %198 = arith.maximumf %196, %197 : vector<8x60xf32>
    %199 = vector.extract_strided_slice %195 {offsets = [0, 2], sizes = [8, 60], strides = [1, 1]} : vector<8x62xf32> to vector<8x60xf32>
    %200 = arith.maximumf %198, %199 : vector<8x60xf32>
    %c0_161 = arith.constant 0 : index
    %c0_162 = arith.constant 0 : index
    %201 = vector.load %arg22[%c0_161, %c0_162] : memref<60x30xf32, #tpu.memory_space<vmem>>, vector<60x30xf32>
    %cst_163 = arith.constant dense<0.000000e+00> : vector<8x30xf32>
    %202 = tpu.matmul %200, %201, %cst_163 {dimension_numbers = #tpu.dot_dimension_numbers<[1], [0], [0], [1], [0, 0, 1, 1], [], []>} : vector<8x60xf32>, vector<60x30xf32>, vector<8x30xf32> -> vector<8x30xf32>
    %c0_164 = arith.constant 0 : index
    %c0_165 = arith.constant 0 : index
    %c0_166 = arith.constant 0 : index
    %203 = vector.load %arg23[%c0_164, %c0_165, %c0_166] : memref<3x8x8xf32, #tpu.memory_space<vmem>>, vector<1x8x8xf32>
    %204 = vector.shape_cast %203 : vector<1x8x8xf32> to vector<8x8xf32>
    %205 = vector.extract_strided_slice %202 {offsets = [0, 0], sizes = [8, 28], strides = [1, 1]} : vector<8x30xf32> to vector<8x28xf32>
    %cst_167 = arith.constant dense<0.000000e+00> : vector<8x28xf32>
    %206 = tpu.matmul %204, %205, %cst_167 {dimension_numbers = #tpu.dot_dimension_numbers<[1], [0], [0], [1], [0, 0, 1, 1], [], []>} : vector<8x8xf32>, vector<8x28xf32>, vector<8x28xf32> -> vector<8x28xf32>
    %c1_168 = arith.constant 1 : index
    %c0_169 = arith.constant 0 : index
    %c0_170 = arith.constant 0 : index
    %207 = vector.load %arg23[%c1_168, %c0_169, %c0_170] : memref<3x8x8xf32, #tpu.memory_space<vmem>>, vector<1x8x8xf32>
    %208 = vector.shape_cast %207 : vector<1x8x8xf32> to vector<8x8xf32>
    %209 = vector.extract_strided_slice %202 {offsets = [0, 1], sizes = [8, 28], strides = [1, 1]} : vector<8x30xf32> to vector<8x28xf32>
    %cst_171 = arith.constant dense<0.000000e+00> : vector<8x28xf32>
    %210 = tpu.matmul %208, %209, %cst_171 {dimension_numbers = #tpu.dot_dimension_numbers<[1], [0], [0], [1], [0, 0, 1, 1], [], []>} : vector<8x8xf32>, vector<8x28xf32>, vector<8x28xf32> -> vector<8x28xf32>
    %211 = arith.addf %206, %210 : vector<8x28xf32>
    %c2_172 = arith.constant 2 : index
    %c0_173 = arith.constant 0 : index
    %c0_174 = arith.constant 0 : index
    %212 = vector.load %arg23[%c2_172, %c0_173, %c0_174] : memref<3x8x8xf32, #tpu.memory_space<vmem>>, vector<1x8x8xf32>
    %213 = vector.shape_cast %212 : vector<1x8x8xf32> to vector<8x8xf32>
    %214 = vector.extract_strided_slice %202 {offsets = [0, 2], sizes = [8, 28], strides = [1, 1]} : vector<8x30xf32> to vector<8x28xf32>
    %cst_175 = arith.constant dense<0.000000e+00> : vector<8x28xf32>
    %215 = tpu.matmul %213, %214, %cst_175 {dimension_numbers = #tpu.dot_dimension_numbers<[1], [0], [0], [1], [0, 0, 1, 1], [], []>} : vector<8x8xf32>, vector<8x28xf32>, vector<8x28xf32> -> vector<8x28xf32>
    %216 = arith.addf %211, %215 : vector<8x28xf32>
    %c0_176 = arith.constant 0 : index
    %c0_177 = arith.constant 0 : index
    %217 = vector.load %arg24[%c0_176, %c0_177] : memref<8x1xf32, #tpu.memory_space<vmem>>, vector<8x1xf32>
    %218 = vector.broadcast %217 : vector<8x1xf32> to vector<8x28xf32>
    %219 = arith.addf %216, %218 : vector<8x28xf32>
    %c0_178 = arith.constant 0 : index
    %c2_179 = arith.constant 2 : index
    %220 = vector.load %arg40[%c0_178, %c2_179] : memref<16x66xf32, #tpu.memory_space<vmem>>, vector<8x28xf32>
    tpu.vector_store %arg40[%c0_178, %c2_179], %219 {strides = array<i32>} : memref<16x66xf32, #tpu.memory_space<vmem>>, vector<8x28xf32>,
    %221 = vector.extract_strided_slice %219 {offsets = [0, 0], sizes = [8, 1], strides = [1, 1]} : vector<8x28xf32> to vector<8x1xf32>
    %222 = vector.shape_cast %221 : vector<8x1xf32> to vector<8x1xf32>
    %223 = vector.broadcast %222 : vector<8x1xf32> to vector<8x2xf32>
    %c0_180 = arith.constant 0 : index
    %c0_181 = arith.constant 0 : index
    %224 = vector.load %arg40[%c0_180, %c0_181] : memref<16x66xf32, #tpu.memory_space<vmem>>, vector<8x2xf32>
    tpu.vector_store %arg40[%c0_180, %c0_181], %223 {strides = array<i32>} : memref<16x66xf32, #tpu.memory_space<vmem>>, vector<8x2xf32>,
    %225 = vector.extract_strided_slice %219 {offsets = [0, 27], sizes = [8, 1], strides = [1, 1]} : vector<8x28xf32> to vector<8x1xf32>
    %226 = vector.shape_cast %225 : vector<8x1xf32> to vector<8x1xf32>
    %227 = vector.broadcast %226 : vector<8x1xf32> to vector<8x2xf32>
    %c0_182 = arith.constant 0 : index
    %c30 = arith.constant 30 : index
    %228 = vector.load %arg40[%c0_182, %c30] : memref<16x66xf32, #tpu.memory_space<vmem>>, vector<8x2xf32>
    tpu.vector_store %arg40[%c0_182, %c30], %227 {strides = array<i32>} : memref<16x66xf32, #tpu.memory_space<vmem>>, vector<8x2xf32>,
    %c0_183 = arith.constant 0 : index
    %c0_184 = arith.constant 0 : index
    %c0_185 = arith.constant 0 : index
    %229 = vector.load %arg25[%c0_183, %c0_184, %c0_185] : memref<5x16x8xf32, #tpu.memory_space<vmem>>, vector<1x16x8xf32>
    %230 = vector.shape_cast %229 : vector<1x16x8xf32> to vector<16x8xf32>
    %c0_186 = arith.constant 0 : index
    %c0_187 = arith.constant 0 : index
    %231 = vector.load %arg40[%c0_186, %c0_187] : memref<16x66xf32, #tpu.memory_space<vmem>>, vector<8x28xf32>
    %cst_188 = arith.constant dense<0.000000e+00> : vector<16x28xf32>
    %232 = tpu.matmul %230, %231, %cst_188 {dimension_numbers = #tpu.dot_dimension_numbers<[1], [0], [0], [1], [0, 0, 1, 1], [], []>} : vector<16x8xf32>, vector<8x28xf32>, vector<16x28xf32> -> vector<16x28xf32>
    %c1_189 = arith.constant 1 : index
    %c0_190 = arith.constant 0 : index
    %c0_191 = arith.constant 0 : index
    %233 = vector.load %arg25[%c1_189, %c0_190, %c0_191] : memref<5x16x8xf32, #tpu.memory_space<vmem>>, vector<1x16x8xf32>
    %234 = vector.shape_cast %233 : vector<1x16x8xf32> to vector<16x8xf32>
    %c0_192 = arith.constant 0 : index
    %c1_193 = arith.constant 1 : index
    %235 = vector.load %arg40[%c0_192, %c1_193] : memref<16x66xf32, #tpu.memory_space<vmem>>, vector<8x28xf32>
    %cst_194 = arith.constant dense<0.000000e+00> : vector<16x28xf32>
    %236 = tpu.matmul %234, %235, %cst_194 {dimension_numbers = #tpu.dot_dimension_numbers<[1], [0], [0], [1], [0, 0, 1, 1], [], []>} : vector<16x8xf32>, vector<8x28xf32>, vector<16x28xf32> -> vector<16x28xf32>
    %237 = arith.addf %232, %236 : vector<16x28xf32>
    %c2_195 = arith.constant 2 : index
    %c0_196 = arith.constant 0 : index
    %c0_197 = arith.constant 0 : index
    %238 = vector.load %arg25[%c2_195, %c0_196, %c0_197] : memref<5x16x8xf32, #tpu.memory_space<vmem>>, vector<1x16x8xf32>
    %239 = vector.shape_cast %238 : vector<1x16x8xf32> to vector<16x8xf32>
    %c0_198 = arith.constant 0 : index
    %c2_199 = arith.constant 2 : index
    %240 = vector.load %arg40[%c0_198, %c2_199] : memref<16x66xf32, #tpu.memory_space<vmem>>, vector<8x28xf32>
    %cst_200 = arith.constant dense<0.000000e+00> : vector<16x28xf32>
    %241 = tpu.matmul %239, %240, %cst_200 {dimension_numbers = #tpu.dot_dimension_numbers<[1], [0], [0], [1], [0, 0, 1, 1], [], []>} : vector<16x8xf32>, vector<8x28xf32>, vector<16x28xf32> -> vector<16x28xf32>
    %242 = arith.addf %237, %241 : vector<16x28xf32>
    %c3_201 = arith.constant 3 : index
    %c0_202 = arith.constant 0 : index
    %c0_203 = arith.constant 0 : index
    %243 = vector.load %arg25[%c3_201, %c0_202, %c0_203] : memref<5x16x8xf32, #tpu.memory_space<vmem>>, vector<1x16x8xf32>
    %244 = vector.shape_cast %243 : vector<1x16x8xf32> to vector<16x8xf32>
    %c0_204 = arith.constant 0 : index
    %c3_205 = arith.constant 3 : index
    %245 = vector.load %arg40[%c0_204, %c3_205] : memref<16x66xf32, #tpu.memory_space<vmem>>, vector<8x28xf32>
    %cst_206 = arith.constant dense<0.000000e+00> : vector<16x28xf32>
    %246 = tpu.matmul %244, %245, %cst_206 {dimension_numbers = #tpu.dot_dimension_numbers<[1], [0], [0], [1], [0, 0, 1, 1], [], []>} : vector<16x8xf32>, vector<8x28xf32>, vector<16x28xf32> -> vector<16x28xf32>
    %247 = arith.addf %242, %246 : vector<16x28xf32>
    %c4_207 = arith.constant 4 : index
    %c0_208 = arith.constant 0 : index
    %c0_209 = arith.constant 0 : index
    %248 = vector.load %arg25[%c4_207, %c0_208, %c0_209] : memref<5x16x8xf32, #tpu.memory_space<vmem>>, vector<1x16x8xf32>
    %249 = vector.shape_cast %248 : vector<1x16x8xf32> to vector<16x8xf32>
    %c0_210 = arith.constant 0 : index
    %c4_211 = arith.constant 4 : index
    %250 = vector.load %arg40[%c0_210, %c4_211] : memref<16x66xf32, #tpu.memory_space<vmem>>, vector<8x28xf32>
    %cst_212 = arith.constant dense<0.000000e+00> : vector<16x28xf32>
    %251 = tpu.matmul %249, %250, %cst_212 {dimension_numbers = #tpu.dot_dimension_numbers<[1], [0], [0], [1], [0, 0, 1, 1], [], []>} : vector<16x8xf32>, vector<8x28xf32>, vector<16x28xf32> -> vector<16x28xf32>
    %252 = arith.addf %247, %251 : vector<16x28xf32>
    %c0_213 = arith.constant 0 : index
    %c0_214 = arith.constant 0 : index
    %253 = vector.load %arg26[%c0_213, %c0_214] : memref<16x1xf32, #tpu.memory_space<vmem>>, vector<16x1xf32>
    %254 = vector.broadcast %253 : vector<16x1xf32> to vector<16x28xf32>
    %255 = arith.mulf %252, %254 : vector<16x28xf32>
    %c0_215 = arith.constant 0 : index
    %c0_216 = arith.constant 0 : index
    %256 = vector.load %arg27[%c0_215, %c0_216] : memref<16x1xf32, #tpu.memory_space<vmem>>, vector<16x1xf32>
    %257 = vector.broadcast %256 : vector<16x1xf32> to vector<16x28xf32>
    %258 = arith.addf %255, %257 : vector<16x28xf32>
    %cst_217 = arith.constant 5.000000e-01 : f32
    %259 = vector.broadcast %cst_217 : f32 to vector<16x28xf32>
    %260 = arith.mulf %259, %258 : vector<16x28xf32>
    %cst_218 = arith.constant 0.707106769 : f32
    %261 = vector.broadcast %cst_218 : f32 to vector<16x28xf32>
    %262 = arith.mulf %258, %261 : vector<16x28xf32>
    %263 = math.erf %262 : vector<16x28xf32>
    %cst_219 = arith.constant 1.000000e+00 : f32
    %264 = vector.broadcast %cst_219 : f32 to vector<16x28xf32>
    %265 = arith.addf %264, %263 : vector<16x28xf32>
    %266 = arith.mulf %260, %265 : vector<16x28xf32>
    %c0_220 = arith.constant 0 : index
    %c2_221 = arith.constant 2 : index
    %267 = vector.load %arg40[%c0_220, %c2_221] : memref<16x66xf32, #tpu.memory_space<vmem>>, vector<16x28xf32>
    tpu.vector_store %arg40[%c0_220, %c2_221], %266 {strides = array<i32>} : memref<16x66xf32, #tpu.memory_space<vmem>>, vector<16x28xf32>,
    %268 = vector.extract_strided_slice %266 {offsets = [0, 0], sizes = [16, 1], strides = [1, 1]} : vector<16x28xf32> to vector<16x1xf32>
    %269 = vector.shape_cast %268 : vector<16x1xf32> to vector<16x1xf32>
    %270 = vector.broadcast %269 : vector<16x1xf32> to vector<16x2xf32>
    %c0_222 = arith.constant 0 : index
    %c0_223 = arith.constant 0 : index
    %271 = vector.load %arg40[%c0_222, %c0_223] : memref<16x66xf32, #tpu.memory_space<vmem>>, vector<16x2xf32>
    tpu.vector_store %arg40[%c0_222, %c0_223], %270 {strides = array<i32>} : memref<16x66xf32, #tpu.memory_space<vmem>>, vector<16x2xf32>,
    %272 = vector.extract_strided_slice %266 {offsets = [0, 27], sizes = [16, 1], strides = [1, 1]} : vector<16x28xf32> to vector<16x1xf32>
    %273 = vector.shape_cast %272 : vector<16x1xf32> to vector<16x1xf32>
    %274 = vector.broadcast %273 : vector<16x1xf32> to vector<16x2xf32>
    %c0_224 = arith.constant 0 : index
    %c30_225 = arith.constant 30 : index
    %275 = vector.load %arg40[%c0_224, %c30_225] : memref<16x66xf32, #tpu.memory_space<vmem>>, vector<16x2xf32>
    tpu.vector_store %arg40[%c0_224, %c30_225], %274 {strides = array<i32>} : memref<16x66xf32, #tpu.memory_space<vmem>>, vector<16x2xf32>,
    %c0_226 = arith.constant 0 : index
    %c0_227 = arith.constant 0 : index
    %c0_228 = arith.constant 0 : index
    %276 = vector.load %arg28[%c0_226, %c0_227, %c0_228] : memref<5x16x16xf32, #tpu.memory_space<vmem>>, vector<1x16x16xf32>
    %277 = vector.shape_cast %276 : vector<1x16x16xf32> to vector<16x16xf32>
    %c0_229 = arith.constant 0 : index
    %c0_230 = arith.constant 0 : index
    %278 = vector.load %arg40[%c0_229, %c0_230] : memref<16x66xf32, #tpu.memory_space<vmem>>, vector<16x28xf32>
    %cst_231 = arith.constant dense<0.000000e+00> : vector<16x28xf32>
    %279 = tpu.matmul %277, %278, %cst_231 {dimension_numbers = #tpu.dot_dimension_numbers<[1], [0], [0], [1], [0, 0, 1, 1], [], []>} : vector<16x16xf32>, vector<16x28xf32>, vector<16x28xf32> -> vector<16x28xf32>
    %c1_232 = arith.constant 1 : index
    %c0_233 = arith.constant 0 : index
    %c0_234 = arith.constant 0 : index
    %280 = vector.load %arg28[%c1_232, %c0_233, %c0_234] : memref<5x16x16xf32, #tpu.memory_space<vmem>>, vector<1x16x16xf32>
    %281 = vector.shape_cast %280 : vector<1x16x16xf32> to vector<16x16xf32>
    %c0_235 = arith.constant 0 : index
    %c1_236 = arith.constant 1 : index
    %282 = vector.load %arg40[%c0_235, %c1_236] : memref<16x66xf32, #tpu.memory_space<vmem>>, vector<16x28xf32>
    %cst_237 = arith.constant dense<0.000000e+00> : vector<16x28xf32>
    %283 = tpu.matmul %281, %282, %cst_237 {dimension_numbers = #tpu.dot_dimension_numbers<[1], [0], [0], [1], [0, 0, 1, 1], [], []>} : vector<16x16xf32>, vector<16x28xf32>, vector<16x28xf32> -> vector<16x28xf32>
    %284 = arith.addf %279, %283 : vector<16x28xf32>
    %c2_238 = arith.constant 2 : index
    %c0_239 = arith.constant 0 : index
    %c0_240 = arith.constant 0 : index
    %285 = vector.load %arg28[%c2_238, %c0_239, %c0_240] : memref<5x16x16xf32, #tpu.memory_space<vmem>>, vector<1x16x16xf32>
    %286 = vector.shape_cast %285 : vector<1x16x16xf32> to vector<16x16xf32>
    %c0_241 = arith.constant 0 : index
    %c2_242 = arith.constant 2 : index
    %287 = vector.load %arg40[%c0_241, %c2_242] : memref<16x66xf32, #tpu.memory_space<vmem>>, vector<16x28xf32>
    %cst_243 = arith.constant dense<0.000000e+00> : vector<16x28xf32>
    %288 = tpu.matmul %286, %287, %cst_243 {dimension_numbers = #tpu.dot_dimension_numbers<[1], [0], [0], [1], [0, 0, 1, 1], [], []>} : vector<16x16xf32>, vector<16x28xf32>, vector<16x28xf32> -> vector<16x28xf32>
    %289 = arith.addf %284, %288 : vector<16x28xf32>
    %c3_244 = arith.constant 3 : index
    %c0_245 = arith.constant 0 : index
    %c0_246 = arith.constant 0 : index
    %290 = vector.load %arg28[%c3_244, %c0_245, %c0_246] : memref<5x16x16xf32, #tpu.memory_space<vmem>>, vector<1x16x16xf32>
    %291 = vector.shape_cast %290 : vector<1x16x16xf32> to vector<16x16xf32>
    %c0_247 = arith.constant 0 : index
    %c3_248 = arith.constant 3 : index
    %292 = vector.load %arg40[%c0_247, %c3_248] : memref<16x66xf32, #tpu.memory_space<vmem>>, vector<16x28xf32>
    %cst_249 = arith.constant dense<0.000000e+00> : vector<16x28xf32>
    %293 = tpu.matmul %291, %292, %cst_249 {dimension_numbers = #tpu.dot_dimension_numbers<[1], [0], [0], [1], [0, 0, 1, 1], [], []>} : vector<16x16xf32>, vector<16x28xf32>, vector<16x28xf32> -> vector<16x28xf32>
    %294 = arith.addf %289, %293 : vector<16x28xf32>
    %c4_250 = arith.constant 4 : index
    %c0_251 = arith.constant 0 : index
    %c0_252 = arith.constant 0 : index
    %295 = vector.load %arg28[%c4_250, %c0_251, %c0_252] : memref<5x16x16xf32, #tpu.memory_space<vmem>>, vector<1x16x16xf32>
    %296 = vector.shape_cast %295 : vector<1x16x16xf32> to vector<16x16xf32>
    %c0_253 = arith.constant 0 : index
    %c4_254 = arith.constant 4 : index
    %297 = vector.load %arg40[%c0_253, %c4_254] : memref<16x66xf32, #tpu.memory_space<vmem>>, vector<16x28xf32>
    %cst_255 = arith.constant dense<0.000000e+00> : vector<16x28xf32>
    %298 = tpu.matmul %296, %297, %cst_255 {dimension_numbers = #tpu.dot_dimension_numbers<[1], [0], [0], [1], [0, 0, 1, 1], [], []>} : vector<16x16xf32>, vector<16x28xf32>, vector<16x28xf32> -> vector<16x28xf32>
    %299 = arith.addf %294, %298 : vector<16x28xf32>
    %c0_256 = arith.constant 0 : index
    %c0_257 = arith.constant 0 : index
    %300 = vector.load %arg29[%c0_256, %c0_257] : memref<16x1xf32, #tpu.memory_space<vmem>>, vector<16x1xf32>
    %301 = vector.broadcast %300 : vector<16x1xf32> to vector<16x28xf32>
    %302 = arith.mulf %299, %301 : vector<16x28xf32>
    %c0_258 = arith.constant 0 : index
    %c0_259 = arith.constant 0 : index
    %303 = vector.load %arg30[%c0_258, %c0_259] : memref<16x1xf32, #tpu.memory_space<vmem>>, vector<16x1xf32>
    %304 = vector.broadcast %303 : vector<16x1xf32> to vector<16x28xf32>
    %305 = arith.addf %302, %304 : vector<16x28xf32>
    %cst_260 = arith.constant 5.000000e-01 : f32
    %306 = vector.broadcast %cst_260 : f32 to vector<16x28xf32>
    %307 = arith.mulf %306, %305 : vector<16x28xf32>
    %cst_261 = arith.constant 0.707106769 : f32
    %308 = vector.broadcast %cst_261 : f32 to vector<16x28xf32>
    %309 = arith.mulf %305, %308 : vector<16x28xf32>
    %310 = math.erf %309 : vector<16x28xf32>
    %cst_262 = arith.constant 1.000000e+00 : f32
    %311 = vector.broadcast %cst_262 : f32 to vector<16x28xf32>
    %312 = arith.addf %311, %310 : vector<16x28xf32>
    %313 = arith.mulf %307, %312 : vector<16x28xf32>
    %c0_263 = arith.constant 0 : index
    %c0_264 = arith.constant 0 : index
    %314 = vector.load %arg40[%c0_263, %c0_264] : memref<16x66xf32, #tpu.memory_space<vmem>>, vector<8x28xf32>
    tpu.vector_store %arg40[%c0_263, %c0_264], %219 {strides = array<i32>} : memref<16x66xf32, #tpu.memory_space<vmem>>, vector<8x28xf32>,
    %c8 = arith.constant 8 : index
    %c0_265 = arith.constant 0 : index
    %315 = vector.load %arg40[%c8, %c0_265] : memref<16x66xf32, #tpu.memory_space<vmem>>, vector<8x28xf32>
    tpu.vector_store %arg40[%c8, %c0_265], %219 {strides = array<i32>} : memref<16x66xf32, #tpu.memory_space<vmem>>, vector<8x28xf32>,
    %c0_266 = arith.constant 0 : index
    %c0_267 = arith.constant 0 : index
    %316 = vector.load %arg40[%c0_266, %c0_267] : memref<16x66xf32, #tpu.memory_space<vmem>>, vector<16x28xf32>
    %317 = arith.addf %313, %316 : vector<16x28xf32>
    %318 = vector.extract_strided_slice %317 {offsets = [0, 0], sizes = [16, 26], strides = [1, 1]} : vector<16x28xf32> to vector<16x26xf32>
    %319 = vector.extract_strided_slice %317 {offsets = [0, 1], sizes = [16, 26], strides = [1, 1]} : vector<16x28xf32> to vector<16x26xf32>
    %320 = arith.maximumf %318, %319 : vector<16x26xf32>
    %321 = vector.extract_strided_slice %317 {offsets = [0, 2], sizes = [16, 26], strides = [1, 1]} : vector<16x28xf32> to vector<16x26xf32>
    %322 = arith.maximumf %320, %321 : vector<16x26xf32>
    %c0_268 = arith.constant 0 : index
    %c0_269 = arith.constant 0 : index
    %323 = vector.load %arg31[%c0_268, %c0_269] : memref<26x13xf32, #tpu.memory_space<vmem>>, vector<26x13xf32>
    %cst_270 = arith.constant dense<0.000000e+00> : vector<16x13xf32>
    %324 = tpu.matmul %322, %323, %cst_270 {dimension_numbers = #tpu.dot_dimension_numbers<[1], [0], [0], [1], [0, 0, 1, 1], [], []>} : vector<16x26xf32>, vector<26x13xf32>, vector<16x13xf32> -> vector<16x13xf32>
    %c0_271 = arith.constant 0 : index
    %c0_272 = arith.constant 0 : index
    %c0_273 = arith.constant 0 : index
    %325 = vector.load %arg32[%c0_271, %c0_272, %c0_273] : memref<3x64x16xf32, #tpu.memory_space<vmem>>, vector<1x64x16xf32>
    %326 = vector.shape_cast %325 : vector<1x64x16xf32> to vector<64x16xf32>
    %327 = vector.extract_strided_slice %324 {offsets = [0, 0], sizes = [16, 11], strides = [1, 1]} : vector<16x13xf32> to vector<16x11xf32>
    %cst_274 = arith.constant dense<0.000000e+00> : vector<64x11xf32>
    %328 = tpu.matmul %326, %327, %cst_274 {dimension_numbers = #tpu.dot_dimension_numbers<[1], [0], [0], [1], [0, 0, 1, 1], [], []>} : vector<64x16xf32>, vector<16x11xf32>, vector<64x11xf32> -> vector<64x11xf32>
    %c1_275 = arith.constant 1 : index
    %c0_276 = arith.constant 0 : index
    %c0_277 = arith.constant 0 : index
    %329 = vector.load %arg32[%c1_275, %c0_276, %c0_277] : memref<3x64x16xf32, #tpu.memory_space<vmem>>, vector<1x64x16xf32>
    %330 = vector.shape_cast %329 : vector<1x64x16xf32> to vector<64x16xf32>
    %331 = vector.extract_strided_slice %324 {offsets = [0, 1], sizes = [16, 11], strides = [1, 1]} : vector<16x13xf32> to vector<16x11xf32>
    %cst_278 = arith.constant dense<0.000000e+00> : vector<64x11xf32>
    %332 = tpu.matmul %330, %331, %cst_278 {dimension_numbers = #tpu.dot_dimension_numbers<[1], [0], [0], [1], [0, 0, 1, 1], [], []>} : vector<64x16xf32>, vector<16x11xf32>, vector<64x11xf32> -> vector<64x11xf32>
    %333 = arith.addf %328, %332 : vector<64x11xf32>
    %c2_279 = arith.constant 2 : index
    %c0_280 = arith.constant 0 : index
    %c0_281 = arith.constant 0 : index
    %334 = vector.load %arg32[%c2_279, %c0_280, %c0_281] : memref<3x64x16xf32, #tpu.memory_space<vmem>>, vector<1x64x16xf32>
    %335 = vector.shape_cast %334 : vector<1x64x16xf32> to vector<64x16xf32>
    %336 = vector.extract_strided_slice %324 {offsets = [0, 2], sizes = [16, 11], strides = [1, 1]} : vector<16x13xf32> to vector<16x11xf32>
    %cst_282 = arith.constant dense<0.000000e+00> : vector<64x11xf32>
    %337 = tpu.matmul %335, %336, %cst_282 {dimension_numbers = #tpu.dot_dimension_numbers<[1], [0], [0], [1], [0, 0, 1, 1], [], []>} : vector<64x16xf32>, vector<16x11xf32>, vector<64x11xf32> -> vector<64x11xf32>
    %338 = arith.addf %333, %337 : vector<64x11xf32>
    %c0_283 = arith.constant 0 : index
    %c0_284 = arith.constant 0 : index
    %339 = vector.load %arg33[%c0_283, %c0_284] : memref<64x1xf32, #tpu.memory_space<vmem>>, vector<64x1xf32>
    %340 = vector.broadcast %339 : vector<64x1xf32> to vector<64x11xf32>
    %341 = arith.addf %338, %340 : vector<64x11xf32>
    %cst_285 = arith.constant dense<0xFF800000> : vector<64xf32>
    %342 = vector.multi_reduction <maximumf>, %341, %cst_285 [1] : vector<64x11xf32> to vector<64xf32>
    %343 = vector.shape_cast %342 : vector<64xf32> to vector<64x1xf32>
    %c0_286 = arith.constant 0 : index
    %c0_287 = arith.constant 0 : index
    %344 = vector.load %arg34[%c0_286, %c0_287] : memref<256x64xf32, #tpu.memory_space<vmem>>, vector<256x64xf32>
    %cst_288 = arith.constant dense<0.000000e+00> : vector<256x1xf32>
    %345 = tpu.matmul %344, %343, %cst_288 {dimension_numbers = #tpu.dot_dimension_numbers<[1], [0], [0], [1], [0, 0, 1, 1], [], []>} : vector<256x64xf32>, vector<64x1xf32>, vector<256x1xf32> -> vector<256x1xf32>
    %c0_289 = arith.constant 0 : index
    %c0_290 = arith.constant 0 : index
    %346 = vector.load %arg35[%c0_289, %c0_290] : memref<256x1xf32, #tpu.memory_space<vmem>>, vector<256x1xf32>
    %347 = arith.mulf %345, %346 : vector<256x1xf32>
    %c0_291 = arith.constant 0 : index
    %c0_292 = arith.constant 0 : index
    %348 = vector.load %arg36[%c0_291, %c0_292] : memref<256x1xf32, #tpu.memory_space<vmem>>, vector<256x1xf32>
    %349 = arith.addf %347, %348 : vector<256x1xf32>
    %cst_293 = arith.constant 5.000000e-01 : f32
    %350 = vector.broadcast %cst_293 : f32 to vector<256x1xf32>
    %351 = arith.mulf %350, %349 : vector<256x1xf32>
    %cst_294 = arith.constant 0.707106769 : f32
    %352 = vector.broadcast %cst_294 : f32 to vector<256x1xf32>
    %353 = arith.mulf %349, %352 : vector<256x1xf32>
    %354 = math.erf %353 : vector<256x1xf32>
    %cst_295 = arith.constant 1.000000e+00 : f32
    %355 = vector.broadcast %cst_295 : f32 to vector<256x1xf32>
    %356 = arith.addf %355, %354 : vector<256x1xf32>
    %357 = arith.mulf %351, %356 : vector<256x1xf32>
    %c0_296 = arith.constant 0 : index
    %c0_297 = arith.constant 0 : index
    %358 = vector.load %arg37[%c0_296, %c0_297] : memref<5x256xf32, #tpu.memory_space<vmem>>, vector<5x256xf32>
    %cst_298 = arith.constant dense<0.000000e+00> : vector<5x1xf32>
    %359 = tpu.matmul %358, %357, %cst_298 {dimension_numbers = #tpu.dot_dimension_numbers<[1], [0], [0], [1], [0, 0, 1, 1], [], []>} : vector<5x256xf32>, vector<256x1xf32>, vector<5x1xf32> -> vector<5x1xf32>
    %c0_299 = arith.constant 0 : index
    %c0_300 = arith.constant 0 : index
    %360 = vector.load %arg38[%c0_299, %c0_300] : memref<5x1xf32, #tpu.memory_space<vmem>>, vector<5x1xf32>
    %361 = arith.addf %359, %360 : vector<5x1xf32>
    %c0_301 = arith.constant 0 : index
    %c0_302 = arith.constant 0 : index
    %c0_303 = arith.constant 0 : index
    %362 = vector.load %arg39[%c0_301, %c0_302, %c0_303] : memref<1x5x1xf32, #tpu.memory_space<vmem>>, vector<1x5x1xf32>
    %363 = vector.shape_cast %362 : vector<1x5x1xf32> to vector<5x1xf32>
    %364 = vector.shape_cast %361 : vector<5x1xf32> to vector<1x5x1xf32>
    tpu.vector_store %arg39[%c0_301, %c0_302, %c0_303], %364 {strides = array<i32>} : memref<1x5x1xf32, #tpu.memory_space<vmem>>, vector<1x5x1xf32>,
    return
  }
  func.func @transform_0(%arg0: i32) -> (i32, i32, i32) {
    %c0_i32 = arith.constant 0 : i32
    %c0_i32_0 = arith.constant 0 : i32
    %c0_i32_1 = arith.constant 0 : i32
    return %arg0, %c0_i32, %c0_i32_0 : i32, i32, i32
  }
  func.func @transform_1(%arg0: i32) -> (i32, i32, i32) {
    %c0_i32 = arith.constant 0 : i32
    %c0_i32_0 = arith.constant 0 : i32
    %c0_i32_1 = arith.constant 0 : i32
    %c0_i32_2 = arith.constant 0 : i32
    return %c0_i32, %c0_i32_0, %c0_i32_1 : i32, i32, i32
  }
  func.func @transform_2(%arg0: i32) -> (i32, i32) {
    %c0_i32 = arith.constant 0 : i32
    %c0_i32_0 = arith.constant 0 : i32
    %c0_i32_1 = arith.constant 0 : i32
    return %c0_i32, %c0_i32_0 : i32, i32
  }
  func.func @transform_3(%arg0: i32) -> (i32, i32) {
    %c0_i32 = arith.constant 0 : i32
    %c0_i32_0 = arith.constant 0 : i32
    %c0_i32_1 = arith.constant 0 : i32
    return %c0_i32, %c0_i32_0 : i32, i32
  }
  func.func @transform_4(%arg0: i32) -> (i32, i32) {
    %c0_i32 = arith.constant 0 : i32
    %c0_i32_0 = arith.constant 0 : i32
    %c0_i32_1 = arith.constant 0 : i32
    return %c0_i32, %c0_i32_0 : i32, i32
  }
  func.func @transform_5(%arg0: i32) -> (i32, i32, i32) {
    %c0_i32 = arith.constant 0 : i32
    %c0_i32_0 = arith.constant 0 : i32
    %c0_i32_1 = arith.constant 0 : i32
    %c0_i32_2 = arith.constant 0 : i32
    return %c0_i32, %c0_i32_0, %c0_i32_1 : i32, i32, i32
  }
  func.func @transform_6(%arg0: i32) -> (i32, i32) {
    %c0_i32 = arith.constant 0 : i32
    %c0_i32_0 = arith.constant 0 : i32
    %c0_i32_1 = arith.constant 0 : i32
    return %c0_i32, %c0_i32_0 : i32, i32
  }
  func.func @transform_7(%arg0: i32) -> (i32, i32) {
    %c0_i32 = arith.constant 0 : i32
    %c0_i32_0 = arith.constant 0 : i32
    %c0_i32_1 = arith.constant 0 : i32
    return %c0_i32, %c0_i32_0 : i32, i32
  }
  func.func @transform_8(%arg0: i32) -> (i32, i32) {
    %c0_i32 = arith.constant 0 : i32
    %c0_i32_0 = arith.constant 0 : i32
    %c0_i32_1 = arith.constant 0 : i32
    return %c0_i32, %c0_i32_0 : i32, i32
  }
  func.func @transform_9(%arg0: i32) -> (i32, i32) {
    %c0_i32 = arith.constant 0 : i32
    %c0_i32_0 = arith.constant 0 : i32
    %c0_i32_1 = arith.constant 0 : i32
    return %c0_i32, %c0_i32_0 : i32, i32
  }
  func.func @transform_10(%arg0: i32) -> (i32, i32) {
    %c0_i32 = arith.constant 0 : i32
    %c0_i32_0 = arith.constant 0 : i32
    %c0_i32_1 = arith.constant 0 : i32
    return %c0_i32, %c0_i32_0 : i32, i32
  }
  func.func @transform_11(%arg0: i32) -> (i32, i32, i32) {
    %c0_i32 = arith.constant 0 : i32
    %c0_i32_0 = arith.constant 0 : i32
    %c0_i32_1 = arith.constant 0 : i32
    %c0_i32_2 = arith.constant 0 : i32
    return %c0_i32, %c0_i32_0, %c0_i32_1 : i32, i32, i32
  }
  func.func @transform_12(%arg0: i32) -> (i32, i32) {
    %c0_i32 = arith.constant 0 : i32
    %c0_i32_0 = arith.constant 0 : i32
    %c0_i32_1 = arith.constant 0 : i32
    return %c0_i32, %c0_i32_0 : i32, i32
  }
  func.func @transform_13(%arg0: i32) -> (i32, i32, i32) {
    %c0_i32 = arith.constant 0 : i32
    %c0_i32_0 = arith.constant 0 : i32
    %c0_i32_1 = arith.constant 0 : i32
    %c0_i32_2 = arith.constant 0 : i32
    return %c0_i32, %c0_i32_0, %c0_i32_1 : i32, i32, i32
  }
  func.func @transform_14(%arg0: i32) -> (i32, i32) {
    %c0_i32 = arith.constant 0 : i32
    %c0_i32_0 = arith.constant 0 : i32
    %c0_i32_1 = arith.constant 0 : i32
    return %c0_i32, %c0_i32_0 : i32, i32
  }
  func.func @transform_15(%arg0: i32) -> (i32, i32, i32) {
    %c0_i32 = arith.constant 0 : i32
    %c0_i32_0 = arith.constant 0 : i32
    %c0_i32_1 = arith.constant 0 : i32
    %c0_i32_2 = arith.constant 0 : i32
    return %c0_i32, %c0_i32_0, %c0_i32_1 : i32, i32, i32
  }
  func.func @transform_16(%arg0: i32) -> (i32, i32) {
    %c0_i32 = arith.constant 0 : i32
    %c0_i32_0 = arith.constant 0 : i32
    %c0_i32_1 = arith.constant 0 : i32
    return %c0_i32, %c0_i32_0 : i32, i32
  }
  func.func @transform_17(%arg0: i32) -> (i32, i32) {
    %c0_i32 = arith.constant 0 : i32
    %c0_i32_0 = arith.constant 0 : i32
    %c0_i32_1 = arith.constant 0 : i32
    return %c0_i32, %c0_i32_0 : i32, i32
  }
  func.func @transform_18(%arg0: i32) -> (i32, i32, i32) {
    %c0_i32 = arith.constant 0 : i32
    %c0_i32_0 = arith.constant 0 : i32
    %c0_i32_1 = arith.constant 0 : i32
    %c0_i32_2 = arith.constant 0 : i32
    return %c0_i32, %c0_i32_0, %c0_i32_1 : i32, i32, i32
  }
  func.func @transform_19(%arg0: i32) -> (i32, i32) {
    %c0_i32 = arith.constant 0 : i32
    %c0_i32_0 = arith.constant 0 : i32
    %c0_i32_1 = arith.constant 0 : i32
    return %c0_i32, %c0_i32_0 : i32, i32
  }
  func.func @transform_20(%arg0: i32) -> (i32, i32) {
    %c0_i32 = arith.constant 0 : i32
    %c0_i32_0 = arith.constant 0 : i32
    %c0_i32_1 = arith.constant 0 : i32
    return %c0_i32, %c0_i32_0 : i32, i32
  }
  func.func @transform_21(%arg0: i32) -> (i32, i32) {
    %c0_i32 = arith.constant 0 : i32
    %c0_i32_0 = arith.constant 0 : i32
    %c0_i32_1 = arith.constant 0 : i32
    return %c0_i32, %c0_i32_0 : i32, i32
  }
  func.func @transform_22(%arg0: i32) -> (i32, i32, i32) {
    %c0_i32 = arith.constant 0 : i32
    %c0_i32_0 = arith.constant 0 : i32
    %c0_i32_1 = arith.constant 0 : i32
    %c0_i32_2 = arith.constant 0 : i32
    return %c0_i32, %c0_i32_0, %c0_i32_1 : i32, i32, i32
  }
  func.func @transform_23(%arg0: i32) -> (i32, i32) {
    %c0_i32 = arith.constant 0 : i32
    %c0_i32_0 = arith.constant 0 : i32
    %c0_i32_1 = arith.constant 0 : i32
    return %c0_i32, %c0_i32_0 : i32, i32
  }
  func.func @transform_24(%arg0: i32) -> (i32, i32, i32) {
    %c0_i32 = arith.constant 0 : i32
    %c0_i32_0 = arith.constant 0 : i32
    %c0_i32_1 = arith.constant 0 : i32
    %c0_i32_2 = arith.constant 0 : i32
    return %c0_i32, %c0_i32_0, %c0_i32_1 : i32, i32, i32
  }
  func.func @transform_25(%arg0: i32) -> (i32, i32) {
    %c0_i32 = arith.constant 0 : i32
    %c0_i32_0 = arith.constant 0 : i32
    %c0_i32_1 = arith.constant 0 : i32
    return %c0_i32, %c0_i32_0 : i32, i32
  }
  func.func @transform_26(%arg0: i32) -> (i32, i32) {
    %c0_i32 = arith.constant 0 : i32
    %c0_i32_0 = arith.constant 0 : i32
    %c0_i32_1 = arith.constant 0 : i32
    return %c0_i32, %c0_i32_0 : i32, i32
  }
  func.func @transform_27(%arg0: i32) -> (i32, i32, i32) {
    %c0_i32 = arith.constant 0 : i32
    %c0_i32_0 = arith.constant 0 : i32
    %c0_i32_1 = arith.constant 0 : i32
    %c0_i32_2 = arith.constant 0 : i32
    return %c0_i32, %c0_i32_0, %c0_i32_1 : i32, i32, i32
  }
  func.func @transform_28(%arg0: i32) -> (i32, i32) {
    %c0_i32 = arith.constant 0 : i32
    %c0_i32_0 = arith.constant 0 : i32
    %c0_i32_1 = arith.constant 0 : i32
    return %c0_i32, %c0_i32_0 : i32, i32
  }
  func.func @transform_29(%arg0: i32) -> (i32, i32) {
    %c0_i32 = arith.constant 0 : i32
    %c0_i32_0 = arith.constant 0 : i32
    %c0_i32_1 = arith.constant 0 : i32
    return %c0_i32, %c0_i32_0 : i32, i32
  }
  func.func @transform_30(%arg0: i32) -> (i32, i32) {
    %c0_i32 = arith.constant 0 : i32
    %c0_i32_0 = arith.constant 0 : i32
    %c0_i32_1 = arith.constant 0 : i32
    return %c0_i32, %c0_i32_0 : i32, i32
  }
  func.func @transform_31(%arg0: i32) -> (i32, i32, i32) {
    %c0_i32 = arith.constant 0 : i32
    %c0_i32_0 = arith.constant 0 : i32
    %c0_i32_1 = arith.constant 0 : i32
    %c0_i32_2 = arith.constant 0 : i32
    return %c0_i32, %c0_i32_0, %c0_i32_1 : i32, i32, i32
  }
  func.func @transform_32(%arg0: i32) -> (i32, i32) {
    %c0_i32 = arith.constant 0 : i32
    %c0_i32_0 = arith.constant 0 : i32
    %c0_i32_1 = arith.constant 0 : i32
    return %c0_i32, %c0_i32_0 : i32, i32
  }
  func.func @transform_33(%arg0: i32) -> (i32, i32) {
    %c0_i32 = arith.constant 0 : i32
    %c0_i32_0 = arith.constant 0 : i32
    %c0_i32_1 = arith.constant 0 : i32
    return %c0_i32, %c0_i32_0 : i32, i32
  }
  func.func @transform_34(%arg0: i32) -> (i32, i32) {
    %c0_i32 = arith.constant 0 : i32
    %c0_i32_0 = arith.constant 0 : i32
    %c0_i32_1 = arith.constant 0 : i32
    return %c0_i32, %c0_i32_0 : i32, i32
  }
  func.func @transform_35(%arg0: i32) -> (i32, i32) {
    %c0_i32 = arith.constant 0 : i32
    %c0_i32_0 = arith.constant 0 : i32
    %c0_i32_1 = arith.constant 0 : i32
    return %c0_i32, %c0_i32_0 : i32, i32
  }
  func.func @transform_36(%arg0: i32) -> (i32, i32) {
    %c0_i32 = arith.constant 0 : i32
    %c0_i32_0 = arith.constant 0 : i32
    %c0_i32_1 = arith.constant 0 : i32
    return %c0_i32, %c0_i32_0 : i32, i32
  }
  func.func @transform_37(%arg0: i32) -> (i32, i32) {
    %c0_i32 = arith.constant 0 : i32
    %c0_i32_0 = arith.constant 0 : i32
    %c0_i32_1 = arith.constant 0 : i32
    return %c0_i32, %c0_i32_0 : i32, i32
  }
  func.func @transform_38(%arg0: i32) -> (i32, i32, i32) {
    %c0_i32 = arith.constant 0 : i32
    %c0_i32_0 = arith.constant 0 : i32
    %c0_i32_1 = arith.constant 0 : i32
    return %arg0, %c0_i32, %c0_i32_0 : i32, i32, i32
  }
}

</mosaic_0001>

<bundles_post_ra>
// kernel: _lambda_.1
= control target key start
LH: loop header
LB: loop body
LE: loop exit
PB: predicated region body
PF: predicated region fallthrough
CT: control target
= control target key end

     0   :  { %s7019_s6 = smov 1   ;;  %s7020_s10 = smov 2   ;;  %s7968_s0 = inlined_call_operand.smem [shape: u32[39], index: -1, kind: input, shape index: {}] }
   0x1   :  { %s7077_s5 = sld [smem:[%s7968_s0]]   ;;  %s7021_s14 = smov 3  }
   0x2   :  { %s7082_s9 = sld [smem:[%s7968_s0 + %s7019_s6]]   ;;  %s7022_s18 = smov 4  }
   0x3   :  { %s7087_s13 = sld [smem:[%s7968_s0 + %s7020_s10]]   ;;  %s7023_s22 = smov 5  }
   0x4   :  { %s7092_s17 = sld [smem:[%s7968_s0 + %s7021_s14]]   ;;  %s7024_s26 = smov 6  }
   0x5   :  { %s7097_s21 = sld [smem:[%s7968_s0 + %s7022_s18]]   ;;  %s7025_s30 = smov 7  }
   0x6   :  { %s7102_s25 = sld [smem:[%s7968_s0 + %s7023_s22]]   ;;  %s7026_s4 = smov 8  }
   0x7   :  { %s7107_s29 = sld [smem:[%s7968_s0 + %s7024_s26]]   ;;  %s7027_s10 = smov 9  }
   0x8   :  { %s7112_s3 = sld [smem:[%s7968_s0 + %s7025_s30]]   ;;  %s7028_s15 = smov 10  }
   0x9   :  { %s7117_s8 = sld [smem:[%s7968_s0 + %s7026_s4]]   ;;  %s7029_s20 = smov 11  }
   0xa   :  { %s7122_s14 = sld [smem:[%s7968_s0 + %s7027_s10]]   ;;  %s7030_s26 = smov 12  }
   0xb   :  { %s7127_s19 = sld [smem:[%s7968_s0 + %s7028_s15]]   ;;  %s7031_s1 = smov 13  }
   0xc   :  { %s7132_s24 = sld [smem:[%s7968_s0 + %s7029_s20]]   ;;  %s7032_s7 = smov 14  }
   0xd   :  { %s7137_s30 = sld [smem:[%s7968_s0 + %s7030_s26]]   ;;  %s7033_s15 = smov 15  }
   0xe   :  { %7999 = sst [smem:[#allocation3_spill]] %s7112_s3  ;;  %s7034_s22 = smov 16  }
   0xf   :  { %s7142_s6 = sld [smem:[%s7968_s0 + %s7031_s1]]   ;;  %s7035_s28 = smov 17  }
  0x10   :  { %s7147_s12 = sld [smem:[%s7968_s0 + %s7032_s7]]   ;;  %s7036_s7 = smov 18  }
  0x11   :  { %s7152_s20 = sld [smem:[%s7968_s0 + %s7033_s15]]   ;;  %s7037_s15 = smov 19  }
  0x12   :  { %s7157_s27 = sld [smem:[%s7968_s0 + %s7034_s22]]   ;;  %s7038_s22 = smov 20  }
  0x13   :  { %s7162_s4 = sld [smem:[%s7968_s0 + %s7035_s28]]   ;;  %s7039_s28 = smov 21  }
  0x16   :  { %8000 = sst [smem:[#allocation4_spill]] %s7147_s12 }
  0x17   :  { %8001 = sst [smem:[#allocation5_spill]] %s7152_s20 }
  0x18   :  { %8002 = sst [smem:[#allocation6_spill]] %s7157_s27 }
  0x19   :  { %8003 = sst [smem:[#allocation7_spill]] %s7162_s4 }
  0x1a   :  { %s7167_s12 = sld [smem:[%s7968_s0 + %s7036_s7]]   ;;  %s7040_s7 = smov 22  }
  0x1b   :  { %s7172_s20 = sld [smem:[%s7968_s0 + %s7037_s15]]   ;;  %s7041_s15 = smov 23  }
  0x1c   :  { %s7177_s27 = sld [smem:[%s7968_s0 + %s7038_s22]]   ;;  %s7042_s22 = smov 24  }
  0x1d   :  { %s7182_s4 = sld [smem:[%s7968_s0 + %s7039_s28]]   ;;  %s7043_s28 = smov 25  }
  0x20   :  { %8004 = sst [smem:[#allocation8_spill]] %s7167_s12 }
  0x21   :  { %8005 = sst [smem:[#allocation9_spill]] %s7172_s20 }
  0x22   :  { %8006 = sst [smem:[#allocation10_spill]] %s7177_s27 }
  0x23   :  { %8007 = sst [smem:[#allocation11_spill]] %s7182_s4 }
  0x24   :  { %s7187_s12 = sld [smem:[%s7968_s0 + %s7040_s7]]   ;;  %s7044_s7 = smov 26  }
  0x25   :  { %s7192_s20 = sld [smem:[%s7968_s0 + %s7041_s15]]   ;;  %s7045_s15 = smov 27  }
  0x26   :  { %s7197_s27 = sld [smem:[%s7968_s0 + %s7042_s22]]   ;;  %s7046_s22 = smov 28  }
  0x27   :  { %s7202_s4 = sld [smem:[%s7968_s0 + %s7043_s28]]   ;;  %s7047_s28 = smov 29  }
  0x2a   :  { %8008 = sst [smem:[#allocation12_spill]] %s7187_s12 }
  0x2b   :  { %8009 = sst [smem:[#allocation13_spill]] %s7192_s20 }
  0x2c   :  { %8010 = sst [smem:[#allocation14_spill]] %s7197_s27 }
  0x2d   :  { %8011 = sst [smem:[#allocation15_spill]] %s7202_s4 }
  0x2e   :  { %s7207_s12 = sld [smem:[%s7968_s0 + %s7044_s7]]   ;;  %s7048_s7 = smov 30  }
  0x2f   :  { %s7212_s20 = sld [smem:[%s7968_s0 + %s7045_s15]]   ;;  %s7049_s15 = smov 31  }
  0x30   :  { %s7217_s27 = sld [smem:[%s7968_s0 + %s7046_s22]]   ;;  %s7050_s22 = smov 32  }
  0x31   :  { %s7222_s4 = sld [smem:[%s7968_s0 + %s7047_s28]]   ;;  %s7051_s28 = smov 33  }
  0x34   :  { %8012 = sst [smem:[#allocation16_spill]] %s7207_s12 }
  0x35   :  { %8013 = sst [smem:[#allocation17_spill]] %s7212_s20 }
  0x36   :  { %8014 = sst [smem:[#allocation18_spill]] %s7217_s27 }
  0x37   :  { %8015 = sst [smem:[#allocation19_spill]] %s7222_s4 }
  0x38   :  { %s7227_s12 = sld [smem:[%s7968_s0 + %s7048_s7]]   ;;  %s7052_s7 = smov 34  }
  0x39   :  { %s7232_s20 = sld [smem:[%s7968_s0 + %s7049_s15]]   ;;  %s7053_s15 = smov 35  }
  0x3a   :  { %s7237_s27 = sld [smem:[%s7968_s0 + %s7050_s22]]   ;;  %s7054_s22 = smov 36  }
  0x3b   :  { %s7242_s4 = sld [smem:[%s7968_s0 + %s7051_s28]]   ;;  %s7055_s28 = smov 37  }
  0x3e   :  { %8016 = sst [smem:[#allocation20_spill]] %s7227_s12 }
  0x3f   :  { %8017 = sst [smem:[#allocation21_spill]] %s7232_s20 }
  0x40   :  { %8018 = sst [smem:[#allocation22_spill]] %s7237_s27 }
  0x41   :  { %8019 = sst [smem:[#allocation23_spill]] %s7242_s4 }
  0x42   :  { %s7247_s12 = sld [smem:[%s7968_s0 + %s7052_s7]]   ;;  %s7056_s7 = smov 38  }
  0x43   :  { %s7252_s20 = sld [smem:[%s7968_s0 + %s7053_s15]]   ;;  %s7269_s15 = smov 0  }
  0x44   :  { %s7257_s27 = sld [smem:[%s7968_s0 + %s7054_s22]]  }
  0x45   :  { %s7262_s4 = sld [smem:[%s7968_s0 + %s7055_s28]]  }
  0x48   :  { %8020 = sst [smem:[#allocation24_spill]] %s7247_s12 }
  0x49   :  { %s7267_s12 = sld [smem:[%s7968_s0 + %s7056_s7]]  }
  0x4a LB: > { %s8021_s3 = sld [smem:[#allocation3_spill]]  ;;  %s5896_s16 = sadd.s32 4294967295, %s7017_s15   ;;  %s7017_s15 = sphi %s7269_s15, %s87_s15  }
  0x4b   : > { %p5900_p0 = scmp.ge.s32.totalorder %s7017_s15, 1  ;;  %p1050_p1 = scmp.lt.s32.totalorder %s7017_s15, 3 }
  0x4d   : > { %p1051_p2 = pnand %p5900_p0, %p1050_p1 }
  0x4e   : > { %p1142_p3 = scmp.lt.s32.totalorder (!%p1051_p2), %s5896_s16, 1  ;;  %v7057_v0 = vmov (!%p1051_p2), 0.0   ;;  %vm7058_vm0 = vmmov (!%p1051_p2), 0   ;;  %s7989_s22 = smov (!%p1051_p2), 127   ;;  %v1389_v2 = vld [vmem:[%s7097_s21] sm:$0xff] (!%p1051_p2)  ;;  %v1390_v3 = vld [vmem:[%s7097_s21 + $0x8] sm:$0xff] (!%p1051_p2) }
  0x4f   : > { %1054 = sbr.rel (%p1051_p2) target bundleno = 6386 (0x18f2), region = 172  ;;  %6296 = vmatprep.subr.mxu0 (!%p1051_p2), %v7057_v0  ;;  %6298 = vmatprep.mubr.msk.f32.mxu0 (!%p1051_p2), %vm7058_vm0, %v7057_v0  ;;  %s7991_s23 = smov (!%p1051_p2), 126   ;;  %v1391_v4 = vld [vmem:[%s7097_s21 + $0x10] sm:$0xff] (!%p1051_p2)  ;;  %v7061_v5 = vmov (!%p1051_p2), 0.0|0.0   ;;  %v6649_v6 = vpack.c.bf16 (!%p1051_p2), %v1390_v3, %v1389_v2  ;;  %v1392_v7 = vld [vmem:[%s7097_s21 + $0x18] sm:$0xff] (!%p1051_p2)  ;;  %v1393_v9 = vld [vmem:[%s7097_s21 + $0x20] sm:$0xff] (!%p1051_p2) }
  0x50   : > { %6327 = vmatprep.mubr.msk.f32.mxu1 (!%p1051_p2), %vm7058_vm0, %v7057_v0  ;;  %6648 = vmatprep.subr.bf16.mxu1 (!%p1051_p2), %v7061_v5  ;;  %v6652_v8 = vpack.c.bf16 (!%p1051_p2), %v1392_v7, %v1391_v4  ;;  %v1394_v10 = vld [vmem:[%s7097_s21 + $0x28] sm:$0xff] (!%p1051_p2)  ;;  %v1395_v12 = vld [vmem:[%s7097_s21 + $0x30] sm:$0xff] (!%p1051_p2)  ;;  %v1396_v13 = vld [vmem:[%s7097_s21 + $0x38] sm:$0x3f] (!%p1051_p2)  ;;  %vm1401_vm1 = vcmask (!%p1051_p2), 1045504   ;;  %vm7062_vm2 = vmmov (!%p1051_p2), 1  }
  0x51   : > { %6650 = vmatpush3.bf16.msra.mxu1 (!%p1051_p2), %v6649_v6  ;;  %v6655_v11 = vpack.c.bf16 (!%p1051_p2), %v1394_v10, %v1393_v9  ;;  %v6658_v14 = vpack.c.bf16 (!%p1051_p2), %v1396_v13, %v1395_v12  ;;  %vm6659_vm3 = vmpackc.low (!%p1051_p2), %vm1401_vm1, %vm7062_vm2  ;;  %vm1161_vm4 = vcmask (!%p1051_p2), 1043456   ;;  %v5903_v15 = vld [vmem:[%s7082_s9 + $0x4] sm:$0xf] (!%p1051_p2)  ;;  %vm1157_vm5 = vcmask (!%p1051_p2), 31744   ;;  %v1151_v17 = vld [vmem:[%s7082_s9] sm:$0xf] (!%p1051_p2) }
  0x52   : > { %6651 = vmatprep.subr.bf16.mxu1 (!%p1051_p2), %v7061_v5  ;;  %v5908_v19 = vld [vmem:[%s7082_s9 + $0x8] sm:$0xf] (!%p1051_p2)  ;;  %v1475_v20 = vld [vmem:[%s7087_s13] sm:$0xf] (!%p1051_p2)  ;;  %v7063_v21 = vmov (!%p1051_p2), 0   ;;  %vm1397_vm6 = vcmask (!%p1051_p2), 506880  }
  0x53   : > { %6889 = vset.pattern.permute.xlu1 (!%p1051_p2), %v7063_v21  ;;  %6890 = vset.pattern.permute.xlu0 (!%p1051_p2), %v7063_v21  ;;  %v1482_v22 = vld [vmem:[%s7092_s17] sm:$0xf] (!%p1051_p2)  ;;  %v1731_v37 = vld [vmem:[%s8021_s3 + $0x8] sm:$0xff] (!%p1051_p2)  ;;  %v1732_v38 = vld [vmem:[%s8021_s3 + $0x10] sm:$0xff] (!%p1051_p2)  ;;  %vm1744_vm7 = vcmask (!%p1051_p2), 1044480   ;;  %vm1740_vm9 = vcmask (!%p1051_p2), 236544  }
  0x54   : > { %1478 = vperm.xlu1 (!%p1051_p2), %6889, %v1475_v20   ;;  %v1730_v36 = vld [vmem:[%s8021_s3] sm:$0xff] (!%p1051_p2)  ;;  %v1733_v40 = vld [vmem:[%s8021_s3 + $0x18] sm:$0x1f] (!%p1051_p2)  ;;  %vm6666_vm8 = vmpackc.low (!%p1051_p2), %vm1744_vm7, %vm7062_vm2  ;;  %vm1818_vm10 = vcmask (!%p1051_p2), 117760   ;;  %s8022_s1 = sld [smem:[#allocation4_spill]] (!%p1051_p2)  ;;  %s8023_s2 = sld [smem:[#allocation7_spill]] (!%p1051_p2) }
  0x55   : > { %6653 = vmatpush3.bf16.msra.mxu1 (!%p1051_p2), %v6652_v8  ;;  %v6662_v39 = vpack.c.bf16 (!%p1051_p2), %v1731_v37, %v1730_v36  ;;  %v6665_v41 = vpack.c.bf16 (!%p1051_p2), %v1733_v40, %v1732_v38  ;;  %v5913_v42 = vld [vmem:[%s7102_s25 + $0x4] sm:$0xf] (!%p1051_p2)  ;;  %v1494_v44 = vld [vmem:[%s7102_s25] sm:$0xf] (!%p1051_p2)  ;;  %v5918_v46 = vld [vmem:[%s7102_s25 + $0x8] sm:$0xf] (!%p1051_p2) }
  0x56   : > { %s8049_s16 = smov (!%p1142_p3, %s5896_s16), 1  ;;  %6654 = vmatprep.subr.bf16.mxu1 %v7061_v5  ;;  %v1734_v47 = vld [vmem:[%s7107_s29] sm:$0xf]  ;;  %v5925_v10 = vld [vmem:[%s7132_s24 + $0x4] sm:$0xf]  ;;  %s7986_s7 = smov 2  }
  0x57   : > { %s5901_s0 = sshll.u32 %s8049_s16, 2  ;;  %v1822_v55 = vld [vmem:[%s7117_s8] sm:$0x3]  ;;  %v5928_v20 = vld [vmem:[%s7142_s6 + $0x4] sm:$0xf]  ;;  %vm2244_vm11 = vcmask 519184  }
  0x58   : > { %s1145_s18 = scalar_lea.vmem %s7077_s5, %s5901_s0  ;;  %1485 = vperm.xlu1 %6889, %v1482_v22   ;;  %v1899_v57 = vld [vmem:[%s7122_s14] sm:$0x3]  ;;  %vm2250_vm12 = vcmask 11264   ;;  %s8024_s10 = sld [smem:[#allocation6_spill]]  ;;  %vm2256_vm13 = vcmask 536064   ;;  %vm2678_vm14 = vcmask 523280  }
  0x59   : > { %v7286_v1 = vld [vmem:[%s1145_s18] sm:$0xf]  ;;  %6656 = vmatpush3.bf16.msra.mxu1 %v6655_v11  ;;  %s8025_s11 = sld [smem:[#allocation5_spill]]  ;;  %s7984_s0 = smov 125   ;;  %vm2684_vm15 = vcmask 15360   ;;  %vm2690_vm1 = vcmask 540160  }
  0x5a   : > { %1155 = vrot.lane.b32.xlu0 %v7286_v1, %s7989_s22  ;;  %6657 = vmatprep.subr.bf16.mxu1 %v7061_v5  ;;  %v1901_v59 = vld [vmem:[%s7127_s19] sm:$0x3]  ;;  %s7988_s18 = smov 124   ;;  %vm3125_vm7 = vcmask 490496   ;;  %s8045_s3 = sld [smem:[#allocation22_spill]] }
  0x5b   : > { %v1909_v7 = vld [vmem:[%s7132_s24] sm:$0xf] }
  0x5c   : > { %v1908_v8 = vld [vmem:[%s7137_s30] sm:$0xf] }
  0x5d   : > { %6660 = vmatpush3.bf16.msk.msra.mxu1 %vm6659_vm3, %v6658_v14  ;;  %v2662_v40 = vld [vmem:[%s8023_s2] sm:$0xff]  ;;  %vm3103_vm3 = vcmask 502784   ;;  %s8029_s2 = sld [smem:[#allocation11_spill]] }
  0x5e   : > { %1311 = vrot.lane.b32.xlu0 %v7286_v1, %s7991_s23  ;;  %6661 = vmatprep.subr.bf16.mxu1 %v7061_v5 }
  0xcc   : > { %v1156_v16 = vpop.permute.xlu0 %1155 }
  0xcd   : > { %6297 = vmatpush3.msk.msra.mxu0 %vm1161_vm4, %v1156_v16  ;;  %v1997_v16 = vld [vmem:[%s7142_s6] sm:$0xf] }
  0xce   : > { %6299 = vmatmul.mubr.msk.f32.vlgmr.msra.gmra.mrb[0].mxu0 %vm1157_vm5, %v5903_v15  ;;  %6301 = vmatprep.subr.mxu0 %v7057_v0 }
  0xcf   : > { %6302 = vmatpush3.msk.msra.mxu0 %vm1161_vm4, %v7286_v1  ;;  %6303 = vmatprep.mubr.msk.f32.mxu0 %vm7058_vm0, %v7057_v0 }
  0xd0   : > { %6306 = vmatprep.subr.mxu0 %v7057_v0  ;;  %v1312_v18 = vpop.permute.xlu0 %1311 }
  0xd3   : > { %v1479_v25 = vpop.permute.xlu1 %1478 }
  0xd6   : > { %6304 = vmatmul.mubr.msk.f32.vlgmr.msra.gmra.mrb[0].mxu0 %vm1157_vm5, %v1151_v17 }
  0xd7   : > { %6307 = vmatpush3.msk.msra.mxu0 %vm1161_vm4, %v1312_v18  ;;  %6308 = vmatprep.mubr.msk.f32.mxu0 %vm7058_vm0, %v7057_v0  ;;  %v1486_v29 = vpop.permute.xlu1 %1485 }
  0xd8   : > { %6330 = vmatprep.subr.mxu0 %v7057_v0 }
  0xde   : > { %6309 = vmatmul.mubr.msk.f32.vlgmr.msra.gmra.mrb[0].mxu0 %vm1157_vm5, %v5908_v19  ;;  %v2233_v19 = vld [vmem:[%s8022_s1] sm:$0xf]  ;;  %s8028_s1 = sld [smem:[#allocation8_spill]] }
  0xdf   : > { %6332 = vmatprep.mubr.msk.f32.mxu0 %vm7058_vm0, %v7057_v0 }
 0x1b1   : > { %v1384_v23 = vpop.f32.mrb[0].mxu0 }
 0x1b2   : > { %v6310_v24 = vpop.f32.mrb[1].mxu0  ;;  %6328 = vmatmul.mubr.msk.f32.vlgmr.msra.gmra.mrb[0].mxu1 %vm1397_vm6, %v1384_v23  ;;  %v5933_v23 = vld [vmem:[%s7142_s6 + $0x8] sm:$0xf]  ;;  %vm6679_vm6 = vmpackc.low %vm1161_vm4, %vm7062_vm2 }
 0x1b3   : > { %6353 = vmatprep.mubr.msk.f32.mxu1 %vm7058_vm0, %v7057_v0  ;;  %6663 = vmatpush3.bf16.msra.mxu1 %v6662_v39 }
 0x1b4   : > { %6664 = vmatprep.subr.bf16.mxu1 %v7061_v5 }
 0x1b7   : > { %6667 = vmatpush3.bf16.msk.msra.mxu1 %vm6666_vm8, %v6665_v41  ;;  %v2655_v41 = vld [vmem:[%s8024_s10] sm:$0xff]  ;;  %s8030_s10 = sld [smem:[#allocation13_spill]]  ;;  %vm4457_vm8 = vcmask 228352  }
 0x1b8   : > { %6361 = vmatprep.subr.mxu1 %v7057_v0 }
 0x285   : > { %v1471_v26 = vpop.f32.mrb[0].mxu1 }
 0x286   : > { %v1481_v27 = vmul.f32 %v1479_v25, %v1471_v26  ;;  %v6329_v28 = vpop.f32.mrb[1].mxu1 }
 0x288   : > { %v1488_v30 = vadd.f32 %v1486_v29, %v1481_v27 }
 0x28a   : > { %v1490_v31 = vmul.f32 0.70710677, %v1488_v30  ;;  %v1489_v33 = vmul.f32 0.5, %v1488_v30 }
 0x28c   : > { %6931 = verf.f32 %v1490_v31 }
 0x296   : > { %v6932_v32 = vpop.eup %6931 }
 0x297   : > { %v1492_v34 = vadd.f32 1.0, %v6932_v32 }
 0x299   : > { %v1493_v35 = vmul.f32 %v1492_v34, %v1489_v33 }
 0x29b   : > { %1652 = vrot.lane.b32.xlu1 %v1493_v35, %s7991_s23  ;;  %1498 = vrot.lane.b32.xlu0 %v1493_v35, %s7989_s22 }
 0x29f   : > { %1737 = vperm.xlu0 %6890, %v1734_v47  }
 0x30d   : > { %v1499_v43 = vpop.permute.xlu0 %1498  ;;  %v1653_v45 = vpop.permute.xlu1 %1652 }
 0x30e   : > { %6331 = vmatpush3.msk.msra.mxu0 %vm1161_vm4, %v1499_v43 }
 0x30f   : > { %6333 = vmatmul.mubr.msk.f32.vlgmr.msra.gmra.mrb[2].mxu0 %vm1157_vm5, %v5913_v42  ;;  %6335 = vmatprep.subr.mxu0 %v7057_v0  ;;  %v5936_v42 = vld [vmem:[%s8025_s11 + $0x8] sm:$0xff] }
 0x310   : > { %6336 = vmatpush3.msk.msra.mxu0 %vm1161_vm4, %v1493_v35  ;;  %6337 = vmatprep.mubr.msk.f32.mxu0 %vm7058_vm0, %v7057_v0  ;;  %v7064_v35 = vmov 61  }
 0x311   : > { %6340 = vmatprep.subr.mxu0 %v7057_v0 }
 0x317   : > { %6338 = vmatmul.mubr.msk.f32.vlgmr.msra.gmra.mrb[2].mxu0 %vm1157_vm5, %v1494_v44  ;;  %v2258_v44 = vld [vmem:[%s8025_s11] sm:$0xff] }
 0x318   : > { %6341 = vmatpush3.msk.msra.mxu0 %vm1161_vm4, %v1653_v45  ;;  %6342 = vmatprep.mubr.msk.f32.mxu0 %vm7058_vm0, %v7057_v0 }
 0x319   : > { %6356 = vmatprep.subr.mxu0 %v7057_v0 }
 0x31e   : > { %v1738_v50 = vpop.permute.xlu0 %1737 }
 0x31f   : > { %6343 = vmatmul.mubr.msk.f32.vlgmr.msra.gmra.mrb[2].mxu0 %vm1157_vm5, %v5918_v46  ;;  %v5941_v46 = vld [vmem:[%s8025_s11 + $0x10] sm:$0xff] }
 0x320   : > { %6358 = vmatprep.mubr.msk.f32.mxu0 %vm7058_vm0, %v7057_v0 }
 0x3f2   : > { %v1725_v48 = vpop.f32.mrb[2].mxu0 }
 0x3f3   : > { %v6344_v49 = vpop.f32.mrb[3].mxu0  ;;  %6354 = vmatmul.mubr.msk.f32.vlgmr.msra.gmra.mrb[2].mxu1 %vm1740_vm9, %v1725_v48  ;;  %v5944_v48 = vld [vmem:[%s8025_s11 + $0x18] sm:$0xff]  ;;  %vm3980_vm9 = vcmask 130048  }
 0x3f4   : > { %6362 = vmatpush3.msk.msra.mxu1 %vm1161_vm4, %v7286_v1  ;;  %6363 = vmatprep.mubr.msk.f32.mxu1 %vm7058_vm0, %v7057_v0 }
 0x3f5   : > { %6371 = vmatprep.subr.mxu1 %v7057_v0 }
 0x4c6   : > { %v1814_v51 = vpop.f32.mrb[2].mxu1 }
 0x4c7   : > { %v1815_v52 = vadd.f32 %v1814_v51, %v1738_v50  ;;  %v6355_v53 = vpop.f32.mrb[3].mxu1  ;;  %v5947_v50 = vld [vmem:[%s8025_s11 + $0x20] sm:$0xff] }
 0x4c9   : > { %v1819_v54 = vsel %vm1818_vm10, %v1815_v52, -inf  ;;  %vm4493_vm10 = vcmask 1041408  }
 0x4ca   : > { %1820 = vmax.xlane.f32.xlu1 %v1819_v54 }
 0x557   : > { %v1821_v56 = vpop.xlane.xlu1 %1820 }
 0x558   : > { %6357 = vmatpush3.msk.msra.mxu0 %vm1161_vm4, %v1821_v56 }
 0x559   : > { %6359 = vmatmul.mubr.msk.f32.vlgmr.msra.gmra.mrb[4].mxu0 %vm1157_vm5, %v1822_v55  ;;  %6366 = vmatprep.subr.mxu0 %v7057_v0 }
 0x55a   : > { %6368 = vmatprep.mubr.msk.f32.mxu0 %vm7058_vm0, %v7057_v0 }
 0x62c   : > { %v1895_v58 = vpop.f32.mrb[4].mxu0 }
 0x62d   : > { %v1900_v60 = vmul.f32 %v1899_v57, %v1895_v58  ;;  %v6360_v61 = vpop.f32.mrb[5].mxu0 }
 0x62f   : > { %v1902_v62 = vadd.f32 %v1901_v59, %v1900_v60 }
 0x631   : > { %v1904_v63 = vmul.f32 0.70710677, %v1902_v62  ;;  %v1903_v2 = vmul.f32 0.5, %v1902_v62 }
 0x633   : > { %6933 = verf.f32 %v1904_v63 }
 0x63d   : > { %v6934_v1 = vpop.eup %6933 }
 0x63e   : > { %v1906_v3 = vadd.f32 1.0, %v6934_v1 }
 0x640   : > { %v1907_v4 = vmul.f32 %v1906_v3, %v1903_v2 }
 0x642   : > { %6827 = vpush %v1907_v4  ;;  %v1918_v6 = vrot.slane %v1907_v4, 1 }
 0x644   : > { %6829 = vpush %v1918_v6  ;;  %v5950_v6 = vld [vmem:[%s8028_s1 + $0x8] sm:$0xff] }
 0x673   : > { %s6828_s26 = spop %6827 }
 0x674   : > { %v1912_v9 = vstv %s6828_s26  ;;  %s8026_s26 = sld [smem:[#allocation10_spill]] }
 0x675   : > { %v1914_v11 = vmul.f32 %v1912_v9, %v1909_v7  ;;  %s6830_s28 = spop %6829 }
 0x676   : > { %v1920_v12 = vstv %s6830_s28  ;;  %s8027_s28 = sld [smem:[#allocation9_spill]] }
 0x677   : > { %v1915_v13 = vadd.f32 %v1914_v11, %v1908_v8  ;;  %v1922_v14 = vmul.f32 %v5925_v10, %v1920_v12  ;;  %v2692_v8 = vld [vmem:[%s8028_s1] sm:$0xff]  ;;  %v5953_v10 = vld [vmem:[%s8028_s1 + $0x10] sm:$0xff]  ;;  %v5955_v12 = vld [vmem:[%s8028_s1 + $0x18] sm:$0xff] }
 0x679   : > { %v1923_v15 = vadd.f32 %v1922_v14, %v1915_v13  ;;  %v5957_v14 = vld [vmem:[%s8028_s1 + $0x20] sm:$0xff]  ;;  %s8041_s1 = smov 127  }
 0x67a   : > { %v3091_v3 = vld [vmem:[%s8026_s26] sm:$0xff]  ;;  %s8031_s26 = sld [smem:[#allocation12_spill]] }
 0x67b   : > { %6364 = vmatmul.mubr.msk.f32.vlgmr.msra.gmra.mrb[4].mxu1 %vm1157_vm5, %v1923_v15  ;;  %v3117_v15 = vld [vmem:[%s8029_s2] sm:$0xff] }
 0x67c   : > { %6373 = vmatprep.mubr.msk.f32.mxu1 %vm7058_vm0, %v7057_v0  ;;  %v3084_v4 = vld [vmem:[%s8027_s28] sm:$0xff]  ;;  %s8032_s28 = sld [smem:[#allocation14_spill]] }
 0x74e   : > { %v1993_v17 = vpop.f32.mrb[4].mxu1 }
 0x74f   : > { %2001 = vrot.lane.b32.xlu0 %v1993_v17, %s7989_s22  ;;  %v6365_v18 = vpop.f32.mrb[5].mxu1  ;;  %6372 = vmatpush3.msk.msra.mxu1 %vm1161_vm4, %v1993_v17 }
 0x750   : > { %6374 = vmatmul.mubr.msk.f32.vlgmr.msra.gmra.mrb[6].mxu1 %vm1157_vm5, %v1997_v16  ;;  %6381 = vmatprep.subr.mxu1 %v7057_v0  ;;  %v3118_v16 = vld [vmem:[%s8029_s2 + $0x8] sm:$0xff] }
 0x751   : > { %6383 = vmatprep.mubr.msk.f32.mxu1 %vm7058_vm0, %v7057_v0  ;;  %v6669_v18 = vpack.c.bf16 %v3118_v16, %v3117_v15  ;;  %v5973_v16 = vld [vmem:[%s8032_s28 + $0x28] sm:$0xff] }
 0x753   : > { %2155 = vrot.lane.b32.xlu0 %v1993_v17, %s7991_s23  ;;  %v3119_v17 = vld [vmem:[%s8029_s2 + $0x10] sm:$0xff] }
 0x757   : > { %2236 = vperm.xlu0 %6890, %v2233_v19   ;;  %v3120_v19 = vld [vmem:[%s8029_s2 + $0x18] sm:$0xff] }
 0x7c1   : > { %v2002_v22 = vpop.permute.xlu0 %2001 }
 0x7c2   : > { %6367 = vmatpush3.msk.msra.mxu0 %vm1161_vm4, %v2002_v22  ;;  %v3121_v22 = vld [vmem:[%s8029_s2 + $0x20] sm:$0xff] }
 0x7c3   : > { %6369 = vmatmul.mubr.msk.f32.vlgmr.msra.gmra.mrb[6].mxu0 %vm1157_vm5, %v5928_v20  ;;  %6376 = vmatprep.subr.mxu0 %v7057_v0  ;;  %v6672_v20 = vpack.c.bf16 %v3120_v19, %v3119_v17  ;;  %v5976_v17 = vld [vmem:[%s8032_s28 + $0x30] sm:$0xff]  ;;  %v5977_v19 = vld [vmem:[%s8032_s28 + $0x38] sm:$0xff] }
 0x7c4   : > { %6378 = vmatprep.mubr.msk.f32.mxu0 %vm7058_vm0, %v7057_v0 }
 0x7c5   : > { %v2156_v24 = vpop.permute.xlu0 %2155 }
 0x7c6   : > { %6377 = vmatpush3.msk.msra.mxu0 %vm1161_vm4, %v2156_v24 }
 0x7c7   : > { %6379 = vmatmul.mubr.msk.f32.vlgmr.msra.gmra.mrb[8].mxu0 %vm1157_vm5, %v5933_v23  ;;  %6406 = vmatprep.subr.mxu0 %v7057_v0  ;;  %v3122_v23 = vld [vmem:[%s8029_s2 + $0x28] sm:$0xff] }
 0x7c8   : > { %6408 = vmatprep.mubr.msk.f32.mxu0 %vm7058_vm0, %v7057_v0  ;;  %v6675_v24 = vpack.c.bf16 %v3122_v23, %v3121_v22  ;;  %v5981_v22 = vld [vmem:[%s8032_s28 + $0x48] sm:$0xff] }
 0x7d6   : > { %v2237_v33 = vpop.permute.xlu0 %2236 }
 0x823   : > { %v2149_v25 = vpop.f32.mrb[6].mxu1 }
 0x824   : > { %v6375_v26 = vpop.f32.mrb[7].mxu1 }
 0x896   : > { %v2074_v27 = vpop.f32.mrb[6].mxu0 }
 0x897   : > { %v2150_v28 = vadd.f32 %v2149_v25, %v2074_v27  ;;  %v6370_v29 = vpop.f32.mrb[7].mxu0 }
 0x89a   : > { %v2228_v30 = vpop.f32.mrb[8].mxu0 }
 0x89b   : > { %v2232_v31 = vadd.f32 %v2228_v30, %v2150_v28  ;;  %v6380_v32 = vpop.f32.mrb[9].mxu0 }
 0x89c   : > { %v3123_v32 = vld [vmem:[%s8029_s2 + $0x30] sm:$0xff] }
 0x89d   : > { %v7399_v34 = vadd.f32 %v2237_v33, %v2232_v31  ;;  %v3124_v33 = vld [vmem:[%s8029_s2 + $0x38] sm:$0xf]  ;;  %s8042_s2 = smov 124  }
 0x89f   : > { %2247 = vperm.xlu0 %6890, %v7399_v34  }
 0x8a3   : > { %6891 = vset.pattern.permute.xlu0 %v7064_v35 }
 0x8a4   : > { %2253 = vperm.xlu0 %6891, %v7399_v34  }
 0x8a8   : > { %2241 = vrot.lane.b32.xlu0 %v7399_v34, %s7986_s7 }
 0x8a9   : > { %6892 = vset.pattern.permute.xlu0 %v7063_v21 }
 0x91e   : > { %v2248_v36 = vpop.permute.xlu0 %2247 }
 0x923   : > { %v2254_v37 = vpop.permute.xlu0 %2253 }
 0x927   : > { %v2242_v38 = vpop.permute.xlu0 %2241 }
 0x928   : > { %2245 = vst.msk [vmem:[#allocation2] sm:$0xf] %vm2244_vm11, %v2242_v38  ;;  %vm6706_vm11 = vmpackc.low %vm4493_vm10, %vm7062_vm2  ;;  %vm4486_vm2 = vcmask 211968  }
 0x929   : > { %2251 = vst.msk [vmem:[#allocation2] sm:$0xf] %vm2250_vm12, %v2248_v36  ;;  %vm5063_vm12 = vcmask 89088  }
 0x92a   : > { %2257 = vst.msk [vmem:[#allocation2] sm:$0xf] %vm2256_vm13, %v2254_v37  ;;  %vm5120_vm13 = vcmask 523264  }
 0x931   : > { %v2259_v39 = vld [vmem:[#allocation2] sm:$0xf] }
 0x932   : > { %2417 = vrot.lane.b32.xlu1 %v2259_v39, %s7991_s23  ;;  %2263 = vrot.lane.b32.xlu0 %v2259_v39, %s7989_s22 }
 0x936   : > { %2665 = vperm.xlu1 %6889, %v2662_v40   ;;  %2497 = vrot.lane.b32.xlu0 %v2259_v39, %s7984_s0 }
 0x93a   : > { %2577 = vrot.lane.b32.xlu0 %v2259_v39, %s7988_s18  ;;  %6893 = vset.pattern.permute.xlu1 %v7064_v35 }
 0x93e   : > { %2658 = vperm.xlu0 %6892, %v2655_v41  }
 0x9a4   : > { %v2264_v43 = vpop.permute.xlu0 %2263  ;;  %v2418_v45 = vpop.permute.xlu1 %2417 }
 0x9a5   : > { %6382 = vmatpush3.msk.msra.mxu1 %vm1161_vm4, %v2264_v43 }
 0x9a6   : > { %6384 = vmatmul.mubr.msk.f32.vlgmr.msra.gmra.mrb[8].mxu1 %vm1157_vm5, %v5936_v42  ;;  %6386 = vmatprep.subr.mxu1 %v7057_v0 }
 0x9a7   : > { %6387 = vmatpush3.msk.msra.mxu1 %vm1161_vm4, %v2259_v39  ;;  %6388 = vmatprep.mubr.msk.f32.mxu1 %vm7058_vm0, %v7057_v0 }
 0x9a8   : > { %6391 = vmatprep.subr.mxu1 %v7057_v0  ;;  %v2498_v47 = vpop.permute.xlu0 %2497 }
 0x9ac   : > { %v2578_v49 = vpop.permute.xlu0 %2577 }
 0x9ae   : > { %6389 = vmatmul.mubr.msk.f32.vlgmr.msra.gmra.mrb[8].mxu1 %vm1157_vm5, %v2258_v44 }
 0x9af   : > { %6392 = vmatpush3.msk.msra.mxu1 %vm1161_vm4, %v2418_v45  ;;  %6393 = vmatprep.mubr.msk.f32.mxu1 %vm7058_vm0, %v7057_v0 }
 0x9b0   : > { %6396 = vmatprep.subr.mxu1 %v7057_v0 }
 0x9b5   : > { %v2666_v55 = vpop.permute.xlu1 %2665 }
 0x9b6   : > { %6394 = vmatmul.mubr.msk.f32.vlgmr.msra.gmra.mrb[8].mxu1 %vm1157_vm5, %v5941_v46  ;;  %v3434_v46 = vld [vmem:[%s8030_s10] sm:$0xff]  ;;  %s8033_s10 = sld [smem:[#allocation15_spill]] }
 0x9b7   : > { %6397 = vmatpush3.msk.msra.mxu1 %vm1161_vm4, %v2498_v47  ;;  %6398 = vmatprep.mubr.msk.f32.mxu1 %vm7058_vm0, %v7057_v0  ;;  %v5961_v47 = vld [vmem:[%s8031_s26 + $0x8] sm:$0xff] }
 0x9b8   : > { %6401 = vmatprep.subr.mxu1 %v7057_v0 }
 0x9bd   : > { %v2659_v51 = vpop.permute.xlu0 %2658 }
 0x9be   : > { %6399 = vmatmul.mubr.msk.f32.vlgmr.msra.gmra.mrb[8].mxu1 %vm1157_vm5, %v5944_v48 }
 0x9bf   : > { %6402 = vmatpush3.msk.msra.mxu1 %vm1161_vm4, %v2578_v49  ;;  %6403 = vmatprep.mubr.msk.f32.mxu1 %vm7058_vm0, %v7057_v0  ;;  %v3202_v49 = vld [vmem:[%s8031_s26] sm:$0xff]  ;;  %vm3456_vm4 = vcmask 261360  }
 0x9c0   : > { %6668 = vmatprep.subr.bf16.mxu1 %v7061_v5 }
 0x9c6   : > { %6404 = vmatmul.mubr.msk.f32.vlgmr.msra.gmra.mrb[8].mxu1 %vm1157_vm5, %v5947_v50  ;;  %vm2700_vm5 = vcmask 64512  }
 0x9c7   : > { %6447 = vmatprep.mubr.msk.f32.mxu1 %vm7058_vm0, %v7057_v0  ;;  %6670 = vmatpush3.bf16.msra.mxu1 %v6669_v18 }
 0x9c8   : > { %6671 = vmatprep.subr.bf16.mxu1 %v7061_v5 }
 0x9cb   : > { %6673 = vmatpush3.bf16.msra.mxu1 %v6672_v20  ;;  %v5980_v20 = vld [vmem:[%s8032_s28 + $0x40] sm:$0xff] }
 0x9cc   : > { %6674 = vmatprep.subr.bf16.mxu1 %v7061_v5 }
 0x9cf   : > { %6676 = vmatpush3.bf16.msra.mxu1 %v6675_v24 }
 0x9d0   : > { %6677 = vmatprep.subr.bf16.mxu1 %v7061_v5 }
 0xa99   : > { %v2650_v52 = vpop.f32.mrb[8].mxu1 }
 0xa9a   : > { %v2661_v53 = vmul.f32 %v2659_v51, %v2650_v52  ;;  %v6405_v54 = vpop.f32.mrb[9].mxu1  ;;  %v5964_v51 = vld [vmem:[%s8031_s26 + $0x10] sm:$0xff]  ;;  %v7068_v52 = vmov 27  }
 0xa9c   : > { %v2668_v56 = vadd.f32 %v2666_v55, %v2661_v53 }
 0xa9e   : > { %v2670_v57 = vmul.f32 0.70710677, %v2668_v56  ;;  %v2669_v59 = vmul.f32 0.5, %v2668_v56 }
 0xaa0   : > { %6935 = verf.f32 %v2670_v57 }
 0xaaa   : > { %v6936_v58 = vpop.eup %6935 }
 0xaab   : > { %v2672_v60 = vadd.f32 1.0, %v6936_v58 }
 0xaad   : > { %v2673_v61 = vmul.f32 %v2672_v60, %v2669_v59 }
 0xaaf   : > { %2687 = vperm.xlu1 %6893, %v2673_v61   ;;  %2681 = vperm.xlu0 %6892, %v2673_v61  }
 0xab3   : > { %2675 = vrot.lane.b32.xlu0 %v2673_v61, %s7986_s7  ;;  %6894 = vset.pattern.permute.xlu1 %v7063_v21 }
 0xb2e   : > { %v2682_v62 = vpop.permute.xlu0 %2681  ;;  %v2688_v1 = vpop.permute.xlu1 %2687 }
 0xb32   : > { %v2676_v63 = vpop.permute.xlu0 %2675 }
 0xb33   : > { %2679 = vst.msk [vmem:[#allocation2] sm:$0xff] %vm2678_vm14, %v2676_v63  ;;  %v5966_v63 = vld [vmem:[%s8032_s28 + $0x10] sm:$0xff]  ;;  %vm5803_vm14 = vcmask 4096  }
 0xb34   : > { %2685 = vst.msk [vmem:[#allocation2] sm:$0xff] %vm2684_vm15, %v2682_v62 }
 0xb35   : > { %2691 = vst.msk [vmem:[#allocation2] sm:$0xff] %vm2690_vm1, %v2688_v1 }
 0xb3c   : > { %v2693_v2 = vld [vmem:[#allocation2] sm:$0xff] }
 0xb3d   : > { %3104 = vst.msk [vmem:[#allocation2] sm:$0xf] %vm3103_vm3, %v7399_v34  ;;  %3105 = vst.msk [vmem:[#allocation2 + $0x4] sm:$0xf] %vm3103_vm3, %v7399_v34  ;;  %2849 = vrot.lane.b32.xlu0 %v2693_v2, %s7991_s23  ;;  %2697 = vrot.lane.b32.xlu1 %v2693_v2, %s7989_s22  ;;  %v6678_v34 = vpack.c.bf16 %v3124_v33, %v3123_v32 }
 0xb3f   : > { %6680 = vmatpush3.bf16.msk.msra.mxu1 %vm6679_vm6, %v6678_v34 }
 0xb41   : > { %3007 = vrot.lane.b32.xlu0 %v2693_v2, %s7988_s18  ;;  %2928 = vrot.lane.b32.xlu1 %v2693_v2, %s7984_s0  ;;  %s8034_s0 = sld [smem:[#allocation16_spill]] }
 0xb44   : > { %v3106_v38 = vld [vmem:[#allocation2] sm:$0xff] }
 0xb45   : > { %3094 = vperm.xlu0 %6892, %v3091_v3   ;;  %3087 = vperm.xlu1 %6894, %v3084_v4   ;;  %v3898_v4 = vld [vmem:[%s8033_s10 + $0x8] sm:$0xff] }
 0xbaf   : > { %v2698_v7 = vpop.permute.xlu1 %2697  ;;  %v2850_v9 = vpop.permute.xlu0 %2849 }
 0xbb0   : > { %6407 = vmatpush3.msra.mxu0 %v2698_v7  ;;  %v3897_v7 = vld [vmem:[%s8033_s10] sm:$0xff] }
 0xbb1   : > { %6409 = vmatmul.mubr.msk.f32.vlgmr.msra.gmra.mrb[10].mxu0 %vm2700_vm5, %v5950_v6  ;;  %6411 = vmatprep.subr.mxu0 %v7057_v0  ;;  %v3912_v6 = vld [vmem:[%s8034_s0 + $0x8] sm:$0xff] }
 0xbb2   : > { %6412 = vmatpush3.msra.mxu0 %v2693_v2  ;;  %6413 = vmatprep.mubr.msk.f32.mxu0 %vm7058_vm0, %v7057_v0 }
 0xbb3   : > { %6416 = vmatprep.subr.mxu0 %v7057_v0  ;;  %v2929_v11 = vpop.permute.xlu1 %2928  ;;  %v3008_v13 = vpop.permute.xlu0 %3007 }
 0xbb9   : > { %6414 = vmatmul.mubr.msk.f32.vlgmr.msra.gmra.mrb[10].mxu0 %vm2700_vm5, %v2692_v8  ;;  %v3911_v8 = vld [vmem:[%s8034_s0] sm:$0xff]  ;;  %s8040_s0 = smov 126  }
 0xbba   : > { %6417 = vmatpush3.msra.mxu0 %v2850_v9  ;;  %6418 = vmatprep.mubr.msk.f32.mxu0 %vm7058_vm0, %v7057_v0 }
 0xbbb   : > { %6421 = vmatprep.subr.mxu0 %v7057_v0 }
 0xbc1   : > { %6419 = vmatmul.mubr.msk.f32.vlgmr.msra.gmra.mrb[10].mxu0 %vm2700_vm5, %v5953_v10  ;;  %v5967_v10 = vld [vmem:[%s8032_s28 + $0x18] sm:$0xff] }
 0xbc2   : > { %6422 = vmatpush3.msra.mxu0 %v2929_v11  ;;  %6423 = vmatprep.mubr.msk.f32.mxu0 %vm7058_vm0, %v7057_v0  ;;  %v3458_v11 = vld [vmem:[%s8032_s28] sm:$0xff] }
 0xbc3   : > { %6426 = vmatprep.subr.mxu0 %v7057_v0 }
 0xbc4   : > { %v3088_v25 = vpop.permute.xlu1 %3087  ;;  %v3095_v29 = vpop.permute.xlu0 %3094 }
 0xbc9   : > { %6424 = vmatmul.mubr.msk.f32.vlgmr.msra.gmra.mrb[10].mxu0 %vm2700_vm5, %v5955_v12 }
 0xbca   : > { %6427 = vmatpush3.msra.mxu0 %v3008_v13  ;;  %6428 = vmatprep.mubr.msk.f32.mxu0 %vm7058_vm0, %v7057_v0  ;;  %v3459_v13 = vld [vmem:[%s8032_s28 + $0x8] sm:$0xff] }
 0xbcb   : > { %6450 = vmatprep.subr.mxu0 %v7057_v0 }
 0xbd1   : > { %6429 = vmatmul.mubr.msk.f32.vlgmr.msra.gmra.mrb[10].mxu0 %vm2700_vm5, %v5957_v14  ;;  %v5972_v14 = vld [vmem:[%s8032_s28 + $0x20] sm:$0xff] }
 0xbd2   : > { %6452 = vmatprep.mubr.msk.f32.mxu0 %vm7058_vm0, %v7057_v0 }
 0xca4   : > { %v3079_v26 = vpop.f32.mrb[10].mxu0 }
 0xca5   : > { %v3090_v27 = vmul.f32 %v3088_v25, %v3079_v26  ;;  %v6430_v28 = vpop.f32.mrb[11].mxu0 }
 0xca7   : > { %v3097_v30 = vadd.f32 %v3095_v29, %v3090_v27 }
 0xca9   : > { %v3099_v31 = vmul.f32 0.70710677, %v3097_v30  ;;  %v3098_v36 = vmul.f32 0.5, %v3097_v30 }
 0xcab   : > { %6937 = verf.f32 %v3099_v31 }
 0xcb5   : > { %v6938_v35 = vpop.eup %6937 }
 0xcb6   : > { %v3101_v37 = vadd.f32 1.0, %v6938_v35 }
 0xcb8   : > { %v3102_v5 = vmul.f32 %v3101_v37, %v3098_v36 }
 0xcba   : > { %v3107_v39 = vadd.f32 %v3106_v38, %v3102_v5 }
 0xcbc   : > { %3113 = vrot.lane.b32.xlu0 %v3107_v39, %s7991_s23  ;;  %3109 = vrot.lane.b32.xlu1 %v3107_v39, %s7989_s22 }
 0xd2e   : > { %v3110_v40 = vpop.permute.xlu1 %3109  ;;  %v3114_v42 = vpop.permute.xlu0 %3113 }
 0xd2f   : > { %v3112_v41 = vmax.f32 %v3107_v39, %v3110_v40 }
 0xd31   : > { %v3116_v43 = vmax.f32 %v3112_v41, %v3114_v42 }
 0xd33   : > { %6448 = vmatmul.mubr.msk.f32.vlgmr.msra.gmra.mrb[10].mxu1 %vm3125_vm7, %v3116_v43 }
 0xe06   : > { %v3198_v44 = vpop.f32.mrb[10].mxu1 }
 0xe07   : > { %3357 = vrot.lane.b32.xlu0 %v3198_v44, %s7991_s23  ;;  %3206 = vrot.lane.b32.xlu1 %v3198_v44, %s7989_s22  ;;  %v6449_v45 = vpop.f32.mrb[11].mxu1 }
 0xe0b   : > { %3437 = vperm.xlu1 %6894, %v3434_v46  }
 0xe0f   : > { %6895 = vset.pattern.permute.xlu1 %v7068_v52 }
 0xe79   : > { %v3207_v48 = vpop.permute.xlu1 %3206  ;;  %v3358_v50 = vpop.permute.xlu0 %3357 }
 0xe7a   : > { %6451 = vmatpush3.msra.mxu0 %v3207_v48 }
 0xe7b   : > { %6453 = vmatmul.mubr.msk.f32.vlgmr.msra.gmra.mrb[12].mxu0 %vm2700_vm5, %v5961_v47  ;;  %6455 = vmatprep.subr.mxu0 %v7057_v0 }
 0xe7c   : > { %6456 = vmatpush3.msra.mxu0 %v3198_v44  ;;  %6457 = vmatprep.mubr.msk.f32.mxu0 %vm7058_vm0, %v7057_v0 }
 0xe7d   : > { %6460 = vmatprep.subr.mxu0 %v7057_v0 }
 0xe7f   : > { %6458 = vmatmul.mubr.msk.f32.vlgmr.msra.gmra.mrb[14].mxu0 %vm2700_vm5, %v3202_v49 }
 0xe80   : > { %6461 = vmatpush3.msra.mxu0 %v3358_v50  ;;  %6462 = vmatprep.mubr.msk.f32.mxu0 %vm7058_vm0, %v7057_v0  ;;  %vm3445_vm0 = vcmask 244752  }
 0xe83   : > { %6463 = vmatmul.mubr.msk.f32.vlgmr.msra.gmra.mrb[16].mxu0 %vm2700_vm5, %v5964_v51 }
 0xe84   : > { %6467 = vmatprep.mubr.msk.f32.mxu0 %vm2700_vm5, %v5966_v63 }
 0xe8a   : > { %v3438_v61 = vpop.permute.xlu1 %3437 }
 0xf4e   : > { %v3278_v53 = vpop.f32.mrb[12].mxu0 }
 0xf4f   : > { %v6454_v54 = vpop.f32.mrb[13].mxu0 }
 0xf52   : > { %v3351_v55 = vpop.f32.mrb[14].mxu0 }
 0xf53   : > { %v3352_v56 = vadd.f32 %v3351_v55, %v3278_v53  ;;  %v6459_v57 = vpop.f32.mrb[15].mxu0 }
 0xf56   : > { %v3429_v58 = vpop.f32.mrb[16].mxu0 }
 0xf57   : > { %v3433_v59 = vadd.f32 %v3429_v58, %v3352_v56  ;;  %v6464_v60 = vpop.f32.mrb[17].mxu0 }
 0xf59   : > { %v7509_v62 = vadd.f32 %v3438_v61, %v3433_v59 }
 0xf5b   : > { %3453 = vperm.xlu1 %6895, %v7509_v62   ;;  %3448 = vperm.xlu0 %6892, %v7509_v62  }
 0xf5f   : > { %3442 = vrot.lane.b32.xlu0 %v7509_v62, %s7986_s7  ;;  %6896 = vset.pattern.permute.xlu1 %v7063_v21  ;;  %s8035_s7 = smov 125  }
 0xfda   : > { %v3449_v0 = vpop.permute.xlu0 %3448  ;;  %v3454_v2 = vpop.permute.xlu1 %3453 }
 0xfde   : > { %v3443_v1 = vpop.permute.xlu0 %3442 }
 0xfdf   : > { %3446 = vst.msk [vmem:[#allocation2] sm:$0xff] %vm3445_vm0, %v3443_v1 }
 0xfe0   : > { %3451 = vst.msk [vmem:[#allocation2] sm:$0xff] %vm2684_vm15, %v3449_v0 }
 0xfe1   : > { %3457 = vst.msk [vmem:[#allocation2] sm:$0xff] %vm3456_vm4, %v3454_v2 }
 0xfe8   : > { %v3460_v3 = vld [vmem:[#allocation2] sm:$0xff] }
 0xfe9   : > { %3633 = vrot.lane.b32.xlu0 %v3460_v3, %s7991_s23  ;;  %3465 = vrot.lane.b32.xlu1 %v3460_v3, %s7989_s22  ;;  %s8037_s22 = sld [smem:[#allocation17_spill]]  ;;  %s8038_s23 = sld [smem:[#allocation18_spill]] }
 0xfed   : > { %3811 = vrot.lane.b32.xlu0 %v3460_v3, %s7988_s18  ;;  %3722 = vrot.lane.b32.xlu1 %v3460_v3, %s8035_s7  ;;  %s8036_s18 = smov 2  }
 0xfef   : > { %v5984_v48 = vld [vmem:[%s8037_s22 + $0x10] sm:$0xff]  ;;  %v4419_v53 = vld [vmem:[%s8038_s23] sm:$0xff]  ;;  %v5985_v0 = vld [vmem:[%s8037_s22 + $0x18] sm:$0xff] }
 0xff0   : > { %6494 = vmatprep.mubr.msk.f32.mxu1 %vm3980_vm9, %v5984_v48  ;;  %v3965_v63 = vld [vmem:[%s8037_s22] sm:$0xff] }
 0xff1   : > { %3906 = vperm.xlu0 %6892, %v3898_v4   ;;  %3901 = vperm.xlu1 %6896, %v3897_v7   ;;  %v5990_v7 = vld [vmem:[%s8037_s22 + $0x20] sm:$0xff] }
 0xff5   : > { %3920 = vperm.xlu0 %6892, %v3912_v6   ;;  %3915 = vperm.xlu1 %6896, %v3911_v8   ;;  %v3966_v6 = vld [vmem:[%s8037_s22 + $0x8] sm:$0xff] }
0x105b   : > { %v3466_v9 = vpop.permute.xlu1 %3465  ;;  %v3634_v12 = vpop.permute.xlu0 %3633 }
0x105c   : > { %6465 = vmatprep.subr.mxu0 %v3466_v9 }
0x105d   : > { %6466 = vmatpush3.msra.mxu0 %v3466_v9 }
0x105e   : > { %6468 = vmatmul.mubr.msk.f32.vlgmr.msra.gmra.mrb[18].mxu0 %vm2700_vm5, %v5967_v10  ;;  %6470 = vmatprep.subr.mxu0 %v3460_v3 }
0x105f   : > { %6471 = vmatpush3.msra.mxu0 %v3460_v3  ;;  %6472 = vmatprep.mubr.msk.f32.mxu0 %vm2700_vm5, %v3458_v11  ;;  %v3723_v15 = vpop.permute.xlu1 %3722  ;;  %v3812_v18 = vpop.permute.xlu0 %3811 }
0x1060   : > { %6475 = vmatprep.subr.mxu0 %v3634_v12 }
0x1066   : > { %6473 = vmatmul.mubr.msk.f32.vlgmr.msra.gmra.mrb[18].mxu0 %vm2700_vm5, %v3459_v13  ;;  %v5994_v13 = vld [vmem:[%s8037_s22 + $0x30] sm:$0xff] }
0x1067   : > { %6476 = vmatpush3.msra.mxu0 %v3634_v12  ;;  %6477 = vmatprep.mubr.msk.f32.mxu0 %vm2700_vm5, %v5972_v14  ;;  %v5991_v12 = vld [vmem:[%s8037_s22 + $0x28] sm:$0xff] }
0x1068   : > { %6480 = vmatprep.subr.mxu0 %v3723_v15 }
0x106e   : > { %6478 = vmatmul.mubr.msk.f32.vlgmr.msra.gmra.mrb[18].mxu0 %vm2700_vm5, %v5973_v16  ;;  %v5998_v16 = vld [vmem:[%s8037_s22 + $0x40] sm:$0xff] }
0x106f   : > { %6481 = vmatpush3.msra.mxu0 %v3723_v15  ;;  %6482 = vmatprep.mubr.msk.f32.mxu0 %vm2700_vm5, %v5976_v17  ;;  %v5995_v15 = vld [vmem:[%s8037_s22 + $0x38] sm:$0xff]  ;;  %v5999_v17 = vld [vmem:[%s8037_s22 + $0x48] sm:$0xff] }
0x1070   : > { %6485 = vmatprep.subr.mxu0 %v3812_v18  ;;  %v3907_v23 = vpop.permute.xlu0 %3906  ;;  %v3902_v24 = vpop.permute.xlu1 %3901 }
0x1074   : > { %v3921_v28 = vpop.permute.xlu0 %3920  ;;  %v3916_v31 = vpop.permute.xlu1 %3915 }
0x1076   : > { %6483 = vmatmul.mubr.msk.f32.vlgmr.msra.gmra.mrb[18].mxu0 %vm2700_vm5, %v5977_v19 }
0x1077   : > { %6486 = vmatpush3.msra.mxu0 %v3812_v18  ;;  %6487 = vmatprep.mubr.msk.f32.mxu0 %vm2700_vm5, %v5980_v20 }
0x107e   : > { %6488 = vmatmul.mubr.msk.f32.vlgmr.msra.gmra.mrb[18].mxu0 %vm2700_vm5, %v5981_v22 }
0x1151   : > { %v6489_v25 = vpop.f32.mrb[18].mxu0 }
0x1152   : > { %v3910_v26 = vmul.f32 %v6489_v25, %v3907_v23  ;;  %v3886_v27 = vpop.f32.mrb[19].mxu0 }
0x1153   : > { %v3909_v29 = vmul.f32 %v3902_v24, %v3886_v27 }
0x1154   : > { %v3924_v30 = vadd.f32 %v3921_v28, %v3910_v26 }
0x1155   : > { %v3923_v32 = vadd.f32 %v3916_v31, %v3909_v29 }
0x1156   : > { %v3928_v33 = vmul.f32 0.70710677, %v3924_v30  ;;  %v3926_v37 = vmul.f32 0.5, %v3924_v30 }
0x1157   : > { %v3927_v34 = vmul.f32 0.70710677, %v3923_v32  ;;  %v3925_v38 = vmul.f32 0.5, %v3923_v32 }
0x1158   : > { %6939 = verf.f32 %v3928_v33 }
0x1159   : > { %6941 = verf.f32 %v3927_v34 }
0x1162   : > { %v6940_v35 = vpop.eup %6939 }
0x1163   : > { %v6942_v36 = vpop.eup %6941  ;;  %v3932_v5 = vadd.f32 1.0, %v6940_v35 }
0x1164   : > { %v3931_v39 = vadd.f32 1.0, %v6942_v36 }
0x1165   : > { %v3934_v40 = vmul.f32 %v3932_v5, %v3926_v37 }
0x1166   : > { %v3933_v41 = vmul.f32 %v3931_v39, %v3925_v38 }
0x1167   : > { %3950 = vperm.xlu0 %6892, %v3934_v40  }
0x1168   : > { %3946 = vperm.xlu1 %6896, %v3933_v41  }
0x116b   : > { %6897 = vset.pattern.permute.xlu0 %v7068_v52 }
0x116c   : > { %3960 = vperm.xlu0 %6897, %v3934_v40   ;;  %6898 = vset.pattern.permute.xlu1 %v7068_v52  ;;  %v4420_v52 = vld [vmem:[%s8038_s23 + $0x8] sm:$0xff] }
0x116d   : > { %3956 = vperm.xlu1 %6898, %v3933_v41  }
0x1170   : > { %6919 = vset.pattern.permute.xlu0 %v7063_v21 }
0x1171   : > { %3937 = vrot.lane.b32.xlu1 %v3933_v41, %s8036_s18 }
0x1172   : > { %6920 = vset.pattern.permute.xlu1 %v7063_v21 }
0x1175   : > { %3939 = vrot.lane.b32.xlu1 %v3934_v40, %s8036_s18  ;;  %s8039_s18 = sld [smem:[#allocation19_spill]] }
0x117b   : > { %v4433_v54 = vld [vmem:[%s8039_s18] sm:$0xff]  ;;  %v4434_v55 = vld [vmem:[%s8039_s18 + $0x8] sm:$0xff] }
0x11e6   : > { %v3951_v44 = vpop.permute.xlu0 %3950 }
0x11e7   : > { %v3947_v42 = vpop.permute.xlu1 %3946 }
0x11eb   : > { %v3961_v47 = vpop.permute.xlu0 %3960 }
0x11ec   : > { %v3957_v43 = vpop.permute.xlu1 %3956 }
0x11f0   : > { %v3938_v45 = vpop.permute.xlu1 %3937 }
0x11f1   : > { %3943 = vst.msk [vmem:[#allocation2] sm:$0xff] %vm3445_vm0, %v3938_v45 }
0x11f2   : > { %3953 = vst.msk [vmem:[#allocation2] sm:$0xff] %vm2684_vm15, %v3947_v42 }
0x11f3   : > { %3963 = vst.msk [vmem:[#allocation2] sm:$0xff] %vm3456_vm4, %v3957_v43 }
0x11f4   : > { %v3940_v46 = vpop.permute.xlu1 %3939 }
0x11f5   : > { %3944 = vst.msk [vmem:[#allocation2 + $0x8] sm:$0xff] %vm3445_vm0, %v3940_v46 }
0x11f6   : > { %3954 = vst.msk [vmem:[#allocation2 + $0x8] sm:$0xff] %vm2684_vm15, %v3951_v44 }
0x11f7   : > { %3964 = vst.msk [vmem:[#allocation2 + $0x8] sm:$0xff] %vm3456_vm4, %v3961_v47 }
0x11fa   : > { %v3967_v21 = vld [vmem:[#allocation2] sm:$0xff] }
0x11fb   : > { %4458 = vst.msk [vmem:[#allocation2] sm:$0xff] %vm4457_vm8, %v7509_v62 }
0x11fe   : > { %v3968_v49 = vld [vmem:[#allocation2 + $0x8] sm:$0xff] }
0x11ff   : > { %4459 = vst.msk [vmem:[#allocation2 + $0x8] sm:$0xff] %vm4457_vm8, %v7509_v62  ;;  %v6904_v50 = vpack.i.bf16 %v3968_v49, %v3967_v21  ;;  %v6685_v51 = vpack.c.bf16 %v3968_v49, %v3967_v21 }
0x1201   : > { %6905 = vrot.lane.b32.xlu1 %v6904_v50, %s8040_s0  ;;  %6900 = vrot.lane.b32.xlu0 %v6904_v50, %s8041_s1 }
0x1202   : > { %v4460_v46 = vld [vmem:[#allocation2] sm:$0xff] }
0x1205   : > { %6915 = vrot.lane.b32.xlu1 %v6904_v50, %s8042_s2  ;;  %6910 = vrot.lane.b32.xlu0 %v6904_v50, %s8035_s7  ;;  %s8043_s7 = sld [smem:[#allocation20_spill]]  ;;  %s8044_s2 = sld [smem:[#allocation21_spill]] }
0x1206   : > { %v4461_v43 = vld [vmem:[#allocation2 + $0x8] sm:$0xff] }
0x1209   : > { %4428 = vperm.xlu1 %6920, %v4420_v52   ;;  %4423 = vperm.xlu0 %6919, %v4419_v53  }
0x120b   : > { %v4482_v31 = vld [vmem:[%s8043_s7] sm:$0xff]  ;;  %v4483_v32 = vld [vmem:[%s8043_s7 + $0x8] sm:$0xff]  ;;  %v4484_v34 = vld [vmem:[%s8043_s7 + $0x10] sm:$0xff] }
0x120c   : > { %v6701_v33 = vpack.c.bf16 %v4483_v32, %v4482_v31  ;;  %v4485_v35 = vld [vmem:[%s8043_s7 + $0x18] sm:$0x3]  ;;  %v6031_v31 = vld [vmem:[%s8044_s2 + $0x90] sm:$0xff] }
0x120d   : > { %4437 = vperm.xlu1 %6920, %v4433_v54   ;;  %4442 = vperm.xlu0 %6919, %v4434_v55   ;;  %v6705_v36 = vpack.c.bf16 %v4485_v35, %v4484_v34  ;;  %v6005_v55 = vld [vmem:[%s8044_s2 + $0x40] sm:$0xff]  ;;  %v6032_v32 = vld [vmem:[%s8044_s2 + $0x98] sm:$0xff]  ;;  %v6034_v34 = vld [vmem:[%s8044_s2 + $0xa8] sm:$0xff] }
0x120e   : > { %v6035_v35 = vld [vmem:[%s8044_s2 + $0xb0] sm:$0xff] }
0x1273   : > { %v6901_v56 = vpop.permute.xlu0 %6900  ;;  %v6906_v59 = vpop.permute.xlu1 %6905 }
0x1274   : > { %v6903_v57 = vunpack.i.h.bf16 %v6901_v56  ;;  %v6902_v58 = vunpack.i.l.bf16 %v6901_v56  ;;  %v6908_v61 = vunpack.i.h.bf16 %v6906_v59  ;;  %v6907_v62 = vunpack.i.l.bf16 %v6906_v59 }
0x1276   : > { %v6681_v60 = vpack.c.bf16 %v6903_v57, %v6902_v58  ;;  %v6689_v1 = vpack.c.bf16 %v6908_v61, %v6907_v62  ;;  %v5007_v61 = vld [vmem:[%s8045_s3] sm:$0xff]  ;;  %v5010_v62 = vld [vmem:[%s8045_s3 + $0x18] sm:$0xff] }
0x1277   : > { %v6911_v2 = vpop.permute.xlu0 %6910  ;;  %v6916_v9 = vpop.permute.xlu1 %6915 }
0x1278   : > { %6682 = vmatprep.subr.bf16.mxu1 %v6681_v60  ;;  %v6913_v3 = vunpack.i.h.bf16 %v6911_v2  ;;  %v6912_v4 = vunpack.i.l.bf16 %v6911_v2  ;;  %v6918_v10 = vunpack.i.h.bf16 %v6916_v9  ;;  %v6917_v11 = vunpack.i.l.bf16 %v6916_v9  ;;  %v5014_v2 = vld [vmem:[%s8045_s3 + $0x38] sm:$0xff] }
0x1279   : > { %6684 = vmatpush3.bf16.msra.mxu1 %v6681_v60  ;;  %v5008_v60 = vld [vmem:[%s8045_s3 + $0x8] sm:$0xff] }
0x127a   : > { %6686 = vmatprep.subr.bf16.mxu1 %v6685_v51  ;;  %v6693_v8 = vpack.c.bf16 %v6913_v3, %v6912_v4  ;;  %v6697_v14 = vpack.c.bf16 %v6918_v10, %v6917_v11  ;;  %v5013_v3 = vld [vmem:[%s8045_s3 + $0x30] sm:$0xff] }
0x127c   : > { %6495 = vmatmul.mubr.msk.f32.vlgmr.msra.gmra.mrb[12].mxu1 %vm3980_vm9, %v5985_v0  ;;  %v5009_v0 = vld [vmem:[%s8045_s3 + $0x10] sm:$0xff] }
0x127d   : > { %6688 = vmatpush3.bf16.msra.mxu1 %v6685_v51  ;;  %6501 = vmatprep.mubr.msk.f32.mxu1 %vm3980_vm9, %v3965_v63  ;;  %v5012_v63 = vld [vmem:[%s8045_s3 + $0x28] sm:$0xff] }
0x127e   : > { %6690 = vmatprep.subr.bf16.mxu1 %v6689_v1 }
0x1284   : > { %6502 = vmatmul.mubr.msk.f32.vlgmr.msra.gmra.mrb[12].mxu1 %vm3980_vm9, %v3966_v6 }
0x1285   : > { %6692 = vmatpush3.bf16.msra.mxu1 %v6689_v1  ;;  %6508 = vmatprep.mubr.msk.f32.mxu1 %vm3980_vm9, %v5990_v7  ;;  %v5011_v1 = vld [vmem:[%s8045_s3 + $0x20] sm:$0xff] }
0x1286   : > { %6694 = vmatprep.subr.bf16.mxu1 %v6693_v8 }
0x1288   : > { %v4424_v18 = vpop.permute.xlu0 %4423  ;;  %v4429_v19 = vpop.permute.xlu1 %4428 }
0x128c   : > { %6509 = vmatmul.mubr.msk.f32.vlgmr.msra.gmra.mrb[12].mxu1 %vm3980_vm9, %v5991_v12  ;;  %v4443_v25 = vpop.permute.xlu0 %4442  ;;  %v4438_v26 = vpop.permute.xlu1 %4437  ;;  %v6006_v12 = vld [vmem:[%s8044_s2 + $0x48] sm:$0xff] }
0x128d   : > { %6696 = vmatpush3.bf16.msra.mxu1 %v6693_v8  ;;  %6515 = vmatprep.mubr.msk.f32.mxu1 %vm3980_vm9, %v5994_v13  ;;  %v6007_v13 = vld [vmem:[%s8044_s2 + $0x50] sm:$0xff] }
0x128e   : > { %6698 = vmatprep.subr.bf16.mxu1 %v6697_v14 }
0x1294   : > { %6516 = vmatmul.mubr.msk.f32.vlgmr.msra.gmra.mrb[12].mxu1 %vm3980_vm9, %v5995_v15  ;;  %v6008_v15 = vld [vmem:[%s8044_s2 + $0x58] sm:$0xff] }
0x1295   : > { %6700 = vmatpush3.bf16.msra.mxu1 %v6697_v14  ;;  %6522 = vmatprep.mubr.msk.f32.mxu1 %vm3980_vm9, %v5998_v16  ;;  %v6009_v16 = vld [vmem:[%s8044_s2 + $0x60] sm:$0xff] }
0x1296   : > { %6702 = vmatprep.subr.bf16.mxu1 %v6701_v33 }
0x129c   : > { %6523 = vmatmul.mubr.msk.f32.vlgmr.msra.gmra.mrb[12].mxu1 %vm3980_vm9, %v5999_v17  ;;  %v6010_v17 = vld [vmem:[%s8044_s2 + $0x68] sm:$0xff] }
0x129d   : > { %6704 = vmatpush3.bf16.msra.mxu1 %v6701_v33  ;;  %v6033_v33 = vld [vmem:[%s8044_s2 + $0xa0] sm:$0xff] }
0x129e   : > { %6707 = vmatprep.subr.msk.bf16.mxu1 %vm6706_vm11, %v6705_v36 }
0x12a1   : > { %6710 = vmatpush3.bf16.msk.msra.mxu1 %vm6706_vm11, %v6705_v36  ;;  %v6036_v36 = vld [vmem:[%s8044_s2 + $0xb8] sm:$0xff] }
0x136f   : > { %v6524_v20 = vpop.f32.mrb[12].mxu1 }
0x1370   : > { %v4432_v22 = vmul.f32 %v6524_v20, %v4429_v19  ;;  %v4408_v23 = vpop.f32.mrb[13].mxu1  ;;  %v6012_v19 = vld [vmem:[%s8044_s2 + $0x78] sm:$0xff]  ;;  %v4572_v20 = vld [vmem:[%s8044_s2] sm:$0xff] }
0x1371   : > { %v4431_v24 = vmul.f32 %v4424_v18, %v4408_v23  ;;  %v6011_v18 = vld [vmem:[%s8044_s2 + $0x70] sm:$0xff] }
0x1372   : > { %v4446_v27 = vadd.f32 %v4443_v25, %v4432_v22  ;;  %v4573_v22 = vld [vmem:[%s8044_s2 + $0x8] sm:$0xff]  ;;  %v4574_v23 = vld [vmem:[%s8044_s2 + $0x10] sm:$0xff]  ;;  %v4576_v25 = vld [vmem:[%s8044_s2 + $0x20] sm:$0xff] }
0x1373   : > { %v4445_v28 = vadd.f32 %v4438_v26, %v4431_v24  ;;  %v4575_v24 = vld [vmem:[%s8044_s2 + $0x18] sm:$0xff]  ;;  %v4577_v26 = vld [vmem:[%s8044_s2 + $0x28] sm:$0xff] }
0x1374   : > { %v4450_v29 = vmul.f32 0.70710677, %v4446_v27  ;;  %v4448_v38 = vmul.f32 0.5, %v4446_v27  ;;  %v4578_v27 = vld [vmem:[%s8044_s2 + $0x30] sm:$0xff] }
0x1375   : > { %v4449_v30 = vmul.f32 0.70710677, %v4445_v28  ;;  %v4447_v40 = vmul.f32 0.5, %v4445_v28  ;;  %v4579_v28 = vld [vmem:[%s8044_s2 + $0x38] sm:$0xff] }
0x1376   : > { %6943 = verf.f32 %v4450_v29  ;;  %v6029_v29 = vld [vmem:[%s8044_s2 + $0x80] sm:$0xff] }
0x1377   : > { %6945 = verf.f32 %v4449_v30  ;;  %v6030_v30 = vld [vmem:[%s8044_s2 + $0x88] sm:$0xff] }
0x1380   : > { %v6944_v37 = vpop.eup %6943 }
0x1381   : > { %v6946_v5 = vpop.eup %6945  ;;  %v4454_v39 = vadd.f32 1.0, %v6944_v37 }
0x1382   : > { %v4453_v41 = vadd.f32 1.0, %v6946_v5 }
0x1383   : > { %v4456_v42 = vmul.f32 %v4454_v39, %v4448_v38 }
0x1384   : > { %v4455_v44 = vmul.f32 %v4453_v41, %v4447_v40 }
0x1385   : > { %v4463_v45 = vadd.f32 %v4461_v43, %v4456_v42 }
0x1386   : > { %v4462_v47 = vadd.f32 %v4460_v46, %v4455_v44 }
0x1387   : > { %4468 = vrot.lane.b32.xlu0 %v4463_v45, %s8041_s1 }
0x1388   : > { %4466 = vrot.lane.b32.xlu1 %v4462_v47, %s8041_s1 }
0x138b   : > { %4476 = vrot.lane.b32.xlu0 %v4463_v45, %s8040_s0 }
0x138c   : > { %4474 = vrot.lane.b32.xlu1 %v4462_v47, %s8040_s0 }
0x13f9   : > { %v4469_v21 = vpop.permute.xlu0 %4468 }
0x13fa   : > { %v4467_v48 = vpop.permute.xlu1 %4466  ;;  %v4473_v51 = vmax.f32 %v4463_v45, %v4469_v21 }
0x13fb   : > { %v4472_v49 = vmax.f32 %v4462_v47, %v4467_v48 }
0x13fd   : > { %v4477_v50 = vpop.permute.xlu0 %4476 }
0x13fe   : > { %v4475_v52 = vpop.permute.xlu1 %4474  ;;  %v4481_v54 = vmax.f32 %v4473_v51, %v4477_v50 }
0x13ff   : > { %v4480_v53 = vmax.f32 %v4472_v49, %v4475_v52 }
0x1401   : > { %6533 = vmatprep.mubr.msk.f32.mxu1 %vm4486_vm2, %v4480_v53 }
0x1402   : > { %6534 = vmatmul.mubr.msk.f32.vlgmr.msra.gmra.mrb[14].mxu1 %vm4486_vm2, %v4481_v54 }
0x1403   : > { %6540 = vmatprep.mubr.msk.f32.mxu1 %vm3980_vm9, %v6005_v55 }
0x14d5   : > { %v6535_v56 = vpop.f32.mrb[14].mxu1 }
0x14d6   : > { %v4563_v57 = vpop.f32.mrb[15].mxu1 }
0x14d7   : > { %v6926_v58 = vpack.i.bf16 %v6535_v56, %v4563_v57  ;;  %v6715_v59 = vpack.c.bf16 %v6535_v56, %v4563_v57 }
0x14d9   : > { %6927 = vrot.lane.b32.xlu0 %v6926_v58, %s8040_s0  ;;  %6922 = vrot.lane.b32.xlu1 %v6926_v58, %s8041_s1  ;;  %s8046_s0 = sld [smem:[#allocation23_spill]]  ;;  %s8047_s1 = sld [smem:[#allocation24_spill]] }
0x14dd   : > { %5022 = vperm.xlu0 %6919, %v5008_v60   ;;  %5017 = vperm.xlu1 %6920, %v5007_v61  }
0x14e1   : > { %5032 = vperm.xlu0 %6919, %v5010_v62   ;;  %5027 = vperm.xlu1 %6920, %v5009_v0  }
0x14e5   : > { %5042 = vperm.xlu0 %6919, %v5012_v63   ;;  %5037 = vperm.xlu1 %6920, %v5011_v1  }
0x14e9   : > { %5052 = vperm.xlu0 %6919, %v5014_v2   ;;  %5047 = vperm.xlu1 %6920, %v5013_v3   ;;  %v5088_v3 = vld [vmem:[%s8046_s0] sm:$0xff] }
0x14ea   : > { %6600 = vmatprep.mubr.msk.f32.mxu0 %vm5120_vm13, %v5088_v3 }
0x154b   : > { %v6923_v4 = vpop.permute.xlu1 %6922  ;;  %v6928_v8 = vpop.permute.xlu0 %6927 }
0x154c   : > { %v6925_v6 = vunpack.i.h.bf16 %v6923_v4  ;;  %v6924_v7 = vunpack.i.l.bf16 %v6923_v4  ;;  %v6930_v10 = vunpack.i.h.bf16 %v6928_v8  ;;  %v6929_v11 = vunpack.i.l.bf16 %v6928_v8 }
0x154e   : > { %v6711_v9 = vpack.c.bf16 %v6925_v6, %v6924_v7  ;;  %v6719_v14 = vpack.c.bf16 %v6930_v10, %v6929_v11 }
0x1550   : > { %6712 = vmatprep.subr.bf16.mxu1 %v6711_v9 }
0x1551   : > { %6714 = vmatpush3.bf16.msra.mxu1 %v6711_v9 }
0x1552   : > { %6716 = vmatprep.subr.bf16.mxu1 %v6715_v59 }
0x1554   : > { %6541 = vmatmul.mubr.msk.f32.vlgmr.msra.gmra.mrb[16].mxu1 %vm3980_vm9, %v6006_v12 }
0x1555   : > { %6718 = vmatpush3.bf16.msra.mxu1 %v6715_v59  ;;  %6543 = vmatprep.mubr.msk.f32.mxu1 %vm3980_vm9, %v6007_v13 }
0x1556   : > { %6720 = vmatprep.subr.bf16.mxu1 %v6719_v14 }
0x1558   : > { %6544 = vmatmul.mubr.msk.f32.gmra.mrb[18].mxu1 %vm3980_vm9, %v6008_v15 }
0x1559   : > { %6546 = vmatprep.mubr.msk.f32.mxu1 %vm3980_vm9, %v6009_v16 }
0x155c   : > { %6547 = vmatmul.mubr.msk.f32.gmra.mrb[20].mxu1 %vm3980_vm9, %v6010_v17  ;;  %v5023_v37 = vpop.permute.xlu0 %5022  ;;  %v5018_v5 = vpop.permute.xlu1 %5017  ;;  %v5089_v17 = vld [vmem:[%s8046_s0 + $0x8] sm:$0xff] }
0x155d   : > { %6549 = vmatprep.mubr.msk.f32.mxu1 %vm3980_vm9, %v6011_v18  ;;  %v5090_v18 = vld [vmem:[%s8046_s0 + $0x10] sm:$0xff] }
0x1560   : > { %6550 = vmatmul.mubr.msk.f32.gmra.mrb[22].mxu1 %vm3980_vm9, %v6012_v19  ;;  %v5033_v38 = vpop.permute.xlu0 %5032  ;;  %v5028_v40 = vpop.permute.xlu1 %5027  ;;  %v5091_v19 = vld [vmem:[%s8046_s0 + $0x18] sm:$0xff] }
0x1561   : > { %6556 = vmatprep.mubr.msk.f32.mxu1 %vm3980_vm9, %v4572_v20  ;;  %v5092_v20 = vld [vmem:[%s8046_s0 + $0x20] sm:$0xff] }
0x1564   : > { %6557 = vmatmul.mubr.msk.f32.vlgmr.msra.gmra.mrb[16].mxu1 %vm3980_vm9, %v4573_v22  ;;  %v5043_v48 = vpop.permute.xlu0 %5042  ;;  %v5038_v50 = vpop.permute.xlu1 %5037  ;;  %v5093_v22 = vld [vmem:[%s8046_s0 + $0x28] sm:$0xff] }
0x1565   : > { %6722 = vmatpush3.bf16.msra.mxu1 %v6719_v14  ;;  %6559 = vmatprep.mubr.msk.f32.mxu1 %vm3980_vm9, %v4574_v23  ;;  %v5094_v23 = vld [vmem:[%s8046_s0 + $0x30] sm:$0xff] }
0x1568   : > { %6560 = vmatmul.mubr.msk.f32.gmra.mrb[18].mxu1 %vm3980_vm9, %v4575_v24  ;;  %v5053_v58 = vpop.permute.xlu0 %5052  ;;  %v5048_v61 = vpop.permute.xlu1 %5047  ;;  %v5095_v24 = vld [vmem:[%s8046_s0 + $0x38] sm:$0xff] }
0x1569   : > { %6562 = vmatprep.mubr.msk.f32.mxu1 %vm3980_vm9, %v4576_v25  ;;  %v5096_v25 = vld [vmem:[%s8046_s0 + $0x40] sm:$0xff] }
0x156c   : > { %6563 = vmatmul.mubr.msk.f32.gmra.mrb[20].mxu1 %vm3980_vm9, %v4577_v26  ;;  %v5097_v26 = vld [vmem:[%s8046_s0 + $0x48] sm:$0xff] }
0x156d   : > { %6565 = vmatprep.mubr.msk.f32.mxu1 %vm3980_vm9, %v4578_v27  ;;  %v5098_v27 = vld [vmem:[%s8046_s0 + $0x50] sm:$0xff] }
0x1570   : > { %6566 = vmatmul.mubr.msk.f32.gmra.mrb[22].mxu1 %vm3980_vm9, %v4579_v28  ;;  %v5099_v28 = vld [vmem:[%s8046_s0 + $0x58] sm:$0xff] }
0x1571   : > { %6572 = vmatprep.mubr.msk.f32.mxu1 %vm3980_vm9, %v6029_v29  ;;  %v5100_v29 = vld [vmem:[%s8046_s0 + $0x60] sm:$0xff] }
0x1574   : > { %6573 = vmatmul.mubr.msk.f32.vlgmr.msra.gmra.mrb[16].mxu1 %vm3980_vm9, %v6030_v30  ;;  %v5101_v30 = vld [vmem:[%s8046_s0 + $0x68] sm:$0xff] }
0x1575   : > { %6575 = vmatprep.mubr.msk.f32.mxu1 %vm3980_vm9, %v6031_v31  ;;  %v5102_v31 = vld [vmem:[%s8046_s0 + $0x70] sm:$0xff] }
0x1578   : > { %6576 = vmatmul.mubr.msk.f32.gmra.mrb[18].mxu1 %vm3980_vm9, %v6032_v32  ;;  %v5103_v32 = vld [vmem:[%s8046_s0 + $0x78] sm:$0xff] }
0x1579   : > { %6578 = vmatprep.mubr.msk.f32.mxu1 %vm3980_vm9, %v6033_v33  ;;  %v5104_v33 = vld [vmem:[%s8046_s0 + $0x80] sm:$0xff] }
0x157c   : > { %6579 = vmatmul.mubr.msk.f32.gmra.mrb[20].mxu1 %vm3980_vm9, %v6034_v34  ;;  %v5105_v34 = vld [vmem:[%s8046_s0 + $0x88] sm:$0xff] }
0x157d   : > { %6581 = vmatprep.mubr.msk.f32.mxu1 %vm3980_vm9, %v6035_v35  ;;  %v5106_v35 = vld [vmem:[%s8046_s0 + $0x90] sm:$0xff] }
0x1580   : > { %6582 = vmatmul.mubr.msk.f32.gmra.mrb[22].mxu1 %vm3980_vm9, %v6036_v36  ;;  %v5107_v36 = vld [vmem:[%s8046_s0 + $0x98] sm:$0xff] }
0x1647   : > { %v6574_v39 = vpop.f32.mrb[16].mxu1 }
0x1648   : > { %v5056_v41 = vadd.f32 %v6574_v39, %v5023_v37  ;;  %v4960_v42 = vpop.f32.mrb[17].mxu1  ;;  %v5108_v37 = vld [vmem:[%s8046_s0 + $0xa0] sm:$0xff]  ;;  %v5111_v39 = vld [vmem:[%s8046_s0 + $0xb8] sm:$0xff] }
0x1649   : > { %v5055_v43 = vadd.f32 %v5018_v5, %v4960_v42  ;;  %v5109_v5 = vld [vmem:[%s8046_s0 + $0xa8] sm:$0xff]  ;;  %v5114_v42 = vld [vmem:[%s8046_s0 + $0xd0] sm:$0xff] }
0x164a   : > { %v5067_v44 = vsel %vm5063_vm12, %v5056_v41, -inf  ;;  %v5113_v41 = vld [vmem:[%s8046_s0 + $0xc8] sm:$0xff] }
0x164b   : > { %5068 = vmax.xlane.f32.xlu0 %v5067_v44  ;;  %v6577_v45 = vpop.f32.mrb[18].mxu1  ;;  %v5064_v46 = vsel %vm5063_vm12, %v5055_v43, -inf  ;;  %v5115_v43 = vld [vmem:[%s8046_s0 + $0xd8] sm:$0xff]  ;;  %v5116_v44 = vld [vmem:[%s8046_s0 + $0xe0] sm:$0xff] }
0x164c   : > { %v5058_v47 = vadd.f32 %v6577_v45, %v5033_v38  ;;  %5065 = vmax.xlane.f32.xlu1 %v5064_v46  ;;  %v4970_v21 = vpop.f32.mrb[19].mxu1  ;;  %v5110_v38 = vld [vmem:[%s8046_s0 + $0xb0] sm:$0xff]  ;;  %v5117_v45 = vld [vmem:[%s8046_s0 + $0xe8] sm:$0xff] }
0x164d   : > { %v5057_v49 = vadd.f32 %v5028_v40, %v4970_v21  ;;  %v5112_v40 = vld [vmem:[%s8046_s0 + $0xc0] sm:$0xff]  ;;  %v5118_v46 = vld [vmem:[%s8046_s0 + $0xf0] sm:$0xff]  ;;  %v5731_v21 = vld [vmem:[%s7257_s27 + $0x8] sm:$0x1f] }
0x164e   : > { %v5073_v51 = vsel %vm5063_vm12, %v5058_v47, -inf  ;;  %v5119_v47 = vld [vmem:[%s8046_s0 + $0xf8] sm:$0xff]  ;;  %5797 = vmatprep.mubr.f32.mxu1 %v5731_v21  ;;  %s5902_s0 = sshll.u32 %s8049_s16, 3 }
0x164f   : > { %v6580_v52 = vpop.f32.mrb[20].mxu1  ;;  %v5070_v53 = vsel %vm5063_vm12, %v5057_v49, -inf  ;;  %v5442_v49 = vld [vmem:[%s8047_s1] sm:$0xff] }
0x1650   : > { %v5060_v54 = vadd.f32 %v6580_v52, %v5043_v48  ;;  %5074 = vmax.xlane.f32.xlu1 %v5073_v51  ;;  %5071 = vmax.xlane.f32.xlu0 %v5070_v53  ;;  %v4980_v55 = vpop.f32.mrb[21].mxu1  ;;  %v5443_v48 = vld [vmem:[%s8047_s1 + $0x8] sm:$0xff] }
0x1651   : > { %v5059_v56 = vadd.f32 %v5038_v50, %v4980_v55  ;;  %v5507_v51 = vld [vmem:[%s7252_s20 + $0x8] sm:$0xff] }
0x1652   : > { %v5079_v57 = vsel %vm5063_vm12, %v5060_v54, -inf  ;;  %v5506_v54 = vld [vmem:[%s7252_s20] sm:$0xff] }
0x1653   : > { %v6583_v59 = vpop.f32.mrb[22].mxu1  ;;  %v5076_v60 = vsel %vm5063_vm12, %v5059_v56, -inf  ;;  %v5445_v56 = vld [vmem:[%s8047_s1 + $0x18] sm:$0xff] }
0x1654   : > { %v5062_v62 = vadd.f32 %v6583_v59, %v5053_v58  ;;  %5080 = vmax.xlane.f32.xlu1 %v5079_v57  ;;  %5077 = vmax.xlane.f32.xlu0 %v5076_v60  ;;  %v4990_v0 = vpop.f32.mrb[23].mxu1  ;;  %v5444_v58 = vld [vmem:[%s8047_s1 + $0x10] sm:$0xff] }
0x1655   : > { %v5061_v63 = vadd.f32 %v5048_v61, %v4990_v0  ;;  %v5509_v61 = vld [vmem:[%s7252_s20 + $0x18] sm:$0xff] }
0x1656   : > { %v5085_v1 = vsel %vm5063_vm12, %v5062_v62, -inf }
0x1657   : > { %v5082_v2 = vsel %vm5063_vm12, %v5061_v63, -inf }
0x1658   : > { %5086 = vmax.xlane.f32.xlu1 %v5085_v1  ;;  %5083 = vmax.xlane.f32.xlu0 %v5082_v2  ;;  %v5508_v1 = vld [vmem:[%s7252_s20 + $0x10] sm:$0xff] }
0x16d8   : > { %v5069_v4 = vpop.xlane.xlu0 %5068 }
0x16d9   : > { %v5066_v6 = vpop.xlane.xlu1 %5065 }
0x16da   : > { %v6723_v7 = vpack.c.bf16 %v5069_v4, %v5066_v6  ;;  %v5447_v4 = vld [vmem:[%s8047_s1 + $0x28] sm:$0xff] }
0x16dc   : > { %6724 = vmatprep.subr.bf16.mxu0 %v6723_v7 }
0x16dd   : > { %6726 = vmatpush3.bf16.msra.mxu0 %v6723_v7  ;;  %v5075_v8 = vpop.xlane.xlu1 %5074  ;;  %v5072_v9 = vpop.xlane.xlu0 %5071  ;;  %v5446_v7 = vld [vmem:[%s8047_s1 + $0x20] sm:$0xff] }
0x16de   : > { %v6727_v10 = vpack.c.bf16 %v5075_v8, %v5072_v9 }
0x16e0   : > { %6728 = vmatprep.subr.bf16.mxu0 %v6727_v10 }
0x16e1   : > { %6730 = vmatpush3.bf16.msra.mxu0 %v6727_v10  ;;  %v5081_v11 = vpop.xlane.xlu1 %5080  ;;  %v5078_v12 = vpop.xlane.xlu0 %5077  ;;  %v5511_v10 = vld [vmem:[%s7252_s20 + $0x28] sm:$0xff] }
0x16e2   : > { %v6731_v13 = vpack.c.bf16 %v5081_v11, %v5078_v12 }
0x16e4   : > { %6732 = vmatprep.subr.bf16.mxu0 %v6731_v13 }
0x16e5   : > { %6734 = vmatpush3.bf16.msra.mxu0 %v6731_v13  ;;  %v5087_v14 = vpop.xlane.xlu1 %5086  ;;  %v5084_v15 = vpop.xlane.xlu0 %5083 }
0x16e6   : > { %v6735_v16 = vpack.c.bf16 %v5087_v14, %v5084_v15  ;;  %v5510_v14 = vld [vmem:[%s7252_s20 + $0x20] sm:$0xff] }
0x16e8   : > { %6736 = vmatprep.subr.bf16.mxu0 %v6735_v16 }
0x16e9   : > { %6738 = vmatpush3.bf16.msra.mxu0 %v6735_v16 }
0x16ec   : > { %6601 = vmatmul.mubr.msk.f32.vlgmr.msra.gmra.mrb[20].mxu0 %vm5120_vm13, %v5089_v17  ;;  %v5449_v17 = vld [vmem:[%s8047_s1 + $0x38] sm:$0xff] }
0x16ed   : > { %6603 = vmatprep.mubr.msk.f32.mxu0 %vm5120_vm13, %v5090_v18 }
0x16f0   : > { %6604 = vmatmul.mubr.msk.f32.gmra.mrb[22].mxu0 %vm5120_vm13, %v5091_v19  ;;  %v5448_v19 = vld [vmem:[%s8047_s1 + $0x30] sm:$0xff] }
0x16f1   : > { %6606 = vmatprep.mubr.msk.f32.mxu0 %vm5120_vm13, %v5092_v20 }
0x16f4   : > { %6607 = vmatmul.mubr.msk.f32.gmra.mrb[24].mxu0 %vm5120_vm13, %v5093_v22 }
0x16f5   : > { %6609 = vmatprep.mubr.msk.f32.mxu0 %vm5120_vm13, %v5094_v23  ;;  %v5513_v23 = vld [vmem:[%s7252_s20 + $0x38] sm:$0xff] }
0x16f8   : > { %6610 = vmatmul.mubr.msk.f32.gmra.mrb[26].mxu0 %vm5120_vm13, %v5095_v24 }
0x16f9   : > { %6612 = vmatprep.mubr.msk.f32.mxu0 %vm5120_vm13, %v5096_v25 }
0x16fc   : > { %6613 = vmatmul.mubr.msk.f32.gmra.mrb[28].mxu0 %vm5120_vm13, %v5097_v26 }
0x16fd   : > { %6615 = vmatprep.mubr.msk.f32.mxu0 %vm5120_vm13, %v5098_v27  ;;  %v5512_v27 = vld [vmem:[%s7252_s20 + $0x30] sm:$0xff] }
0x1700   : > { %6616 = vmatmul.mubr.msk.f32.gmra.mrb[30].mxu0 %vm5120_vm13, %v5099_v28 }
0x1701   : > { %6618 = vmatprep.mubr.msk.f32.mxu0 %vm5120_vm13, %v5100_v29 }
0x1704   : > { %6619 = vmatmul.mubr.msk.f32.gmra.mrb[32].mxu0 %vm5120_vm13, %v5101_v30  ;;  %v5451_v30 = vld [vmem:[%s8047_s1 + $0x48] sm:$0xff] }
0x1705   : > { %6621 = vmatprep.mubr.msk.f32.mxu0 %vm5120_vm13, %v5102_v31 }
0x1708   : > { %6622 = vmatmul.mubr.msk.f32.gmra.mrb[34].mxu0 %vm5120_vm13, %v5103_v32  ;;  %v5450_v32 = vld [vmem:[%s8047_s1 + $0x40] sm:$0xff] }
0x1709   : > { %6624 = vmatprep.mubr.msk.f32.mxu0 %vm5120_vm13, %v5104_v33 }
0x170c   : > { %6625 = vmatmul.mubr.msk.f32.gmra.mrb[36].mxu0 %vm5120_vm13, %v5105_v34 }
0x170d   : > { %6627 = vmatprep.mubr.msk.f32.mxu0 %vm5120_vm13, %v5106_v35  ;;  %v5515_v35 = vld [vmem:[%s7252_s20 + $0x48] sm:$0xff] }
0x1710   : > { %6628 = vmatmul.mubr.msk.f32.gmra.mrb[38].mxu0 %vm5120_vm13, %v5107_v36 }
0x1711   : > { %6630 = vmatprep.mubr.msk.f32.mxu0 %vm5120_vm13, %v5108_v37 }
0x1714   : > { %6631 = vmatmul.mubr.msk.f32.gmra.mrb[40].mxu0 %vm5120_vm13, %v5109_v5 }
0x1715   : > { %6633 = vmatprep.mubr.msk.f32.mxu0 %vm5120_vm13, %v5110_v38 }
0x1718   : > { %6634 = vmatmul.mubr.msk.f32.gmra.mrb[42].mxu0 %vm5120_vm13, %v5111_v39  ;;  %v5514_v39 = vld [vmem:[%s7252_s20 + $0x40] sm:$0xff] }
0x1719   : > { %6636 = vmatprep.mubr.msk.f32.mxu0 %vm5120_vm13, %v5112_v40 }
0x171c   : > { %6637 = vmatmul.mubr.msk.f32.gmra.mrb[44].mxu0 %vm5120_vm13, %v5113_v41 }
0x171d   : > { %6639 = vmatprep.mubr.msk.f32.mxu0 %vm5120_vm13, %v5114_v42 }
0x1720   : > { %6640 = vmatmul.mubr.msk.f32.gmra.mrb[46].mxu0 %vm5120_vm13, %v5115_v43 }
0x1721   : > { %6642 = vmatprep.mubr.msk.f32.mxu0 %vm5120_vm13, %v5116_v44 }
0x1724   : > { %6643 = vmatmul.mubr.msk.f32.gmra.mrb[48].mxu0 %vm5120_vm13, %v5117_v45  ;;  %v5453_v45 = vld [vmem:[%s8047_s1 + $0x58] sm:$0xff] }
0x1725   : > { %6645 = vmatprep.mubr.msk.f32.mxu0 %vm5120_vm13, %v5118_v46 }
0x1728   : > { %6646 = vmatmul.mubr.msk.f32.gmra.mrb[50].mxu0 %vm5120_vm13, %v5119_v47 }
0x17bf   : > { %v6602_v50 = vpop.f32.mrb[20].mxu0 }
0x17c0   : > { %v5475_v52 = vmul.f32 %v6602_v50, %v5443_v48  ;;  %v5283_v53 = vpop.f32.mrb[21].mxu0  ;;  %v5452_v48 = vld [vmem:[%s8047_s1 + $0x50] sm:$0xff] }
0x17c1   : > { %v5474_v55 = vmul.f32 %v5442_v49, %v5283_v53 }
0x17c2   : > { %v5539_v57 = vadd.f32 %v5507_v51, %v5475_v52  ;;  %v5517_v52 = vld [vmem:[%s7252_s20 + $0x58] sm:$0xff] }
0x17c3   : > { %v5538_v59 = vadd.f32 %v5506_v54, %v5474_v55  ;;  %v6605_v60 = vpop.f32.mrb[22].mxu0 }
0x17c4   : > { %v5603_v62 = vmul.f32 0.70710677, %v5539_v57  ;;  %v5477_v0 = vmul.f32 %v6605_v60, %v5445_v56  ;;  %v5293_v63 = vpop.f32.mrb[23].mxu0  ;;  %v5571_v41 = vmul.f32 0.5, %v5539_v57 }
0x17c5   : > { %v5602_v2 = vmul.f32 0.70710677, %v5538_v59  ;;  %v5476_v3 = vmul.f32 %v5444_v58, %v5293_v63  ;;  %v5570_v46 = vmul.f32 0.5, %v5538_v59  ;;  %v5516_v59 = vld [vmem:[%s7252_s20 + $0x50] sm:$0xff] }
0x17c6   : > { %6947 = verf.f32 %v5603_v62  ;;  %v5541_v6 = vadd.f32 %v5509_v61, %v5477_v0 }
0x17c7   : > { %6949 = verf.f32 %v5602_v2  ;;  %v5540_v8 = vadd.f32 %v5508_v1, %v5476_v3  ;;  %v6608_v9 = vpop.f32.mrb[24].mxu0  ;;  %v5455_v1 = vld [vmem:[%s8047_s1 + $0x68] sm:$0xff] }
0x17c8   : > { %v5605_v11 = vmul.f32 0.70710677, %v5541_v6  ;;  %v5479_v12 = vmul.f32 %v6608_v9, %v5447_v4  ;;  %v5303_v13 = vpop.f32.mrb[25].mxu0  ;;  %v5573_v55 = vmul.f32 0.5, %v5541_v6  ;;  %v5454_v4 = vld [vmem:[%s8047_s1 + $0x60] sm:$0xff] }
0x17c9   : > { %v5604_v15 = vmul.f32 0.70710677, %v5540_v8  ;;  %v5478_v16 = vmul.f32 %v5446_v7, %v5303_v13  ;;  %v5572_v62 = vmul.f32 0.5, %v5540_v8 }
0x17ca   : > { %6951 = verf.f32 %v5605_v11  ;;  %v7742_v18 = vadd.f32 %v5511_v10, %v5479_v12  ;;  %v5519_v10 = vld [vmem:[%s7252_s20 + $0x68] sm:$0xff] }
0x17cb   : > { %6953 = verf.f32 %v5604_v15  ;;  %v7745_v20 = vadd.f32 %v5510_v14, %v5478_v16  ;;  %v6611_v22 = vpop.f32.mrb[26].mxu0 }
0x17cc   : > { %v5607_v24 = vmul.f32 0.70710677, %v7742_v18  ;;  %v5481_v25 = vmul.f32 %v6611_v22, %v5449_v17  ;;  %v5313_v26 = vpop.f32.mrb[27].mxu0  ;;  %v5575_v13 = vmul.f32 0.5, %v7742_v18  ;;  %v5518_v17 = vld [vmem:[%s7252_s20 + $0x60] sm:$0xff]  ;;  %v5456_v18 = vld [vmem:[%s8047_s1 + $0x70] sm:$0xff] }
0x17cd   : > { %v5606_v28 = vmul.f32 0.70710677, %v7745_v20  ;;  %v5480_v29 = vmul.f32 %v5448_v19, %v5313_v26  ;;  %v5457_v26 = vld [vmem:[%s8047_s1 + $0x78] sm:$0xff] }
0x17ce   : > { %6955 = verf.f32 %v5607_v24  ;;  %v7752_v31 = vadd.f32 %v5513_v23, %v5481_v25  ;;  %v5574_v23 = vmul.f32 0.5, %v7745_v20 }
0x17cf   : > { %6957 = verf.f32 %v5606_v28  ;;  %v7755_v33 = vadd.f32 %v5512_v27, %v5480_v29  ;;  %v6614_v34 = vpop.f32.mrb[28].mxu0 }
0x17d0   : > { %v6948_v36 = vpop.eup %6947  ;;  %v5609_v37 = vmul.f32 0.70710677, %v7752_v31  ;;  %v5483_v5 = vmul.f32 %v6614_v34, %v5451_v30  ;;  %v5323_v38 = vpop.f32.mrb[29].mxu0  ;;  %v5521_v34 = vld [vmem:[%s7252_s20 + $0x78] sm:$0xff] }
0x17d1   : > { %v6950_v40 = vpop.eup %6949  ;;  %v5667_v42 = vadd.f32 1.0, %v6948_v36  ;;  %v5608_v43 = vmul.f32 0.70710677, %v7755_v33  ;;  %v5482_v44 = vmul.f32 %v5450_v32, %v5323_v38 }
0x17d2   : > { %v5666_v47 = vadd.f32 1.0, %v6950_v40  ;;  %6959 = verf.f32 %v5609_v37  ;;  %v7762_v21 = vadd.f32 %v5515_v35, %v5483_v5  ;;  %v5577_v37 = vmul.f32 0.5, %v7752_v31  ;;  %v5520_v40 = vld [vmem:[%s7252_s20 + $0x70] sm:$0xff]  ;;  %v5458_v31 = vld [vmem:[%s8047_s1 + $0x80] sm:$0xff] }
0x17d3   : > { %v7765_v49 = vmul.f32 %v5667_v42, %v5571_v41  ;;  %6961 = verf.f32 %v5608_v43  ;;  %v7767_v50 = vadd.f32 %v5514_v39, %v5482_v44  ;;  %v6617_v51 = vpop.f32.mrb[30].mxu0  ;;  %v5576_v43 = vmul.f32 0.5, %v7755_v33 }
0x17d4   : > { %v6952_v53 = vpop.eup %6951  ;;  %v7770_v54 = vmul.f32 %v5666_v47, %v5570_v46  ;;  %v5611_v56 = vmul.f32 0.70710677, %v7762_v21  ;;  %v5485_v57 = vmul.f32 %v6617_v51, %v5453_v45  ;;  %v5333_v58 = vpop.f32.mrb[31].mxu0  ;;  %v5459_v46 = vld [vmem:[%s8047_s1 + $0x88] sm:$0xff] }
0x17d5   : > { %v6954_v60 = vpop.eup %6953  ;;  %v5669_v61 = vadd.f32 1.0, %v6952_v53  ;;  %v5610_v0 = vmul.f32 0.70710677, %v7767_v50  ;;  %v5484_v63 = vmul.f32 %v5452_v48, %v5333_v58  ;;  %v5579_v58 = vmul.f32 0.5, %v7762_v21  ;;  %v5460_v21 = vld [vmem:[%s8047_s1 + $0x90] sm:$0xff] }
0x17d6   : > { %v5668_v2 = vadd.f32 1.0, %v6954_v60  ;;  %6963 = verf.f32 %v5611_v56  ;;  %v7776_v3 = vadd.f32 %v5517_v52, %v5485_v57  ;;  %v6741_v6 = vpack.c.bf16 %v7765_v49, %v7770_v54  ;;  %v5536_v49 = vld [vmem:[%s7252_s20 + $0xf0] sm:$0xff] }
0x17d7   : > { %v7781_v7 = vmul.f32 %v5669_v61, %v5573_v55  ;;  %6965 = verf.f32 %v5610_v0  ;;  %v7783_v9 = vadd.f32 %v5516_v59, %v5484_v63  ;;  %v6620_v8 = vpop.f32.mrb[32].mxu0  ;;  %v5523_v55 = vld [vmem:[%s7252_s20 + $0x88] sm:$0xff] }
0x17d8   : > { %v6956_v11 = vpop.eup %6955  ;;  %v7786_v12 = vmul.f32 %v5668_v2, %v5572_v62  ;;  %v5613_v14 = vmul.f32 0.70710677, %v7776_v3  ;;  %v5487_v15 = vmul.f32 %v6620_v8, %v5455_v1  ;;  %v5343_v16 = vpop.f32.mrb[33].mxu0  ;;  %v5522_v62 = vld [vmem:[%s7252_s20 + $0x80] sm:$0xff]  ;;  %v5578_v1 = vmul.f32 0.5, %v7767_v50  ;;  %v5461_v8 = vld [vmem:[%s8047_s1 + $0x98] sm:$0xff] }
0x17d9   : > { %v6958_v19 = vpop.eup %6957  ;;  %v5671_v22 = vadd.f32 1.0, %v6956_v11  ;;  %v5612_v24 = vmul.f32 0.70710677, %v7783_v9  ;;  %v5486_v25 = vmul.f32 %v5454_v4, %v5343_v16  ;;  %v5525_v16 = vld [vmem:[%s7252_s20 + $0x98] sm:$0xff] }
0x17da   : > { %v5670_v27 = vadd.f32 1.0, %v6958_v19  ;;  %6967 = verf.f32 %v5613_v14  ;;  %v7794_v28 = vadd.f32 %v5519_v10, %v5487_v15  ;;  %v6745_v29 = vpack.c.bf16 %v7781_v7, %v7786_v12 }
0x17db   : > { %v7799_v30 = vmul.f32 %v5671_v22, %v5575_v13  ;;  %6969 = verf.f32 %v5612_v24  ;;  %v7801_v32 = vadd.f32 %v5518_v17, %v5486_v25  ;;  %v6623_v20 = vpop.f32.mrb[34].mxu0  ;;  %v5581_v22 = vmul.f32 0.5, %v7776_v3  ;;  %v5462_v3 = vld [vmem:[%s8047_s1 + $0xa0] sm:$0xff] }
0x17dc   : > { %v6960_v35 = vpop.eup %6959  ;;  %v7804_v36 = vmul.f32 %v5670_v27, %v5574_v23  ;;  %v5615_v5 = vmul.f32 0.70710677, %v7794_v28  ;;  %v5489_v38 = vmul.f32 %v6623_v20, %v5457_v26  ;;  %v5353_v39 = vpop.f32.mrb[35].mxu0  ;;  %v5524_v26 = vld [vmem:[%s7252_s20 + $0x90] sm:$0xff]  ;;  %v5580_v20 = vmul.f32 0.5, %v7783_v9 }
0x17dd   : > { %v6962_v41 = vpop.eup %6961  ;;  %v5673_v42 = vadd.f32 1.0, %v6960_v35  ;;  %v5614_v44 = vmul.f32 0.70710677, %v7801_v32  ;;  %v5488_v45 = vmul.f32 %v5456_v18, %v5353_v39 }
0x17de   : > { %v5672_v47 = vadd.f32 1.0, %v6962_v41  ;;  %6971 = verf.f32 %v5615_v5  ;;  %v7812_v48 = vadd.f32 %v5521_v34, %v5489_v38  ;;  %v6749_v51 = vpack.c.bf16 %v7799_v30, %v7804_v36 }
0x17df   : > { %v7817_v52 = vmul.f32 %v5673_v42, %v5577_v37  ;;  %6973 = verf.f32 %v5614_v44  ;;  %v7819_v53 = vadd.f32 %v5520_v40, %v5488_v45  ;;  %v6626_v33 = vpop.f32.mrb[36].mxu0  ;;  %v5463_v37 = vld [vmem:[%s8047_s1 + $0xa8] sm:$0xff]  ;;  %v5583_v45 = vmul.f32 0.5, %v7794_v28  ;;  %v5464_v28 = vld [vmem:[%s8047_s1 + $0xb0] sm:$0xff] }
0x17e0   : > { %v6964_v56 = vpop.eup %6963  ;;  %v7822_v57 = vmul.f32 %v5672_v47, %v5576_v43  ;;  %v5617_v59 = vmul.f32 0.70710677, %v7812_v48  ;;  %v5491_v60 = vmul.f32 %v6626_v33, %v5459_v46  ;;  %v5363_v61 = vpop.f32.mrb[37].mxu0  ;;  %v5527_v42 = vld [vmem:[%s7252_s20 + $0xa8] sm:$0xff]  ;;  %v5526_v33 = vld [vmem:[%s7252_s20 + $0xa0] sm:$0xff] }
0x17e1   : > { %v6966_v0 = vpop.eup %6965  ;;  %v5675_v63 = vadd.f32 1.0, %v6964_v56  ;;  %v5616_v2 = vmul.f32 0.70710677, %v7819_v53  ;;  %v5490_v4 = vmul.f32 %v5458_v31, %v5363_v61  ;;  %v5465_v61 = vld [vmem:[%s8047_s1 + $0xb8] sm:$0xff] }
0x17e2   : > { %v5674_v10 = vadd.f32 1.0, %v6966_v0  ;;  %6975 = verf.f32 %v5617_v59  ;;  %v7830_v11 = vadd.f32 %v5523_v55, %v5491_v60  ;;  %v6753_v13 = vpack.c.bf16 %v7817_v52, %v7822_v57 }
0x17e3   : > { %v7835_v14 = vmul.f32 %v5675_v63, %v5579_v58  ;;  %6977 = verf.f32 %v5616_v2  ;;  %v7837_v15 = vadd.f32 %v5522_v62, %v5490_v4  ;;  %v6629_v50 = vpop.f32.mrb[38].mxu0  ;;  %v5582_v58 = vmul.f32 0.5, %v7801_v32  ;;  %v5529_v4 = vld [vmem:[%s7252_s20 + $0xb8] sm:$0xff] }
0x17e4   : > { %v6968_v17 = vpop.eup %6967  ;;  %v7840_v19 = vmul.f32 %v5674_v10, %v5578_v1  ;;  %v5619_v23 = vmul.f32 0.70710677, %v7830_v11  ;;  %v5493_v24 = vmul.f32 %v6629_v50, %v5461_v8  ;;  %v5373_v25 = vpop.f32.mrb[39].mxu0 }
0x17e5   : > { %v6970_v27 = vpop.eup %6969  ;;  %v5677_v18 = vadd.f32 1.0, %v6968_v17  ;;  %v5618_v34 = vmul.f32 0.70710677, %v7837_v15  ;;  %v5492_v35 = vmul.f32 %v5460_v21, %v5373_v25  ;;  %v5585_v21 = vmul.f32 0.5, %v7812_v48  ;;  %v5466_v48 = vld [vmem:[%s8047_s1 + $0xc0] sm:$0xff] }
0x17e6   : > { %v5676_v5 = vadd.f32 1.0, %v6970_v27  ;;  %6979 = verf.f32 %v5619_v23  ;;  %v7848_v38 = vadd.f32 %v5525_v16, %v5493_v24  ;;  %v6757_v39 = vpack.c.bf16 %v7835_v14, %v7840_v19 }
0x17e7   : > { %v7853_v40 = vmul.f32 %v5677_v18, %v5581_v22  ;;  %6981 = verf.f32 %v5618_v34  ;;  %v7855_v41 = vadd.f32 %v5524_v26, %v5492_v35  ;;  %v6632_v9 = vpop.f32.mrb[40].mxu0  ;;  %v5528_v22 = vld [vmem:[%s7252_s20 + $0xb0] sm:$0xff]  ;;  %v5584_v25 = vmul.f32 0.5, %v7819_v53  ;;  %v5467_v18 = vld [vmem:[%s8047_s1 + $0xc8] sm:$0xff] }
0x17e8   : > { %v6972_v43 = vpop.eup %6971  ;;  %v7858_v44 = vmul.f32 %v5676_v5, %v5580_v20  ;;  %v5621_v46 = vmul.f32 0.70710677, %v7848_v38  ;;  %v5495_v47 = vmul.f32 %v6632_v9, %v5463_v37  ;;  %v5383_v31 = vpop.f32.mrb[41].mxu0 }
0x17e9   : > { %v6974_v55 = vpop.eup %6973  ;;  %v5679_v56 = vadd.f32 1.0, %v6972_v43  ;;  %v5620_v59 = vmul.f32 0.70710677, %v7855_v41  ;;  %v5494_v60 = vmul.f32 %v5462_v3, %v5383_v31  ;;  %v5531_v3 = vld [vmem:[%s7252_s20 + $0xc8] sm:$0xff]  ;;  %v5587_v43 = vmul.f32 0.5, %v7830_v11  ;;  %v5530_v31 = vld [vmem:[%s7252_s20 + $0xc0] sm:$0xff] }
0x17ea   : > { %v5678_v62 = vadd.f32 1.0, %v6974_v55  ;;  %6983 = verf.f32 %v5621_v46  ;;  %v7866_v0 = vadd.f32 %v5527_v42, %v5495_v47  ;;  %v6761_v63 = vpack.c.bf16 %v7853_v40, %v7858_v44  ;;  %v5468_v11 = vld [vmem:[%s8047_s1 + $0xd0] sm:$0xff]  ;;  %v5730_v40 = vld [vmem:[%s7257_s27] sm:$0x1f] }
0x17eb   : > { %v7871_v1 = vmul.f32 %v5679_v56, %v5583_v45  ;;  %6985 = verf.f32 %v5620_v59  ;;  %v7873_v2 = vadd.f32 %v5526_v33, %v5494_v60  ;;  %v6635_v32 = vpop.f32.mrb[42].mxu0  ;;  %v5586_v56 = vmul.f32 0.5, %v7837_v15  ;;  %v5469_v60 = vld [vmem:[%s8047_s1 + $0xd8] sm:$0xff] }
0x17ec   : > { %v6976_v8 = vpop.eup %6975  ;;  %v7876_v10 = vmul.f32 %v5678_v62, %v5582_v58  ;;  %v5623_v50 = vmul.f32 0.70710677, %v7866_v0  ;;  %v5497_v16 = vmul.f32 %v6635_v32, %v5465_v61  ;;  %v5393_v17 = vpop.f32.mrb[43].mxu0 }
0x17ed   : > { %v6978_v23 = vpop.eup %6977  ;;  %v5681_v24 = vadd.f32 1.0, %v6976_v8  ;;  %v5622_v26 = vmul.f32 0.70710677, %v7873_v2  ;;  %v5496_v27 = vmul.f32 %v5464_v28, %v5393_v17  ;;  %v5533_v8 = vld [vmem:[%s7252_s20 + $0xd8] sm:$0xff] }
0x17ee   : > { %v5680_v20 = vadd.f32 1.0, %v6978_v23  ;;  %6987 = verf.f32 %v5623_v50  ;;  %v7884_v34 = vadd.f32 %v5529_v4, %v5497_v16  ;;  %v6765_v35 = vpack.c.bf16 %v7871_v1, %v7876_v10  ;;  %v5532_v23 = vld [vmem:[%s7252_s20 + $0xd0] sm:$0xff] }
0x17ef   : > { %v7889_v37 = vmul.f32 %v5681_v24, %v5585_v21  ;;  %6989 = verf.f32 %v5622_v26  ;;  %v7891_v5 = vadd.f32 %v5528_v22, %v5496_v27  ;;  %v6638_v53 = vpop.f32.mrb[44].mxu0  ;;  %v5589_v50 = vmul.f32 0.5, %v7848_v38  ;;  %v5470_v38 = vld [vmem:[%s8047_s1 + $0xe0] sm:$0xff] }
0x17f0   : > { %v6980_v9 = vpop.eup %6979  ;;  %v7894_v42 = vmul.f32 %v5680_v20, %v5584_v25  ;;  %v5625_v45 = vmul.f32 0.70710677, %v7884_v34  ;;  %v5499_v46 = vmul.f32 %v6638_v53, %v5467_v18  ;;  %v5403_v47 = vpop.f32.mrb[45].mxu0  ;;  %v5588_v27 = vmul.f32 0.5, %v7855_v41 }
0x17f1   : > { %v6982_v33 = vpop.eup %6981  ;;  %v5683_v55 = vadd.f32 1.0, %v6980_v9  ;;  %v5624_v58 = vmul.f32 0.70710677, %v7891_v5  ;;  %v5498_v59 = vmul.f32 %v5466_v48, %v5403_v47  ;;  %v5471_v48 = vld [vmem:[%s8047_s1 + $0xe8] sm:$0xff]  ;;  %v5591_v41 = vmul.f32 0.5, %v7866_v0  ;;  %v5473_v0 = vld [vmem:[%s8047_s1 + $0xf8] sm:$0xff] }
0x17f2   : > { %v5682_v61 = vadd.f32 1.0, %v6982_v33  ;;  %6991 = verf.f32 %v5625_v45  ;;  %v7902_v62 = vadd.f32 %v5531_v3, %v5499_v46  ;;  %v6769_v28 = vpack.c.bf16 %v7889_v37, %v7894_v42  ;;  %v5535_v46 = vld [vmem:[%s7252_s20 + $0xe8] sm:$0xff] }
0x17f3   : > { %6993 = verf.f32 %v5624_v58  ;;  %v7907_v32 = vadd.f32 %v5530_v31, %v5498_v59  ;;  %v6641_v4 = vpop.f32.mrb[46].mxu0  ;;  %v5715_v15 = vmul.f32 %v5683_v55, %v5587_v43  ;;  %v5534_v58 = vld [vmem:[%s7252_s20 + $0xe0] sm:$0xff] }
0x17f4   : > { %v6984_v21 = vpop.eup %6983  ;;  %v5627_v16 = vmul.f32 0.70710677, %v7902_v62  ;;  %v5501_v17 = vmul.f32 %v6641_v4, %v5469_v60  ;;  %v5413_v22 = vpop.f32.mrb[47].mxu0  ;;  %v5714_v24 = vmul.f32 %v5682_v61, %v5586_v56 }
0x17f5   : > { %v6986_v25 = vpop.eup %6985  ;;  %v5685_v26 = vadd.f32 1.0, %v6984_v21  ;;  %v5626_v18 = vmul.f32 0.70710677, %v7907_v32  ;;  %v5500_v20 = vmul.f32 %v5468_v11, %v5413_v22  ;;  %v5590_v11 = vmul.f32 0.5, %v7873_v2 }
0x17f6   : > { %v5684_v53 = vadd.f32 1.0, %v6986_v25  ;;  %6995 = verf.f32 %v5627_v16  ;;  %v7916_v3 = vadd.f32 %v5533_v8, %v5501_v17  ;;  %v6739_v9 = vpack.c.bf16 %v5715_v15, %v5714_v24 }
0x17f7   : > { %6997 = verf.f32 %v5626_v18  ;;  %v7919_v43 = vadd.f32 %v5532_v23, %v5500_v20  ;;  %v6644_v45 = vpop.f32.mrb[48].mxu0  ;;  %v5717_v47 = vmul.f32 %v5685_v26, %v5589_v50  ;;  %v5472_v50 = vld [vmem:[%s8047_s1 + $0xf0] sm:$0xff]  ;;  %v5537_v23 = vld [vmem:[%s7252_s20 + $0xf8] sm:$0xff]  ;;  %v5593_v25 = vmul.f32 0.5, %v7884_v34  ;;  %s1149_s1 = scalar_lea.vmem %s7267_s12, %s5902_s0 }
0x17f8   : > { %v6988_v31 = vpop.eup %6987  ;;  %v5629_v33 = vmul.f32 0.70710677, %v7916_v3  ;;  %v5503_v55 = vmul.f32 %v6644_v45, %v5471_v48  ;;  %v5423_v56 = vpop.f32.mrb[49].mxu0  ;;  %6740 = vmatprep.subr.bf16.mxu1 %v6739_v9  ;;  %v5716_v59 = vmul.f32 %v5684_v53, %v5588_v27  ;;  %v5592_v48 = vmul.f32 0.5, %v7891_v5 }
0x17f9   : > { %v6990_v60 = vpop.eup %6989  ;;  %v5687_v61 = vadd.f32 1.0, %v6988_v31  ;;  %v5628_v4 = vmul.f32 0.70710677, %v7919_v43  ;;  %v5502_v8 = vmul.f32 %v5470_v38, %v5423_v56  ;;  %6742 = vmatpush3.bf16.msra.mxu1 %v6741_v6  ;;  %v5595_v5 = vmul.f32 0.5, %v7902_v62 }
0x17fa   : > { %v5686_v15 = vadd.f32 1.0, %v6990_v60  ;;  %6999 = verf.f32 %v5629_v33  ;;  %v5567_v21 = vadd.f32 %v5535_v46, %v5503_v55  ;;  %v6743_v16 = vpack.c.bf16 %v5717_v47, %v5716_v59 }
0x17fb   : > { %7001 = verf.f32 %v5628_v4  ;;  %v5566_v17 = vadd.f32 %v5534_v58, %v5502_v8  ;;  %v6647_v22 = vpop.f32.mrb[50].mxu0  ;;  %v5719_v24 = vmul.f32 %v5687_v61, %v5591_v41  ;;  %v5594_v7 = vmul.f32 0.5, %v7907_v32 }
0x17fc   : > { %v6992_v2 = vpop.eup %6991  ;;  %v5631_v26 = vmul.f32 0.70710677, %v5567_v21  ;;  %v5505_v27 = vmul.f32 %v6647_v22, %v5473_v0  ;;  %v5433_v18 = vpop.f32.mrb[51].mxu0  ;;  %6744 = vmatprep.subr.bf16.mxu1 %v6743_v16  ;;  %v5718_v54 = vmul.f32 %v5686_v15, %v5590_v11  ;;  %v5597_v4 = vmul.f32 0.5, %v7916_v3 }
0x17fd   : > { %v6994_v6 = vpop.eup %6993  ;;  %v5689_v20 = vadd.f32 1.0, %v6992_v2  ;;  %v5630_v53 = vmul.f32 0.70710677, %v5566_v17  ;;  %v5504_v38 = vmul.f32 %v5472_v50, %v5433_v18  ;;  %6746 = vmatpush3.bf16.msra.mxu1 %v6745_v29  ;;  %v5596_v30 = vmul.f32 0.5, %v7919_v43 }
0x17fe   : > { %v5688_v9 = vadd.f32 1.0, %v6994_v6  ;;  %7003 = verf.f32 %v5631_v26  ;;  %v5569_v45 = vadd.f32 %v5537_v23, %v5505_v27  ;;  %v6747_v34 = vpack.c.bf16 %v5719_v24, %v5718_v54 }
0x17ff   : > { %7005 = verf.f32 %v5630_v53  ;;  %v5568_v46 = vadd.f32 %v5536_v49, %v5504_v38  ;;  %v5721_v47 = vmul.f32 %v5689_v20, %v5593_v25  ;;  %v5599_v50 = vmul.f32 0.5, %v5567_v21 }
0x1800   : > { %v6996_v31 = vpop.eup %6995  ;;  %v5633_v41 = vmul.f32 0.70710677, %v5569_v45  ;;  %6748 = vmatprep.subr.bf16.mxu1 %v6747_v34  ;;  %v5720_v33 = vmul.f32 %v5688_v9, %v5592_v48  ;;  %v5598_v3 = vmul.f32 0.5, %v5566_v17  ;;  %v5601_v24 = vmul.f32 0.5, %v5569_v45 }
0x1801   : > { %v6998_v55 = vpop.eup %6997  ;;  %v5691_v56 = vadd.f32 1.0, %v6996_v31  ;;  %v5632_v58 = vmul.f32 0.70710677, %v5568_v46  ;;  %6750 = vmatpush3.bf16.msra.mxu1 %v6749_v51  ;;  %v5600_v21 = vmul.f32 0.5, %v5568_v46 }
0x1802   : > { %v5690_v12 = vadd.f32 1.0, %v6998_v55  ;;  %7007 = verf.f32 %v5633_v41  ;;  %v6751_v29 = vpack.c.bf16 %v5721_v47, %v5720_v33 }
0x1803   : > { %7009 = verf.f32 %v5632_v58  ;;  %v5723_v59 = vmul.f32 %v5691_v56, %v5595_v5 }
0x1804   : > { %v7000_v60 = vpop.eup %6999  ;;  %6752 = vmatprep.subr.bf16.mxu1 %v6751_v29  ;;  %v5722_v61 = vmul.f32 %v5690_v12, %v5594_v7 }
0x1805   : > { %v7002_v11 = vpop.eup %7001  ;;  %v5693_v62 = vadd.f32 1.0, %v7000_v60  ;;  %6754 = vmatpush3.bf16.msra.mxu1 %v6753_v13 }
0x1806   : > { %v5692_v36 = vadd.f32 1.0, %v7002_v11  ;;  %v6755_v51 = vpack.c.bf16 %v5723_v59, %v5722_v61 }
0x1807   : > { %v5725_v32 = vmul.f32 %v5693_v62, %v5597_v4 }
0x1808   : > { %v7004_v8 = vpop.eup %7003  ;;  %6756 = vmatprep.subr.bf16.mxu1 %v6755_v51  ;;  %v5724_v0 = vmul.f32 %v5692_v36, %v5596_v30 }
0x1809   : > { %v7006_v15 = vpop.eup %7005  ;;  %v5695_v16 = vadd.f32 1.0, %v7004_v8  ;;  %6758 = vmatpush3.bf16.msra.mxu1 %v6757_v39 }
0x180a   : > { %v5694_v22 = vadd.f32 1.0, %v7006_v15  ;;  %v6759_v23 = vpack.c.bf16 %v5725_v32, %v5724_v0 }
0x180b   : > { %v5727_v52 = vmul.f32 %v5695_v16, %v5599_v50 }
0x180c   : > { %v7008_v57 = vpop.eup %7007  ;;  %6760 = vmatprep.subr.bf16.mxu1 %v6759_v23  ;;  %v5726_v13 = vmul.f32 %v5694_v22, %v5598_v3 }
0x180d   : > { %v7010_v43 = vpop.eup %7009  ;;  %v5697_v2 = vadd.f32 1.0, %v7008_v57  ;;  %6762 = vmatpush3.bf16.msra.mxu1 %v6761_v63  ;;  %v5732_v63 = vld [vmem:[%s7262_s4] sm:$0x1f] }
0x180e   : > { %v5696_v14 = vadd.f32 1.0, %v7010_v43  ;;  %v6763_v19 = vpack.c.bf16 %v5727_v52, %v5726_v13 }
0x180f   : > { %v5729_v39 = vmul.f32 %v5697_v2, %v5601_v24 }
0x1810   : > { %6764 = vmatprep.subr.bf16.mxu1 %v6763_v19  ;;  %v5728_v17 = vmul.f32 %v5696_v14, %v5600_v21 }
0x1811   : > { %6766 = vmatpush3.bf16.msra.mxu1 %v6765_v35 }
0x1812   : > { %v6767_v25 = vpack.c.bf16 %v5729_v39, %v5728_v17 }
0x1814   : > { %6768 = vmatprep.subr.bf16.mxu1 %v6767_v25 }
0x1815   : > { %6770 = vmatpush3.bf16.msra.mxu1 %v6769_v28 }
0x1818   : > { %5798 = vmatmul.mubr.f32.vlgmr.msra.gmra.mrb[24].mxu1 %v5730_v40 }
0x18eb   : > { %v6293_v44 = vpop.f32.mrb[24].mxu1 }
0x18ec   : > { %v6294_v26 = vpop.f32.mrb[25].mxu1 }
0x18ed   : > { %v6295_v27 = vadd.f32 %v6294_v26, %v6293_v44 }
0x18ef   : > { %v5800_v18 = vadd.f32 %v6295_v27, %v5732_v63 }
0x18f1   : > { %5804 = vst.msk [vmem:[%s1149_s1] sm:$0x1f] %vm5803_vm14, %v5800_v18 }
0x18f2 PF: > { %s87_s15 = sadd.s32 1, %s7017_s15  }
0x18f3   : > { %p84_p4 = scmp.ge.s32.totalorder %s87_s15, 4  }
0x18f5   :  { %86 = sbr.rel (!%p84_p4) target bundleno = 74 (0x4a), region = 267 }

</bundles_post_ra>
